<compile_context>
chip_gen: v5e
topology: v5e:2x2
jax: 0.10.0
libtpu: 0.0.40
codegen_flags: <defaults>
</compile_context>

<pallas_src>
import functools
import math

import jax
import jax.numpy as jnp
from jax.experimental import pallas as pl
from jax.experimental.pallas import tpu as pltpu


# ----------------------------------------------------------------------------
# Pallas kernel: fused  QK^T + mask_bias + triangle_bias -> softmax -> @V -> *gate
# ----------------------------------------------------------------------------
def _attn_kernel(q_ref, k_ref, v_ref, g_ref, mb_ref, tb_ref, o_ref, *, no_heads, c_hidden):
    H, D = no_heads, c_hidden
    IT = q_ref.shape[1]                      # rows of I processed per grid step

    for r in range(IT):                      # static unroll: IT is a small constant
        q = q_ref[0, r]                      # (J, H*D) lane-dense load
        k = k_ref[0, r]                      # (J, H*D)
        v = v_ref[0, r]                      # (J, H*D)
        mb = mb_ref[0, r]                    # (1, J) mask bias; broadcasts over queries/heads

        outs = []
        for h in range(H):                   # static unroll over heads
            lo, hi = h * D, (h + 1) * D
            qh = q[:, lo:hi]                 # (J, D) -- q already scaled via w_q folding
            kh = k[:, lo:hi]                 # (J, D)
            vh = v[:, lo:hi]                 # (J, D)
            tb = tb_ref[0, h]                # (J, J) triangle bias; resident across I axis

            a = jnp.dot(qh, kh.T, preferred_element_type=jnp.float32)   # (J, J)
            a = a + mb + tb
            a = a - jnp.max(a, axis=-1, keepdims=True)
            p = jnp.exp(a)
            inv = pl.reciprocal(jnp.sum(p, axis=-1, keepdims=True), approx=True)
            p = p * inv
            outs.append(jnp.dot(p, vh, preferred_element_type=jnp.float32))

        o = jnp.concatenate(outs, axis=-1)   # (J, H*D) lane-dense
        o = o * g_ref[0, r]                  # fused sigmoid-gate multiply
        o_ref[0, r] = o.astype(o_ref.dtype)  # single unmasked lane-dense store per row


def _pallas_attention(q, k, v, g, mask_bias, tri_bias, *, no_heads, c_hidden):
    """q,k,v,g: [B, I, J, H*D]; mask_bias: [B, I, 1, J]; tri_bias: [B, H, J, J]."""
    B, I, J, HD = q.shape
    H, D = no_heads, c_hidden
    assert HD == H * D

    # Rows of I per grid step (amortizes per-step overhead, reuses resident tri_bias).
    IT = next(t for t in (8, 4, 2, 1) if I % t == 0)
    grid = (B, I // IT)

    kernel = functools.partial(_attn_kernel, no_heads=H, c_hidden=D)

    return pl.pallas_call(
        kernel,
        out_shape=jax.ShapeDtypeStruct((B, I, J, HD), q.dtype),
        grid_spec=pltpu.PrefetchScalarGridSpec(
            num_scalar_prefetch=0,
            grid=grid,
            in_specs=[
                pl.BlockSpec((1, IT, J, HD), lambda b, it: (b, it, 0, 0)),  # q
                pl.BlockSpec((1, IT, J, HD), lambda b, it: (b, it, 0, 0)),  # k
                pl.BlockSpec((1, IT, J, HD), lambda b, it: (b, it, 0, 0)),  # v
                pl.BlockSpec((1, IT, J, HD), lambda b, it: (b, it, 0, 0)),  # gate (post-sigmoid)
                pl.BlockSpec((1, IT, 1, J), lambda b, it: (b, it, 0, 0)),   # mask bias
                # triangle bias: block index depends only on b -> stays resident across `it`
                pl.BlockSpec((1, H, J, J), lambda b, it: (b, 0, 0, 0)),
            ],
            out_specs=pl.BlockSpec((1, IT, J, HD), lambda b, it: (b, it, 0, 0)),
        ),
        compiler_params=pltpu.CompilerParams(
            dimension_semantics=("parallel", "arbitrary")),
    )(q, k, v, g, mask_bias, tri_bias)


# ----------------------------------------------------------------------------
# Parameter construction (deterministic, shapes match the PyTorch module)
# ----------------------------------------------------------------------------
def init_params(key, c_in, c_hidden, no_heads):
    H, D, C = no_heads, c_hidden, c_in
    ks = jax.random.split(key, 6)

    def rnd(k, shape, fan_in):
        return jax.random.normal(k, shape, jnp.float32) / math.sqrt(fan_in)

    return dict(
        ln_w=jnp.ones((C,), jnp.float32),            # LayerNorm weight
        ln_b=jnp.zeros((C,), jnp.float32),           # LayerNorm bias
        w_tri=rnd(ks[0], (H, C), C),                 # Linear(c_in, no_heads, bias=False)
        w_q=rnd(ks[1], (H * D, C), C),               # linear_q (no bias)
        w_k=rnd(ks[2], (H * D, C), C),               # linear_k (no bias)
        w_v=rnd(ks[3], (H * D, C), C),               # linear_v (no bias)
        w_g=rnd(ks[4], (H * D, C), C),               # linear_g
        b_g=jnp.ones((H * D,), jnp.float32),         # gating bias = 1 (as in 'gating' init)
        w_o=rnd(ks[5], (C, H * D), H * D),           # linear_o
        b_o=jnp.zeros((C,), jnp.float32),
    )


# ----------------------------------------------------------------------------
# Shared pre-processing: LayerNorm, biases, projections (natural layout, no transposes)
# ----------------------------------------------------------------------------
def _prep(x, mask, params, c_hidden, no_heads, inf=1e9, eps=1e-5):
    H, D = no_heads, c_hidden

    # LayerNorm over last dim (biased variance, like torch layer_norm)
    mu = jnp.mean(x, axis=-1, keepdims=True)
    var = jnp.mean((x - mu) ** 2, axis=-1, keepdims=True)
    xn = (x - mu) * jax.lax.rsqrt(var + eps) * params["ln_w"] + params["ln_b"]

    B, I, J, C = xn.shape
    assert I == J, "triangle attention expects a square pair representation"

    # mask bias: inf * (mask - 1), per (batch, row i, key j); broadcasts over heads/queries
    mask_bias = (inf * (mask - 1.0)).reshape(B, I, 1, J).astype(jnp.float32)

    # triangle bias: Linear(c_in, no_heads), permuted -> [B, H, Q(=I), K(=J)]
    tri_bias = jnp.einsum("bijc,hc->bhij", xn, params["w_tri"])

    # Fold 1/sqrt(D) into w_q (weight-side scaling is free).
    wq = params["w_q"] / math.sqrt(D)

    # Projections kept in the natural channels-last [B, I, J, H*D] layout.
    q = jnp.einsum("bijc,oc->bijo", xn, wq)
    k = jnp.einsum("bijc,oc->bijo", xn, params["w_k"])
    v = jnp.einsum("bijc,oc->bijo", xn, params["w_v"])
    g = jax.nn.sigmoid(jnp.einsum("bijc,oc->bijo", xn, params["w_g"]) + params["b_g"])
    return q, k, v, g, mask_bias, tri_bias


# ----------------------------------------------------------------------------
# TriangleAttention forward (glue in JAX, fused attention+gating core in Pallas)
# ----------------------------------------------------------------------------
def triangle_attention(x, mask, params, c_hidden, no_heads,
                       starting=True, inf=1e9, eps=1e-5):
    if not starting:
        x = jnp.swapaxes(x, -2, -3)
        mask = jnp.swapaxes(mask, -1, -2)

    q, k, v, g, mask_bias, tri_bias = _prep(x, mask, params, c_hidden, no_heads, inf, eps)

    # --- Pallas fused attention + gating core:  [B, I, J, H*D] ---
    o = _pallas_attention(q, k, v, g, mask_bias, tri_bias,
                          no_heads=no_heads, c_hidden=c_hidden)

    # output projection
    out = jnp.einsum("bijo,co->bijc", o, params["w_o"]) + params["b_o"]

    if not starting:
        out = jnp.swapaxes(out, -2, -3)
    return out


# Pure-JAX reference for the fused attention + gating core (correctness check).
def _ref_gated_attention(q, k, v, g, mask_bias, tri_bias, no_heads, c_hidden):
    B, I, J, HD = q.shape
    H, D = no_heads, c_hidden
    qh = q.reshape(B, I, J, H, D)
    kh = k.reshape(B, I, J, H, D)
    vh = v.reshape(B, I, J, H, D)
    a = jnp.einsum("biqhd,bikhd->bihqk", qh, kh)
    a = a + mask_bias[:, :, None, :, :] + tri_bias[:, None, :, :, :]
    p = jax.nn.softmax(a, axis=-1)
    o = jnp.einsum("bihqk,bikhd->biqhd", p, vh)
    return o.reshape(B, I, J, HD) * g


if __name__ == "__main__":
    # H*D = 4*32 = 128 -> lane-dense kernel I/O.
    B, N, C_IN, C_HIDDEN, NO_HEADS = 2, 16, 32, 32, 4

    key = jax.random.PRNGKey(0)
    k_x, k_p, k_m = jax.random.split(key, 3)
    x = jax.random.normal(k_x, (B, N, N, C_IN), jnp.float32)
    mask = (jax.random.uniform(k_m, (B, N, N)) > 0.1).astype(jnp.float32)  # non-trivial mask

    params = init_params(k_p, C_IN, C_HIDDEN, NO_HEADS)

    # Full forward (starting=True and starting=False branches).
    out = jax.block_until_ready(
        triangle_attention(x, mask, params, C_HIDDEN, NO_HEADS, starting=True))
    assert out.shape == (B, N, N, C_IN) and out.dtype == jnp.float32
    out2 = jax.block_until_ready(
        triangle_attention(x, mask, params, C_HIDDEN, NO_HEADS, starting=False))
    assert out2.shape == (B, N, N, C_IN)

    # Verify the Pallas fused attention+gating core against a pure-JAX reference.
    q, kk, v, g, mb, tb = _prep(x, mask, params, C_HIDDEN, NO_HEADS)
    o_kernel = jax.block_until_ready(
        _pallas_attention(q, kk, v, g, mb, tb, no_heads=NO_HEADS, c_hidden=C_HIDDEN))
    o_ref = _ref_gated_attention(q, kk, v, g, mb, tb, NO_HEADS, C_HIDDEN)
    # tolerance covers the approx EUP reciprocal in the softmax normalization
    assert jnp.allclose(o_kernel, o_ref, atol=1e-2, rtol=1e-2), "kernel mismatch vs reference"

    print("KERNEL_OK")
</pallas_src>

<mosaic_0001>
module attributes {stable_mosaic.version = 11 : i64} {
  func.func @_attn_kernel(%arg0: i32, %arg1: i32, %arg2: memref<1x8x16x128xf32, #tpu.memory_space<vmem>>, %arg3: memref<1x8x16x128xf32, #tpu.memory_space<vmem>>, %arg4: memref<1x8x16x128xf32, #tpu.memory_space<vmem>>, %arg5: memref<1x8x16x128xf32, #tpu.memory_space<vmem>>, %arg6: memref<1x8x1x16xf32, #tpu.memory_space<vmem>>, %arg7: memref<1x4x16x16xf32, #tpu.memory_space<vmem>>, %arg8: memref<1x8x16x128xf32, #tpu.memory_space<vmem>>) attributes {dimension_semantics = [#tpu.dimension_semantics<parallel>, #tpu.dimension_semantics<arbitrary>], iteration_bounds = array<i64: 2, 2>, scalar_prefetch = 0 : i64, scratch_operands = 0 : i64, tpu.core_type = #tpu.core_type<tc>, window_params = [{transform_indices = @transform_0, window_bounds = array<i64: 1, 8, 16, 128>}, {transform_indices = @transform_1, window_bounds = array<i64: 1, 8, 16, 128>}, {transform_indices = @transform_2, window_bounds = array<i64: 1, 8, 16, 128>}, {transform_indices = @transform_3, window_bounds = array<i64: 1, 8, 16, 128>}, {transform_indices = @transform_4, window_bounds = array<i64: 1, 8, 1, 16>}, {transform_indices = @transform_5, window_bounds = array<i64: 1, 4, 16, 16>}, {transform_indices = @transform_6, window_bounds = array<i64: 1, 8, 16, 128>}]} {
    %c0 = arith.constant 0 : index
    %c0_0 = arith.constant 0 : index
    %c0_1 = arith.constant 0 : index
    %c0_2 = arith.constant 0 : index
    %0 = vector.load %arg2[%c0, %c0_0, %c0_1, %c0_2] : memref<1x8x16x128xf32, #tpu.memory_space<vmem>>, vector<1x1x16x128xf32>
    %1 = vector.shape_cast %0 : vector<1x1x16x128xf32> to vector<16x128xf32>
    %c0_3 = arith.constant 0 : index
    %c0_4 = arith.constant 0 : index
    %c0_5 = arith.constant 0 : index
    %c0_6 = arith.constant 0 : index
    %2 = vector.load %arg3[%c0_3, %c0_4, %c0_5, %c0_6] : memref<1x8x16x128xf32, #tpu.memory_space<vmem>>, vector<1x1x16x128xf32>
    %3 = vector.shape_cast %2 : vector<1x1x16x128xf32> to vector<16x128xf32>
    %c0_7 = arith.constant 0 : index
    %c0_8 = arith.constant 0 : index
    %c0_9 = arith.constant 0 : index
    %c0_10 = arith.constant 0 : index
    %4 = vector.load %arg4[%c0_7, %c0_8, %c0_9, %c0_10] : memref<1x8x16x128xf32, #tpu.memory_space<vmem>>, vector<1x1x16x128xf32>
    %5 = vector.shape_cast %4 : vector<1x1x16x128xf32> to vector<16x128xf32>
    %c0_11 = arith.constant 0 : index
    %c0_12 = arith.constant 0 : index
    %c0_13 = arith.constant 0 : index
    %c0_14 = arith.constant 0 : index
    %6 = vector.load %arg6[%c0_11, %c0_12, %c0_13, %c0_14] : memref<1x8x1x16xf32, #tpu.memory_space<vmem>>, vector<1x1x1x16xf32>
    %7 = vector.shape_cast %6 : vector<1x1x1x16xf32> to vector<1x16xf32>
    %8 = vector.extract_strided_slice %1 {offsets = [0, 0], sizes = [16, 32], strides = [1, 1]} : vector<16x128xf32> to vector<16x32xf32>
    %9 = vector.extract_strided_slice %3 {offsets = [0, 0], sizes = [16, 32], strides = [1, 1]} : vector<16x128xf32> to vector<16x32xf32>
    %10 = vector.extract_strided_slice %5 {offsets = [0, 0], sizes = [16, 32], strides = [1, 1]} : vector<16x128xf32> to vector<16x32xf32>
    %c0_15 = arith.constant 0 : index
    %c0_16 = arith.constant 0 : index
    %c0_17 = arith.constant 0 : index
    %c0_18 = arith.constant 0 : index
    %11 = vector.load %arg7[%c0_15, %c0_16, %c0_17, %c0_18] : memref<1x4x16x16xf32, #tpu.memory_space<vmem>>, vector<1x1x16x16xf32>
    %12 = vector.shape_cast %11 : vector<1x1x16x16xf32> to vector<16x16xf32>
    %13 = tpu.transpose %9, [1, 0] : vector<16x32xf32> -> vector<32x16xf32>
    %cst = arith.constant dense<0.000000e+00> : vector<16x16xf32>
    %14 = tpu.matmul %8, %13, %cst {dimension_numbers = #tpu.dot_dimension_numbers<[1], [0], [0], [1], [0, 0, 1, 1], [], []>} : vector<16x32xf32>, vector<32x16xf32>, vector<16x16xf32> -> vector<16x16xf32>
    %15 = vector.broadcast %7 : vector<1x16xf32> to vector<16x16xf32>
    %16 = arith.addf %14, %15 : vector<16x16xf32>
    %17 = arith.addf %16, %12 : vector<16x16xf32>
    %cst_19 = arith.constant dense<0xFF800000> : vector<16xf32>
    %18 = vector.multi_reduction <maximumf>, %17, %cst_19 [1] : vector<16x16xf32> to vector<16xf32>
    %19 = vector.shape_cast %18 : vector<16xf32> to vector<16x1xf32>
    %20 = vector.broadcast %19 : vector<16x1xf32> to vector<16x16xf32>
    %21 = arith.subf %17, %20 : vector<16x16xf32>
    %22 = math.exp %21 : vector<16x16xf32>
    %cst_20 = arith.constant dense<0.000000e+00> : vector<16xf32>
    %23 = vector.multi_reduction <add>, %22, %cst_20 [1] : vector<16x16xf32> to vector<16xf32>
    %24 = vector.shape_cast %23 : vector<16xf32> to vector<16x1xf32>
    %25 = tpu.reciprocal %24 {approx = true} : vector<16x1xf32> -> vector<16x1xf32>
    %26 = vector.broadcast %25 : vector<16x1xf32> to vector<16x16xf32>
    %27 = arith.mulf %22, %26 : vector<16x16xf32>
    %cst_21 = arith.constant dense<0.000000e+00> : vector<16x32xf32>
    %28 = tpu.matmul %27, %10, %cst_21 {dimension_numbers = #tpu.dot_dimension_numbers<[1], [0], [0], [1], [0, 0, 1, 1], [], []>} : vector<16x16xf32>, vector<16x32xf32>, vector<16x32xf32> -> vector<16x32xf32>
    %29 = vector.extract_strided_slice %1 {offsets = [0, 32], sizes = [16, 32], strides = [1, 1]} : vector<16x128xf32> to vector<16x32xf32>
    %30 = vector.extract_strided_slice %3 {offsets = [0, 32], sizes = [16, 32], strides = [1, 1]} : vector<16x128xf32> to vector<16x32xf32>
    %31 = vector.extract_strided_slice %5 {offsets = [0, 32], sizes = [16, 32], strides = [1, 1]} : vector<16x128xf32> to vector<16x32xf32>
    %c0_22 = arith.constant 0 : index
    %c1 = arith.constant 1 : index
    %c0_23 = arith.constant 0 : index
    %c0_24 = arith.constant 0 : index
    %32 = vector.load %arg7[%c0_22, %c1, %c0_23, %c0_24] : memref<1x4x16x16xf32, #tpu.memory_space<vmem>>, vector<1x1x16x16xf32>
    %33 = vector.shape_cast %32 : vector<1x1x16x16xf32> to vector<16x16xf32>
    %34 = tpu.transpose %30, [1, 0] : vector<16x32xf32> -> vector<32x16xf32>
    %cst_25 = arith.constant dense<0.000000e+00> : vector<16x16xf32>
    %35 = tpu.matmul %29, %34, %cst_25 {dimension_numbers = #tpu.dot_dimension_numbers<[1], [0], [0], [1], [0, 0, 1, 1], [], []>} : vector<16x32xf32>, vector<32x16xf32>, vector<16x16xf32> -> vector<16x16xf32>
    %36 = vector.broadcast %7 : vector<1x16xf32> to vector<16x16xf32>
    %37 = arith.addf %35, %36 : vector<16x16xf32>
    %38 = arith.addf %37, %33 : vector<16x16xf32>
    %cst_26 = arith.constant dense<0xFF800000> : vector<16xf32>
    %39 = vector.multi_reduction <maximumf>, %38, %cst_26 [1] : vector<16x16xf32> to vector<16xf32>
    %40 = vector.shape_cast %39 : vector<16xf32> to vector<16x1xf32>
    %41 = vector.broadcast %40 : vector<16x1xf32> to vector<16x16xf32>
    %42 = arith.subf %38, %41 : vector<16x16xf32>
    %43 = math.exp %42 : vector<16x16xf32>
    %cst_27 = arith.constant dense<0.000000e+00> : vector<16xf32>
    %44 = vector.multi_reduction <add>, %43, %cst_27 [1] : vector<16x16xf32> to vector<16xf32>
    %45 = vector.shape_cast %44 : vector<16xf32> to vector<16x1xf32>
    %46 = tpu.reciprocal %45 {approx = true} : vector<16x1xf32> -> vector<16x1xf32>
    %47 = vector.broadcast %46 : vector<16x1xf32> to vector<16x16xf32>
    %48 = arith.mulf %43, %47 : vector<16x16xf32>
    %cst_28 = arith.constant dense<0.000000e+00> : vector<16x32xf32>
    %49 = tpu.matmul %48, %31, %cst_28 {dimension_numbers = #tpu.dot_dimension_numbers<[1], [0], [0], [1], [0, 0, 1, 1], [], []>} : vector<16x16xf32>, vector<16x32xf32>, vector<16x32xf32> -> vector<16x32xf32>
    %50 = vector.extract_strided_slice %1 {offsets = [0, 64], sizes = [16, 32], strides = [1, 1]} : vector<16x128xf32> to vector<16x32xf32>
    %51 = vector.extract_strided_slice %3 {offsets = [0, 64], sizes = [16, 32], strides = [1, 1]} : vector<16x128xf32> to vector<16x32xf32>
    %52 = vector.extract_strided_slice %5 {offsets = [0, 64], sizes = [16, 32], strides = [1, 1]} : vector<16x128xf32> to vector<16x32xf32>
    %c0_29 = arith.constant 0 : index
    %c2 = arith.constant 2 : index
    %c0_30 = arith.constant 0 : index
    %c0_31 = arith.constant 0 : index
    %53 = vector.load %arg7[%c0_29, %c2, %c0_30, %c0_31] : memref<1x4x16x16xf32, #tpu.memory_space<vmem>>, vector<1x1x16x16xf32>
    %54 = vector.shape_cast %53 : vector<1x1x16x16xf32> to vector<16x16xf32>
    %55 = tpu.transpose %51, [1, 0] : vector<16x32xf32> -> vector<32x16xf32>
    %cst_32 = arith.constant dense<0.000000e+00> : vector<16x16xf32>
    %56 = tpu.matmul %50, %55, %cst_32 {dimension_numbers = #tpu.dot_dimension_numbers<[1], [0], [0], [1], [0, 0, 1, 1], [], []>} : vector<16x32xf32>, vector<32x16xf32>, vector<16x16xf32> -> vector<16x16xf32>
    %57 = vector.broadcast %7 : vector<1x16xf32> to vector<16x16xf32>
    %58 = arith.addf %56, %57 : vector<16x16xf32>
    %59 = arith.addf %58, %54 : vector<16x16xf32>
    %cst_33 = arith.constant dense<0xFF800000> : vector<16xf32>
    %60 = vector.multi_reduction <maximumf>, %59, %cst_33 [1] : vector<16x16xf32> to vector<16xf32>
    %61 = vector.shape_cast %60 : vector<16xf32> to vector<16x1xf32>
    %62 = vector.broadcast %61 : vector<16x1xf32> to vector<16x16xf32>
    %63 = arith.subf %59, %62 : vector<16x16xf32>
    %64 = math.exp %63 : vector<16x16xf32>
    %cst_34 = arith.constant dense<0.000000e+00> : vector<16xf32>
    %65 = vector.multi_reduction <add>, %64, %cst_34 [1] : vector<16x16xf32> to vector<16xf32>
    %66 = vector.shape_cast %65 : vector<16xf32> to vector<16x1xf32>
    %67 = tpu.reciprocal %66 {approx = true} : vector<16x1xf32> -> vector<16x1xf32>
    %68 = vector.broadcast %67 : vector<16x1xf32> to vector<16x16xf32>
    %69 = arith.mulf %64, %68 : vector<16x16xf32>
    %cst_35 = arith.constant dense<0.000000e+00> : vector<16x32xf32>
    %70 = tpu.matmul %69, %52, %cst_35 {dimension_numbers = #tpu.dot_dimension_numbers<[1], [0], [0], [1], [0, 0, 1, 1], [], []>} : vector<16x16xf32>, vector<16x32xf32>, vector<16x32xf32> -> vector<16x32xf32>
    %71 = vector.extract_strided_slice %1 {offsets = [0, 96], sizes = [16, 32], strides = [1, 1]} : vector<16x128xf32> to vector<16x32xf32>
    %72 = vector.extract_strided_slice %3 {offsets = [0, 96], sizes = [16, 32], strides = [1, 1]} : vector<16x128xf32> to vector<16x32xf32>
    %73 = vector.extract_strided_slice %5 {offsets = [0, 96], sizes = [16, 32], strides = [1, 1]} : vector<16x128xf32> to vector<16x32xf32>
    %c0_36 = arith.constant 0 : index
    %c3 = arith.constant 3 : index
    %c0_37 = arith.constant 0 : index
    %c0_38 = arith.constant 0 : index
    %74 = vector.load %arg7[%c0_36, %c3, %c0_37, %c0_38] : memref<1x4x16x16xf32, #tpu.memory_space<vmem>>, vector<1x1x16x16xf32>
    %75 = vector.shape_cast %74 : vector<1x1x16x16xf32> to vector<16x16xf32>
    %76 = tpu.transpose %72, [1, 0] : vector<16x32xf32> -> vector<32x16xf32>
    %cst_39 = arith.constant dense<0.000000e+00> : vector<16x16xf32>
    %77 = tpu.matmul %71, %76, %cst_39 {dimension_numbers = #tpu.dot_dimension_numbers<[1], [0], [0], [1], [0, 0, 1, 1], [], []>} : vector<16x32xf32>, vector<32x16xf32>, vector<16x16xf32> -> vector<16x16xf32>
    %78 = vector.broadcast %7 : vector<1x16xf32> to vector<16x16xf32>
    %79 = arith.addf %77, %78 : vector<16x16xf32>
    %80 = arith.addf %79, %75 : vector<16x16xf32>
    %cst_40 = arith.constant dense<0xFF800000> : vector<16xf32>
    %81 = vector.multi_reduction <maximumf>, %80, %cst_40 [1] : vector<16x16xf32> to vector<16xf32>
    %82 = vector.shape_cast %81 : vector<16xf32> to vector<16x1xf32>
    %83 = vector.broadcast %82 : vector<16x1xf32> to vector<16x16xf32>
    %84 = arith.subf %80, %83 : vector<16x16xf32>
    %85 = math.exp %84 : vector<16x16xf32>
    %cst_41 = arith.constant dense<0.000000e+00> : vector<16xf32>
    %86 = vector.multi_reduction <add>, %85, %cst_41 [1] : vector<16x16xf32> to vector<16xf32>
    %87 = vector.shape_cast %86 : vector<16xf32> to vector<16x1xf32>
    %88 = tpu.reciprocal %87 {approx = true} : vector<16x1xf32> -> vector<16x1xf32>
    %89 = vector.broadcast %88 : vector<16x1xf32> to vector<16x16xf32>
    %90 = arith.mulf %85, %89 : vector<16x16xf32>
    %cst_42 = arith.constant dense<0.000000e+00> : vector<16x32xf32>
    %91 = tpu.matmul %90, %73, %cst_42 {dimension_numbers = #tpu.dot_dimension_numbers<[1], [0], [0], [1], [0, 0, 1, 1], [], []>} : vector<16x16xf32>, vector<16x32xf32>, vector<16x32xf32> -> vector<16x32xf32>
    %92 = tpu.concatenate %28, %49, %70, %91 in 1 : vector<16x32xf32>, vector<16x32xf32>, vector<16x32xf32>, vector<16x32xf32> -> vector<16x128xf32>
    %c0_43 = arith.constant 0 : index
    %c0_44 = arith.constant 0 : index
    %c0_45 = arith.constant 0 : index
    %c0_46 = arith.constant 0 : index
    %93 = vector.load %arg5[%c0_43, %c0_44, %c0_45, %c0_46] : memref<1x8x16x128xf32, #tpu.memory_space<vmem>>, vector<1x1x16x128xf32>
    %94 = vector.shape_cast %93 : vector<1x1x16x128xf32> to vector<16x128xf32>
    %95 = arith.mulf %92, %94 : vector<16x128xf32>
    %c0_47 = arith.constant 0 : index
    %c0_48 = arith.constant 0 : index
    %c0_49 = arith.constant 0 : index
    %c0_50 = arith.constant 0 : index
    %96 = vector.load %arg8[%c0_47, %c0_48, %c0_49, %c0_50] : memref<1x8x16x128xf32, #tpu.memory_space<vmem>>, vector<1x1x16x128xf32>
    %97 = vector.shape_cast %96 : vector<1x1x16x128xf32> to vector<16x128xf32>
    %98 = vector.shape_cast %95 : vector<16x128xf32> to vector<1x1x16x128xf32>
    tpu.vector_store %arg8[%c0_47, %c0_48, %c0_49, %c0_50], %98 {strides = array<i32>} : memref<1x8x16x128xf32, #tpu.memory_space<vmem>>, vector<1x1x16x128xf32>,
    %c0_51 = arith.constant 0 : index
    %c1_52 = arith.constant 1 : index
    %c0_53 = arith.constant 0 : index
    %c0_54 = arith.constant 0 : index
    %99 = vector.load %arg2[%c0_51, %c1_52, %c0_53, %c0_54] : memref<1x8x16x128xf32, #tpu.memory_space<vmem>>, vector<1x1x16x128xf32>
    %100 = vector.shape_cast %99 : vector<1x1x16x128xf32> to vector<16x128xf32>
    %c0_55 = arith.constant 0 : index
    %c1_56 = arith.constant 1 : index
    %c0_57 = arith.constant 0 : index
    %c0_58 = arith.constant 0 : index
    %101 = vector.load %arg3[%c0_55, %c1_56, %c0_57, %c0_58] : memref<1x8x16x128xf32, #tpu.memory_space<vmem>>, vector<1x1x16x128xf32>
    %102 = vector.shape_cast %101 : vector<1x1x16x128xf32> to vector<16x128xf32>
    %c0_59 = arith.constant 0 : index
    %c1_60 = arith.constant 1 : index
    %c0_61 = arith.constant 0 : index
    %c0_62 = arith.constant 0 : index
    %103 = vector.load %arg4[%c0_59, %c1_60, %c0_61, %c0_62] : memref<1x8x16x128xf32, #tpu.memory_space<vmem>>, vector<1x1x16x128xf32>
    %104 = vector.shape_cast %103 : vector<1x1x16x128xf32> to vector<16x128xf32>
    %c0_63 = arith.constant 0 : index
    %c1_64 = arith.constant 1 : index
    %c0_65 = arith.constant 0 : index
    %c0_66 = arith.constant 0 : index
    %105 = vector.load %arg6[%c0_63, %c1_64, %c0_65, %c0_66] : memref<1x8x1x16xf32, #tpu.memory_space<vmem>>, vector<1x1x1x16xf32>
    %106 = vector.shape_cast %105 : vector<1x1x1x16xf32> to vector<1x16xf32>
    %107 = vector.extract_strided_slice %100 {offsets = [0, 0], sizes = [16, 32], strides = [1, 1]} : vector<16x128xf32> to vector<16x32xf32>
    %108 = vector.extract_strided_slice %102 {offsets = [0, 0], sizes = [16, 32], strides = [1, 1]} : vector<16x128xf32> to vector<16x32xf32>
    %109 = vector.extract_strided_slice %104 {offsets = [0, 0], sizes = [16, 32], strides = [1, 1]} : vector<16x128xf32> to vector<16x32xf32>
    %c0_67 = arith.constant 0 : index
    %c0_68 = arith.constant 0 : index
    %c0_69 = arith.constant 0 : index
    %c0_70 = arith.constant 0 : index
    %110 = vector.load %arg7[%c0_67, %c0_68, %c0_69, %c0_70] : memref<1x4x16x16xf32, #tpu.memory_space<vmem>>, vector<1x1x16x16xf32>
    %111 = vector.shape_cast %110 : vector<1x1x16x16xf32> to vector<16x16xf32>
    %112 = tpu.transpose %108, [1, 0] : vector<16x32xf32> -> vector<32x16xf32>
    %cst_71 = arith.constant dense<0.000000e+00> : vector<16x16xf32>
    %113 = tpu.matmul %107, %112, %cst_71 {dimension_numbers = #tpu.dot_dimension_numbers<[1], [0], [0], [1], [0, 0, 1, 1], [], []>} : vector<16x32xf32>, vector<32x16xf32>, vector<16x16xf32> -> vector<16x16xf32>
    %114 = vector.broadcast %106 : vector<1x16xf32> to vector<16x16xf32>
    %115 = arith.addf %113, %114 : vector<16x16xf32>
    %116 = arith.addf %115, %111 : vector<16x16xf32>
    %cst_72 = arith.constant dense<0xFF800000> : vector<16xf32>
    %117 = vector.multi_reduction <maximumf>, %116, %cst_72 [1] : vector<16x16xf32> to vector<16xf32>
    %118 = vector.shape_cast %117 : vector<16xf32> to vector<16x1xf32>
    %119 = vector.broadcast %118 : vector<16x1xf32> to vector<16x16xf32>
    %120 = arith.subf %116, %119 : vector<16x16xf32>
    %121 = math.exp %120 : vector<16x16xf32>
    %cst_73 = arith.constant dense<0.000000e+00> : vector<16xf32>
    %122 = vector.multi_reduction <add>, %121, %cst_73 [1] : vector<16x16xf32> to vector<16xf32>
    %123 = vector.shape_cast %122 : vector<16xf32> to vector<16x1xf32>
    %124 = tpu.reciprocal %123 {approx = true} : vector<16x1xf32> -> vector<16x1xf32>
    %125 = vector.broadcast %124 : vector<16x1xf32> to vector<16x16xf32>
    %126 = arith.mulf %121, %125 : vector<16x16xf32>
    %cst_74 = arith.constant dense<0.000000e+00> : vector<16x32xf32>
    %127 = tpu.matmul %126, %109, %cst_74 {dimension_numbers = #tpu.dot_dimension_numbers<[1], [0], [0], [1], [0, 0, 1, 1], [], []>} : vector<16x16xf32>, vector<16x32xf32>, vector<16x32xf32> -> vector<16x32xf32>
    %128 = vector.extract_strided_slice %100 {offsets = [0, 32], sizes = [16, 32], strides = [1, 1]} : vector<16x128xf32> to vector<16x32xf32>
    %129 = vector.extract_strided_slice %102 {offsets = [0, 32], sizes = [16, 32], strides = [1, 1]} : vector<16x128xf32> to vector<16x32xf32>
    %130 = vector.extract_strided_slice %104 {offsets = [0, 32], sizes = [16, 32], strides = [1, 1]} : vector<16x128xf32> to vector<16x32xf32>
    %c0_75 = arith.constant 0 : index
    %c1_76 = arith.constant 1 : index
    %c0_77 = arith.constant 0 : index
    %c0_78 = arith.constant 0 : index
    %131 = vector.load %arg7[%c0_75, %c1_76, %c0_77, %c0_78] : memref<1x4x16x16xf32, #tpu.memory_space<vmem>>, vector<1x1x16x16xf32>
    %132 = vector.shape_cast %131 : vector<1x1x16x16xf32> to vector<16x16xf32>
    %133 = tpu.transpose %129, [1, 0] : vector<16x32xf32> -> vector<32x16xf32>
    %cst_79 = arith.constant dense<0.000000e+00> : vector<16x16xf32>
    %134 = tpu.matmul %128, %133, %cst_79 {dimension_numbers = #tpu.dot_dimension_numbers<[1], [0], [0], [1], [0, 0, 1, 1], [], []>} : vector<16x32xf32>, vector<32x16xf32>, vector<16x16xf32> -> vector<16x16xf32>
    %135 = vector.broadcast %106 : vector<1x16xf32> to vector<16x16xf32>
    %136 = arith.addf %134, %135 : vector<16x16xf32>
    %137 = arith.addf %136, %132 : vector<16x16xf32>
    %cst_80 = arith.constant dense<0xFF800000> : vector<16xf32>
    %138 = vector.multi_reduction <maximumf>, %137, %cst_80 [1] : vector<16x16xf32> to vector<16xf32>
    %139 = vector.shape_cast %138 : vector<16xf32> to vector<16x1xf32>
    %140 = vector.broadcast %139 : vector<16x1xf32> to vector<16x16xf32>
    %141 = arith.subf %137, %140 : vector<16x16xf32>
    %142 = math.exp %141 : vector<16x16xf32>
    %cst_81 = arith.constant dense<0.000000e+00> : vector<16xf32>
    %143 = vector.multi_reduction <add>, %142, %cst_81 [1] : vector<16x16xf32> to vector<16xf32>
    %144 = vector.shape_cast %143 : vector<16xf32> to vector<16x1xf32>
    %145 = tpu.reciprocal %144 {approx = true} : vector<16x1xf32> -> vector<16x1xf32>
    %146 = vector.broadcast %145 : vector<16x1xf32> to vector<16x16xf32>
    %147 = arith.mulf %142, %146 : vector<16x16xf32>
    %cst_82 = arith.constant dense<0.000000e+00> : vector<16x32xf32>
    %148 = tpu.matmul %147, %130, %cst_82 {dimension_numbers = #tpu.dot_dimension_numbers<[1], [0], [0], [1], [0, 0, 1, 1], [], []>} : vector<16x16xf32>, vector<16x32xf32>, vector<16x32xf32> -> vector<16x32xf32>
    %149 = vector.extract_strided_slice %100 {offsets = [0, 64], sizes = [16, 32], strides = [1, 1]} : vector<16x128xf32> to vector<16x32xf32>
    %150 = vector.extract_strided_slice %102 {offsets = [0, 64], sizes = [16, 32], strides = [1, 1]} : vector<16x128xf32> to vector<16x32xf32>
    %151 = vector.extract_strided_slice %104 {offsets = [0, 64], sizes = [16, 32], strides = [1, 1]} : vector<16x128xf32> to vector<16x32xf32>
    %c0_83 = arith.constant 0 : index
    %c2_84 = arith.constant 2 : index
    %c0_85 = arith.constant 0 : index
    %c0_86 = arith.constant 0 : index
    %152 = vector.load %arg7[%c0_83, %c2_84, %c0_85, %c0_86] : memref<1x4x16x16xf32, #tpu.memory_space<vmem>>, vector<1x1x16x16xf32>
    %153 = vector.shape_cast %152 : vector<1x1x16x16xf32> to vector<16x16xf32>
    %154 = tpu.transpose %150, [1, 0] : vector<16x32xf32> -> vector<32x16xf32>
    %cst_87 = arith.constant dense<0.000000e+00> : vector<16x16xf32>
    %155 = tpu.matmul %149, %154, %cst_87 {dimension_numbers = #tpu.dot_dimension_numbers<[1], [0], [0], [1], [0, 0, 1, 1], [], []>} : vector<16x32xf32>, vector<32x16xf32>, vector<16x16xf32> -> vector<16x16xf32>
    %156 = vector.broadcast %106 : vector<1x16xf32> to vector<16x16xf32>
    %157 = arith.addf %155, %156 : vector<16x16xf32>
    %158 = arith.addf %157, %153 : vector<16x16xf32>
    %cst_88 = arith.constant dense<0xFF800000> : vector<16xf32>
    %159 = vector.multi_reduction <maximumf>, %158, %cst_88 [1] : vector<16x16xf32> to vector<16xf32>
    %160 = vector.shape_cast %159 : vector<16xf32> to vector<16x1xf32>
    %161 = vector.broadcast %160 : vector<16x1xf32> to vector<16x16xf32>
    %162 = arith.subf %158, %161 : vector<16x16xf32>
    %163 = math.exp %162 : vector<16x16xf32>
    %cst_89 = arith.constant dense<0.000000e+00> : vector<16xf32>
    %164 = vector.multi_reduction <add>, %163, %cst_89 [1] : vector<16x16xf32> to vector<16xf32>
    %165 = vector.shape_cast %164 : vector<16xf32> to vector<16x1xf32>
    %166 = tpu.reciprocal %165 {approx = true} : vector<16x1xf32> -> vector<16x1xf32>
    %167 = vector.broadcast %166 : vector<16x1xf32> to vector<16x16xf32>
    %168 = arith.mulf %163, %167 : vector<16x16xf32>
    %cst_90 = arith.constant dense<0.000000e+00> : vector<16x32xf32>
    %169 = tpu.matmul %168, %151, %cst_90 {dimension_numbers = #tpu.dot_dimension_numbers<[1], [0], [0], [1], [0, 0, 1, 1], [], []>} : vector<16x16xf32>, vector<16x32xf32>, vector<16x32xf32> -> vector<16x32xf32>
    %170 = vector.extract_strided_slice %100 {offsets = [0, 96], sizes = [16, 32], strides = [1, 1]} : vector<16x128xf32> to vector<16x32xf32>
    %171 = vector.extract_strided_slice %102 {offsets = [0, 96], sizes = [16, 32], strides = [1, 1]} : vector<16x128xf32> to vector<16x32xf32>
    %172 = vector.extract_strided_slice %104 {offsets = [0, 96], sizes = [16, 32], strides = [1, 1]} : vector<16x128xf32> to vector<16x32xf32>
    %c0_91 = arith.constant 0 : index
    %c3_92 = arith.constant 3 : index
    %c0_93 = arith.constant 0 : index
    %c0_94 = arith.constant 0 : index
    %173 = vector.load %arg7[%c0_91, %c3_92, %c0_93, %c0_94] : memref<1x4x16x16xf32, #tpu.memory_space<vmem>>, vector<1x1x16x16xf32>
    %174 = vector.shape_cast %173 : vector<1x1x16x16xf32> to vector<16x16xf32>
    %175 = tpu.transpose %171, [1, 0] : vector<16x32xf32> -> vector<32x16xf32>
    %cst_95 = arith.constant dense<0.000000e+00> : vector<16x16xf32>
    %176 = tpu.matmul %170, %175, %cst_95 {dimension_numbers = #tpu.dot_dimension_numbers<[1], [0], [0], [1], [0, 0, 1, 1], [], []>} : vector<16x32xf32>, vector<32x16xf32>, vector<16x16xf32> -> vector<16x16xf32>
    %177 = vector.broadcast %106 : vector<1x16xf32> to vector<16x16xf32>
    %178 = arith.addf %176, %177 : vector<16x16xf32>
    %179 = arith.addf %178, %174 : vector<16x16xf32>
    %cst_96 = arith.constant dense<0xFF800000> : vector<16xf32>
    %180 = vector.multi_reduction <maximumf>, %179, %cst_96 [1] : vector<16x16xf32> to vector<16xf32>
    %181 = vector.shape_cast %180 : vector<16xf32> to vector<16x1xf32>
    %182 = vector.broadcast %181 : vector<16x1xf32> to vector<16x16xf32>
    %183 = arith.subf %179, %182 : vector<16x16xf32>
    %184 = math.exp %183 : vector<16x16xf32>
    %cst_97 = arith.constant dense<0.000000e+00> : vector<16xf32>
    %185 = vector.multi_reduction <add>, %184, %cst_97 [1] : vector<16x16xf32> to vector<16xf32>
    %186 = vector.shape_cast %185 : vector<16xf32> to vector<16x1xf32>
    %187 = tpu.reciprocal %186 {approx = true} : vector<16x1xf32> -> vector<16x1xf32>
    %188 = vector.broadcast %187 : vector<16x1xf32> to vector<16x16xf32>
    %189 = arith.mulf %184, %188 : vector<16x16xf32>
    %cst_98 = arith.constant dense<0.000000e+00> : vector<16x32xf32>
    %190 = tpu.matmul %189, %172, %cst_98 {dimension_numbers = #tpu.dot_dimension_numbers<[1], [0], [0], [1], [0, 0, 1, 1], [], []>} : vector<16x16xf32>, vector<16x32xf32>, vector<16x32xf32> -> vector<16x32xf32>
    %191 = tpu.concatenate %127, %148, %169, %190 in 1 : vector<16x32xf32>, vector<16x32xf32>, vector<16x32xf32>, vector<16x32xf32> -> vector<16x128xf32>
    %c0_99 = arith.constant 0 : index
    %c1_100 = arith.constant 1 : index
    %c0_101 = arith.constant 0 : index
    %c0_102 = arith.constant 0 : index
    %192 = vector.load %arg5[%c0_99, %c1_100, %c0_101, %c0_102] : memref<1x8x16x128xf32, #tpu.memory_space<vmem>>, vector<1x1x16x128xf32>
    %193 = vector.shape_cast %192 : vector<1x1x16x128xf32> to vector<16x128xf32>
    %194 = arith.mulf %191, %193 : vector<16x128xf32>
    %c0_103 = arith.constant 0 : index
    %c1_104 = arith.constant 1 : index
    %c0_105 = arith.constant 0 : index
    %c0_106 = arith.constant 0 : index
    %195 = vector.load %arg8[%c0_103, %c1_104, %c0_105, %c0_106] : memref<1x8x16x128xf32, #tpu.memory_space<vmem>>, vector<1x1x16x128xf32>
    %196 = vector.shape_cast %195 : vector<1x1x16x128xf32> to vector<16x128xf32>
    %197 = vector.shape_cast %194 : vector<16x128xf32> to vector<1x1x16x128xf32>
    tpu.vector_store %arg8[%c0_103, %c1_104, %c0_105, %c0_106], %197 {strides = array<i32>} : memref<1x8x16x128xf32, #tpu.memory_space<vmem>>, vector<1x1x16x128xf32>,
    %c0_107 = arith.constant 0 : index
    %c2_108 = arith.constant 2 : index
    %c0_109 = arith.constant 0 : index
    %c0_110 = arith.constant 0 : index
    %198 = vector.load %arg2[%c0_107, %c2_108, %c0_109, %c0_110] : memref<1x8x16x128xf32, #tpu.memory_space<vmem>>, vector<1x1x16x128xf32>
    %199 = vector.shape_cast %198 : vector<1x1x16x128xf32> to vector<16x128xf32>
    %c0_111 = arith.constant 0 : index
    %c2_112 = arith.constant 2 : index
    %c0_113 = arith.constant 0 : index
    %c0_114 = arith.constant 0 : index
    %200 = vector.load %arg3[%c0_111, %c2_112, %c0_113, %c0_114] : memref<1x8x16x128xf32, #tpu.memory_space<vmem>>, vector<1x1x16x128xf32>
    %201 = vector.shape_cast %200 : vector<1x1x16x128xf32> to vector<16x128xf32>
    %c0_115 = arith.constant 0 : index
    %c2_116 = arith.constant 2 : index
    %c0_117 = arith.constant 0 : index
    %c0_118 = arith.constant 0 : index
    %202 = vector.load %arg4[%c0_115, %c2_116, %c0_117, %c0_118] : memref<1x8x16x128xf32, #tpu.memory_space<vmem>>, vector<1x1x16x128xf32>
    %203 = vector.shape_cast %202 : vector<1x1x16x128xf32> to vector<16x128xf32>
    %c0_119 = arith.constant 0 : index
    %c2_120 = arith.constant 2 : index
    %c0_121 = arith.constant 0 : index
    %c0_122 = arith.constant 0 : index
    %204 = vector.load %arg6[%c0_119, %c2_120, %c0_121, %c0_122] : memref<1x8x1x16xf32, #tpu.memory_space<vmem>>, vector<1x1x1x16xf32>
    %205 = vector.shape_cast %204 : vector<1x1x1x16xf32> to vector<1x16xf32>
    %206 = vector.extract_strided_slice %199 {offsets = [0, 0], sizes = [16, 32], strides = [1, 1]} : vector<16x128xf32> to vector<16x32xf32>
    %207 = vector.extract_strided_slice %201 {offsets = [0, 0], sizes = [16, 32], strides = [1, 1]} : vector<16x128xf32> to vector<16x32xf32>
    %208 = vector.extract_strided_slice %203 {offsets = [0, 0], sizes = [16, 32], strides = [1, 1]} : vector<16x128xf32> to vector<16x32xf32>
    %c0_123 = arith.constant 0 : index
    %c0_124 = arith.constant 0 : index
    %c0_125 = arith.constant 0 : index
    %c0_126 = arith.constant 0 : index
    %209 = vector.load %arg7[%c0_123, %c0_124, %c0_125, %c0_126] : memref<1x4x16x16xf32, #tpu.memory_space<vmem>>, vector<1x1x16x16xf32>
    %210 = vector.shape_cast %209 : vector<1x1x16x16xf32> to vector<16x16xf32>
    %211 = tpu.transpose %207, [1, 0] : vector<16x32xf32> -> vector<32x16xf32>
    %cst_127 = arith.constant dense<0.000000e+00> : vector<16x16xf32>
    %212 = tpu.matmul %206, %211, %cst_127 {dimension_numbers = #tpu.dot_dimension_numbers<[1], [0], [0], [1], [0, 0, 1, 1], [], []>} : vector<16x32xf32>, vector<32x16xf32>, vector<16x16xf32> -> vector<16x16xf32>
    %213 = vector.broadcast %205 : vector<1x16xf32> to vector<16x16xf32>
    %214 = arith.addf %212, %213 : vector<16x16xf32>
    %215 = arith.addf %214, %210 : vector<16x16xf32>
    %cst_128 = arith.constant dense<0xFF800000> : vector<16xf32>
    %216 = vector.multi_reduction <maximumf>, %215, %cst_128 [1] : vector<16x16xf32> to vector<16xf32>
    %217 = vector.shape_cast %216 : vector<16xf32> to vector<16x1xf32>
    %218 = vector.broadcast %217 : vector<16x1xf32> to vector<16x16xf32>
    %219 = arith.subf %215, %218 : vector<16x16xf32>
    %220 = math.exp %219 : vector<16x16xf32>
    %cst_129 = arith.constant dense<0.000000e+00> : vector<16xf32>
    %221 = vector.multi_reduction <add>, %220, %cst_129 [1] : vector<16x16xf32> to vector<16xf32>
    %222 = vector.shape_cast %221 : vector<16xf32> to vector<16x1xf32>
    %223 = tpu.reciprocal %222 {approx = true} : vector<16x1xf32> -> vector<16x1xf32>
    %224 = vector.broadcast %223 : vector<16x1xf32> to vector<16x16xf32>
    %225 = arith.mulf %220, %224 : vector<16x16xf32>
    %cst_130 = arith.constant dense<0.000000e+00> : vector<16x32xf32>
    %226 = tpu.matmul %225, %208, %cst_130 {dimension_numbers = #tpu.dot_dimension_numbers<[1], [0], [0], [1], [0, 0, 1, 1], [], []>} : vector<16x16xf32>, vector<16x32xf32>, vector<16x32xf32> -> vector<16x32xf32>
    %227 = vector.extract_strided_slice %199 {offsets = [0, 32], sizes = [16, 32], strides = [1, 1]} : vector<16x128xf32> to vector<16x32xf32>
    %228 = vector.extract_strided_slice %201 {offsets = [0, 32], sizes = [16, 32], strides = [1, 1]} : vector<16x128xf32> to vector<16x32xf32>
    %229 = vector.extract_strided_slice %203 {offsets = [0, 32], sizes = [16, 32], strides = [1, 1]} : vector<16x128xf32> to vector<16x32xf32>
    %c0_131 = arith.constant 0 : index
    %c1_132 = arith.constant 1 : index
    %c0_133 = arith.constant 0 : index
    %c0_134 = arith.constant 0 : index
    %230 = vector.load %arg7[%c0_131, %c1_132, %c0_133, %c0_134] : memref<1x4x16x16xf32, #tpu.memory_space<vmem>>, vector<1x1x16x16xf32>
    %231 = vector.shape_cast %230 : vector<1x1x16x16xf32> to vector<16x16xf32>
    %232 = tpu.transpose %228, [1, 0] : vector<16x32xf32> -> vector<32x16xf32>
    %cst_135 = arith.constant dense<0.000000e+00> : vector<16x16xf32>
    %233 = tpu.matmul %227, %232, %cst_135 {dimension_numbers = #tpu.dot_dimension_numbers<[1], [0], [0], [1], [0, 0, 1, 1], [], []>} : vector<16x32xf32>, vector<32x16xf32>, vector<16x16xf32> -> vector<16x16xf32>
    %234 = vector.broadcast %205 : vector<1x16xf32> to vector<16x16xf32>
    %235 = arith.addf %233, %234 : vector<16x16xf32>
    %236 = arith.addf %235, %231 : vector<16x16xf32>
    %cst_136 = arith.constant dense<0xFF800000> : vector<16xf32>
    %237 = vector.multi_reduction <maximumf>, %236, %cst_136 [1] : vector<16x16xf32> to vector<16xf32>
    %238 = vector.shape_cast %237 : vector<16xf32> to vector<16x1xf32>
    %239 = vector.broadcast %238 : vector<16x1xf32> to vector<16x16xf32>
    %240 = arith.subf %236, %239 : vector<16x16xf32>
    %241 = math.exp %240 : vector<16x16xf32>
    %cst_137 = arith.constant dense<0.000000e+00> : vector<16xf32>
    %242 = vector.multi_reduction <add>, %241, %cst_137 [1] : vector<16x16xf32> to vector<16xf32>
    %243 = vector.shape_cast %242 : vector<16xf32> to vector<16x1xf32>
    %244 = tpu.reciprocal %243 {approx = true} : vector<16x1xf32> -> vector<16x1xf32>
    %245 = vector.broadcast %244 : vector<16x1xf32> to vector<16x16xf32>
    %246 = arith.mulf %241, %245 : vector<16x16xf32>
    %cst_138 = arith.constant dense<0.000000e+00> : vector<16x32xf32>
    %247 = tpu.matmul %246, %229, %cst_138 {dimension_numbers = #tpu.dot_dimension_numbers<[1], [0], [0], [1], [0, 0, 1, 1], [], []>} : vector<16x16xf32>, vector<16x32xf32>, vector<16x32xf32> -> vector<16x32xf32>
    %248 = vector.extract_strided_slice %199 {offsets = [0, 64], sizes = [16, 32], strides = [1, 1]} : vector<16x128xf32> to vector<16x32xf32>
    %249 = vector.extract_strided_slice %201 {offsets = [0, 64], sizes = [16, 32], strides = [1, 1]} : vector<16x128xf32> to vector<16x32xf32>
    %250 = vector.extract_strided_slice %203 {offsets = [0, 64], sizes = [16, 32], strides = [1, 1]} : vector<16x128xf32> to vector<16x32xf32>
    %c0_139 = arith.constant 0 : index
    %c2_140 = arith.constant 2 : index
    %c0_141 = arith.constant 0 : index
    %c0_142 = arith.constant 0 : index
    %251 = vector.load %arg7[%c0_139, %c2_140, %c0_141, %c0_142] : memref<1x4x16x16xf32, #tpu.memory_space<vmem>>, vector<1x1x16x16xf32>
    %252 = vector.shape_cast %251 : vector<1x1x16x16xf32> to vector<16x16xf32>
    %253 = tpu.transpose %249, [1, 0] : vector<16x32xf32> -> vector<32x16xf32>
    %cst_143 = arith.constant dense<0.000000e+00> : vector<16x16xf32>
    %254 = tpu.matmul %248, %253, %cst_143 {dimension_numbers = #tpu.dot_dimension_numbers<[1], [0], [0], [1], [0, 0, 1, 1], [], []>} : vector<16x32xf32>, vector<32x16xf32>, vector<16x16xf32> -> vector<16x16xf32>
    %255 = vector.broadcast %205 : vector<1x16xf32> to vector<16x16xf32>
    %256 = arith.addf %254, %255 : vector<16x16xf32>
    %257 = arith.addf %256, %252 : vector<16x16xf32>
    %cst_144 = arith.constant dense<0xFF800000> : vector<16xf32>
    %258 = vector.multi_reduction <maximumf>, %257, %cst_144 [1] : vector<16x16xf32> to vector<16xf32>
    %259 = vector.shape_cast %258 : vector<16xf32> to vector<16x1xf32>
    %260 = vector.broadcast %259 : vector<16x1xf32> to vector<16x16xf32>
    %261 = arith.subf %257, %260 : vector<16x16xf32>
    %262 = math.exp %261 : vector<16x16xf32>
    %cst_145 = arith.constant dense<0.000000e+00> : vector<16xf32>
    %263 = vector.multi_reduction <add>, %262, %cst_145 [1] : vector<16x16xf32> to vector<16xf32>
    %264 = vector.shape_cast %263 : vector<16xf32> to vector<16x1xf32>
    %265 = tpu.reciprocal %264 {approx = true} : vector<16x1xf32> -> vector<16x1xf32>
    %266 = vector.broadcast %265 : vector<16x1xf32> to vector<16x16xf32>
    %267 = arith.mulf %262, %266 : vector<16x16xf32>
    %cst_146 = arith.constant dense<0.000000e+00> : vector<16x32xf32>
    %268 = tpu.matmul %267, %250, %cst_146 {dimension_numbers = #tpu.dot_dimension_numbers<[1], [0], [0], [1], [0, 0, 1, 1], [], []>} : vector<16x16xf32>, vector<16x32xf32>, vector<16x32xf32> -> vector<16x32xf32>
    %269 = vector.extract_strided_slice %199 {offsets = [0, 96], sizes = [16, 32], strides = [1, 1]} : vector<16x128xf32> to vector<16x32xf32>
    %270 = vector.extract_strided_slice %201 {offsets = [0, 96], sizes = [16, 32], strides = [1, 1]} : vector<16x128xf32> to vector<16x32xf32>
    %271 = vector.extract_strided_slice %203 {offsets = [0, 96], sizes = [16, 32], strides = [1, 1]} : vector<16x128xf32> to vector<16x32xf32>
    %c0_147 = arith.constant 0 : index
    %c3_148 = arith.constant 3 : index
    %c0_149 = arith.constant 0 : index
    %c0_150 = arith.constant 0 : index
    %272 = vector.load %arg7[%c0_147, %c3_148, %c0_149, %c0_150] : memref<1x4x16x16xf32, #tpu.memory_space<vmem>>, vector<1x1x16x16xf32>
    %273 = vector.shape_cast %272 : vector<1x1x16x16xf32> to vector<16x16xf32>
    %274 = tpu.transpose %270, [1, 0] : vector<16x32xf32> -> vector<32x16xf32>
    %cst_151 = arith.constant dense<0.000000e+00> : vector<16x16xf32>
    %275 = tpu.matmul %269, %274, %cst_151 {dimension_numbers = #tpu.dot_dimension_numbers<[1], [0], [0], [1], [0, 0, 1, 1], [], []>} : vector<16x32xf32>, vector<32x16xf32>, vector<16x16xf32> -> vector<16x16xf32>
    %276 = vector.broadcast %205 : vector<1x16xf32> to vector<16x16xf32>
    %277 = arith.addf %275, %276 : vector<16x16xf32>
    %278 = arith.addf %277, %273 : vector<16x16xf32>
    %cst_152 = arith.constant dense<0xFF800000> : vector<16xf32>
    %279 = vector.multi_reduction <maximumf>, %278, %cst_152 [1] : vector<16x16xf32> to vector<16xf32>
    %280 = vector.shape_cast %279 : vector<16xf32> to vector<16x1xf32>
    %281 = vector.broadcast %280 : vector<16x1xf32> to vector<16x16xf32>
    %282 = arith.subf %278, %281 : vector<16x16xf32>
    %283 = math.exp %282 : vector<16x16xf32>
    %cst_153 = arith.constant dense<0.000000e+00> : vector<16xf32>
    %284 = vector.multi_reduction <add>, %283, %cst_153 [1] : vector<16x16xf32> to vector<16xf32>
    %285 = vector.shape_cast %284 : vector<16xf32> to vector<16x1xf32>
    %286 = tpu.reciprocal %285 {approx = true} : vector<16x1xf32> -> vector<16x1xf32>
    %287 = vector.broadcast %286 : vector<16x1xf32> to vector<16x16xf32>
    %288 = arith.mulf %283, %287 : vector<16x16xf32>
    %cst_154 = arith.constant dense<0.000000e+00> : vector<16x32xf32>
    %289 = tpu.matmul %288, %271, %cst_154 {dimension_numbers = #tpu.dot_dimension_numbers<[1], [0], [0], [1], [0, 0, 1, 1], [], []>} : vector<16x16xf32>, vector<16x32xf32>, vector<16x32xf32> -> vector<16x32xf32>
    %290 = tpu.concatenate %226, %247, %268, %289 in 1 : vector<16x32xf32>, vector<16x32xf32>, vector<16x32xf32>, vector<16x32xf32> -> vector<16x128xf32>
    %c0_155 = arith.constant 0 : index
    %c2_156 = arith.constant 2 : index
    %c0_157 = arith.constant 0 : index
    %c0_158 = arith.constant 0 : index
    %291 = vector.load %arg5[%c0_155, %c2_156, %c0_157, %c0_158] : memref<1x8x16x128xf32, #tpu.memory_space<vmem>>, vector<1x1x16x128xf32>
    %292 = vector.shape_cast %291 : vector<1x1x16x128xf32> to vector<16x128xf32>
    %293 = arith.mulf %290, %292 : vector<16x128xf32>
    %c0_159 = arith.constant 0 : index
    %c2_160 = arith.constant 2 : index
    %c0_161 = arith.constant 0 : index
    %c0_162 = arith.constant 0 : index
    %294 = vector.load %arg8[%c0_159, %c2_160, %c0_161, %c0_162] : memref<1x8x16x128xf32, #tpu.memory_space<vmem>>, vector<1x1x16x128xf32>
    %295 = vector.shape_cast %294 : vector<1x1x16x128xf32> to vector<16x128xf32>
    %296 = vector.shape_cast %293 : vector<16x128xf32> to vector<1x1x16x128xf32>
    tpu.vector_store %arg8[%c0_159, %c2_160, %c0_161, %c0_162], %296 {strides = array<i32>} : memref<1x8x16x128xf32, #tpu.memory_space<vmem>>, vector<1x1x16x128xf32>,
    %c0_163 = arith.constant 0 : index
    %c3_164 = arith.constant 3 : index
    %c0_165 = arith.constant 0 : index
    %c0_166 = arith.constant 0 : index
    %297 = vector.load %arg2[%c0_163, %c3_164, %c0_165, %c0_166] : memref<1x8x16x128xf32, #tpu.memory_space<vmem>>, vector<1x1x16x128xf32>
    %298 = vector.shape_cast %297 : vector<1x1x16x128xf32> to vector<16x128xf32>
    %c0_167 = arith.constant 0 : index
    %c3_168 = arith.constant 3 : index
    %c0_169 = arith.constant 0 : index
    %c0_170 = arith.constant 0 : index
    %299 = vector.load %arg3[%c0_167, %c3_168, %c0_169, %c0_170] : memref<1x8x16x128xf32, #tpu.memory_space<vmem>>, vector<1x1x16x128xf32>
    %300 = vector.shape_cast %299 : vector<1x1x16x128xf32> to vector<16x128xf32>
    %c0_171 = arith.constant 0 : index
    %c3_172 = arith.constant 3 : index
    %c0_173 = arith.constant 0 : index
    %c0_174 = arith.constant 0 : index
    %301 = vector.load %arg4[%c0_171, %c3_172, %c0_173, %c0_174] : memref<1x8x16x128xf32, #tpu.memory_space<vmem>>, vector<1x1x16x128xf32>
    %302 = vector.shape_cast %301 : vector<1x1x16x128xf32> to vector<16x128xf32>
    %c0_175 = arith.constant 0 : index
    %c3_176 = arith.constant 3 : index
    %c0_177 = arith.constant 0 : index
    %c0_178 = arith.constant 0 : index
    %303 = vector.load %arg6[%c0_175, %c3_176, %c0_177, %c0_178] : memref<1x8x1x16xf32, #tpu.memory_space<vmem>>, vector<1x1x1x16xf32>
    %304 = vector.shape_cast %303 : vector<1x1x1x16xf32> to vector<1x16xf32>
    %305 = vector.extract_strided_slice %298 {offsets = [0, 0], sizes = [16, 32], strides = [1, 1]} : vector<16x128xf32> to vector<16x32xf32>
    %306 = vector.extract_strided_slice %300 {offsets = [0, 0], sizes = [16, 32], strides = [1, 1]} : vector<16x128xf32> to vector<16x32xf32>
    %307 = vector.extract_strided_slice %302 {offsets = [0, 0], sizes = [16, 32], strides = [1, 1]} : vector<16x128xf32> to vector<16x32xf32>
    %c0_179 = arith.constant 0 : index
    %c0_180 = arith.constant 0 : index
    %c0_181 = arith.constant 0 : index
    %c0_182 = arith.constant 0 : index
    %308 = vector.load %arg7[%c0_179, %c0_180, %c0_181, %c0_182] : memref<1x4x16x16xf32, #tpu.memory_space<vmem>>, vector<1x1x16x16xf32>
    %309 = vector.shape_cast %308 : vector<1x1x16x16xf32> to vector<16x16xf32>
    %310 = tpu.transpose %306, [1, 0] : vector<16x32xf32> -> vector<32x16xf32>
    %cst_183 = arith.constant dense<0.000000e+00> : vector<16x16xf32>
    %311 = tpu.matmul %305, %310, %cst_183 {dimension_numbers = #tpu.dot_dimension_numbers<[1], [0], [0], [1], [0, 0, 1, 1], [], []>} : vector<16x32xf32>, vector<32x16xf32>, vector<16x16xf32> -> vector<16x16xf32>
    %312 = vector.broadcast %304 : vector<1x16xf32> to vector<16x16xf32>
    %313 = arith.addf %311, %312 : vector<16x16xf32>
    %314 = arith.addf %313, %309 : vector<16x16xf32>
    %cst_184 = arith.constant dense<0xFF800000> : vector<16xf32>
    %315 = vector.multi_reduction <maximumf>, %314, %cst_184 [1] : vector<16x16xf32> to vector<16xf32>
    %316 = vector.shape_cast %315 : vector<16xf32> to vector<16x1xf32>
    %317 = vector.broadcast %316 : vector<16x1xf32> to vector<16x16xf32>
    %318 = arith.subf %314, %317 : vector<16x16xf32>
    %319 = math.exp %318 : vector<16x16xf32>
    %cst_185 = arith.constant dense<0.000000e+00> : vector<16xf32>
    %320 = vector.multi_reduction <add>, %319, %cst_185 [1] : vector<16x16xf32> to vector<16xf32>
    %321 = vector.shape_cast %320 : vector<16xf32> to vector<16x1xf32>
    %322 = tpu.reciprocal %321 {approx = true} : vector<16x1xf32> -> vector<16x1xf32>
    %323 = vector.broadcast %322 : vector<16x1xf32> to vector<16x16xf32>
    %324 = arith.mulf %319, %323 : vector<16x16xf32>
    %cst_186 = arith.constant dense<0.000000e+00> : vector<16x32xf32>
    %325 = tpu.matmul %324, %307, %cst_186 {dimension_numbers = #tpu.dot_dimension_numbers<[1], [0], [0], [1], [0, 0, 1, 1], [], []>} : vector<16x16xf32>, vector<16x32xf32>, vector<16x32xf32> -> vector<16x32xf32>
    %326 = vector.extract_strided_slice %298 {offsets = [0, 32], sizes = [16, 32], strides = [1, 1]} : vector<16x128xf32> to vector<16x32xf32>
    %327 = vector.extract_strided_slice %300 {offsets = [0, 32], sizes = [16, 32], strides = [1, 1]} : vector<16x128xf32> to vector<16x32xf32>
    %328 = vector.extract_strided_slice %302 {offsets = [0, 32], sizes = [16, 32], strides = [1, 1]} : vector<16x128xf32> to vector<16x32xf32>
    %c0_187 = arith.constant 0 : index
    %c1_188 = arith.constant 1 : index
    %c0_189 = arith.constant 0 : index
    %c0_190 = arith.constant 0 : index
    %329 = vector.load %arg7[%c0_187, %c1_188, %c0_189, %c0_190] : memref<1x4x16x16xf32, #tpu.memory_space<vmem>>, vector<1x1x16x16xf32>
    %330 = vector.shape_cast %329 : vector<1x1x16x16xf32> to vector<16x16xf32>
    %331 = tpu.transpose %327, [1, 0] : vector<16x32xf32> -> vector<32x16xf32>
    %cst_191 = arith.constant dense<0.000000e+00> : vector<16x16xf32>
    %332 = tpu.matmul %326, %331, %cst_191 {dimension_numbers = #tpu.dot_dimension_numbers<[1], [0], [0], [1], [0, 0, 1, 1], [], []>} : vector<16x32xf32>, vector<32x16xf32>, vector<16x16xf32> -> vector<16x16xf32>
    %333 = vector.broadcast %304 : vector<1x16xf32> to vector<16x16xf32>
    %334 = arith.addf %332, %333 : vector<16x16xf32>
    %335 = arith.addf %334, %330 : vector<16x16xf32>
    %cst_192 = arith.constant dense<0xFF800000> : vector<16xf32>
    %336 = vector.multi_reduction <maximumf>, %335, %cst_192 [1] : vector<16x16xf32> to vector<16xf32>
    %337 = vector.shape_cast %336 : vector<16xf32> to vector<16x1xf32>
    %338 = vector.broadcast %337 : vector<16x1xf32> to vector<16x16xf32>
    %339 = arith.subf %335, %338 : vector<16x16xf32>
    %340 = math.exp %339 : vector<16x16xf32>
    %cst_193 = arith.constant dense<0.000000e+00> : vector<16xf32>
    %341 = vector.multi_reduction <add>, %340, %cst_193 [1] : vector<16x16xf32> to vector<16xf32>
    %342 = vector.shape_cast %341 : vector<16xf32> to vector<16x1xf32>
    %343 = tpu.reciprocal %342 {approx = true} : vector<16x1xf32> -> vector<16x1xf32>
    %344 = vector.broadcast %343 : vector<16x1xf32> to vector<16x16xf32>
    %345 = arith.mulf %340, %344 : vector<16x16xf32>
    %cst_194 = arith.constant dense<0.000000e+00> : vector<16x32xf32>
    %346 = tpu.matmul %345, %328, %cst_194 {dimension_numbers = #tpu.dot_dimension_numbers<[1], [0], [0], [1], [0, 0, 1, 1], [], []>} : vector<16x16xf32>, vector<16x32xf32>, vector<16x32xf32> -> vector<16x32xf32>
    %347 = vector.extract_strided_slice %298 {offsets = [0, 64], sizes = [16, 32], strides = [1, 1]} : vector<16x128xf32> to vector<16x32xf32>
    %348 = vector.extract_strided_slice %300 {offsets = [0, 64], sizes = [16, 32], strides = [1, 1]} : vector<16x128xf32> to vector<16x32xf32>
    %349 = vector.extract_strided_slice %302 {offsets = [0, 64], sizes = [16, 32], strides = [1, 1]} : vector<16x128xf32> to vector<16x32xf32>
    %c0_195 = arith.constant 0 : index
    %c2_196 = arith.constant 2 : index
    %c0_197 = arith.constant 0 : index
    %c0_198 = arith.constant 0 : index
    %350 = vector.load %arg7[%c0_195, %c2_196, %c0_197, %c0_198] : memref<1x4x16x16xf32, #tpu.memory_space<vmem>>, vector<1x1x16x16xf32>
    %351 = vector.shape_cast %350 : vector<1x1x16x16xf32> to vector<16x16xf32>
    %352 = tpu.transpose %348, [1, 0] : vector<16x32xf32> -> vector<32x16xf32>
    %cst_199 = arith.constant dense<0.000000e+00> : vector<16x16xf32>
    %353 = tpu.matmul %347, %352, %cst_199 {dimension_numbers = #tpu.dot_dimension_numbers<[1], [0], [0], [1], [0, 0, 1, 1], [], []>} : vector<16x32xf32>, vector<32x16xf32>, vector<16x16xf32> -> vector<16x16xf32>
    %354 = vector.broadcast %304 : vector<1x16xf32> to vector<16x16xf32>
    %355 = arith.addf %353, %354 : vector<16x16xf32>
    %356 = arith.addf %355, %351 : vector<16x16xf32>
    %cst_200 = arith.constant dense<0xFF800000> : vector<16xf32>
    %357 = vector.multi_reduction <maximumf>, %356, %cst_200 [1] : vector<16x16xf32> to vector<16xf32>
    %358 = vector.shape_cast %357 : vector<16xf32> to vector<16x1xf32>
    %359 = vector.broadcast %358 : vector<16x1xf32> to vector<16x16xf32>
    %360 = arith.subf %356, %359 : vector<16x16xf32>
    %361 = math.exp %360 : vector<16x16xf32>
    %cst_201 = arith.constant dense<0.000000e+00> : vector<16xf32>
    %362 = vector.multi_reduction <add>, %361, %cst_201 [1] : vector<16x16xf32> to vector<16xf32>
    %363 = vector.shape_cast %362 : vector<16xf32> to vector<16x1xf32>
    %364 = tpu.reciprocal %363 {approx = true} : vector<16x1xf32> -> vector<16x1xf32>
    %365 = vector.broadcast %364 : vector<16x1xf32> to vector<16x16xf32>
    %366 = arith.mulf %361, %365 : vector<16x16xf32>
    %cst_202 = arith.constant dense<0.000000e+00> : vector<16x32xf32>
    %367 = tpu.matmul %366, %349, %cst_202 {dimension_numbers = #tpu.dot_dimension_numbers<[1], [0], [0], [1], [0, 0, 1, 1], [], []>} : vector<16x16xf32>, vector<16x32xf32>, vector<16x32xf32> -> vector<16x32xf32>
    %368 = vector.extract_strided_slice %298 {offsets = [0, 96], sizes = [16, 32], strides = [1, 1]} : vector<16x128xf32> to vector<16x32xf32>
    %369 = vector.extract_strided_slice %300 {offsets = [0, 96], sizes = [16, 32], strides = [1, 1]} : vector<16x128xf32> to vector<16x32xf32>
    %370 = vector.extract_strided_slice %302 {offsets = [0, 96], sizes = [16, 32], strides = [1, 1]} : vector<16x128xf32> to vector<16x32xf32>
    %c0_203 = arith.constant 0 : index
    %c3_204 = arith.constant 3 : index
    %c0_205 = arith.constant 0 : index
    %c0_206 = arith.constant 0 : index
    %371 = vector.load %arg7[%c0_203, %c3_204, %c0_205, %c0_206] : memref<1x4x16x16xf32, #tpu.memory_space<vmem>>, vector<1x1x16x16xf32>
    %372 = vector.shape_cast %371 : vector<1x1x16x16xf32> to vector<16x16xf32>
    %373 = tpu.transpose %369, [1, 0] : vector<16x32xf32> -> vector<32x16xf32>
    %cst_207 = arith.constant dense<0.000000e+00> : vector<16x16xf32>
    %374 = tpu.matmul %368, %373, %cst_207 {dimension_numbers = #tpu.dot_dimension_numbers<[1], [0], [0], [1], [0, 0, 1, 1], [], []>} : vector<16x32xf32>, vector<32x16xf32>, vector<16x16xf32> -> vector<16x16xf32>
    %375 = vector.broadcast %304 : vector<1x16xf32> to vector<16x16xf32>
    %376 = arith.addf %374, %375 : vector<16x16xf32>
    %377 = arith.addf %376, %372 : vector<16x16xf32>
    %cst_208 = arith.constant dense<0xFF800000> : vector<16xf32>
    %378 = vector.multi_reduction <maximumf>, %377, %cst_208 [1] : vector<16x16xf32> to vector<16xf32>
    %379 = vector.shape_cast %378 : vector<16xf32> to vector<16x1xf32>
    %380 = vector.broadcast %379 : vector<16x1xf32> to vector<16x16xf32>
    %381 = arith.subf %377, %380 : vector<16x16xf32>
    %382 = math.exp %381 : vector<16x16xf32>
    %cst_209 = arith.constant dense<0.000000e+00> : vector<16xf32>
    %383 = vector.multi_reduction <add>, %382, %cst_209 [1] : vector<16x16xf32> to vector<16xf32>
    %384 = vector.shape_cast %383 : vector<16xf32> to vector<16x1xf32>
    %385 = tpu.reciprocal %384 {approx = true} : vector<16x1xf32> -> vector<16x1xf32>
    %386 = vector.broadcast %385 : vector<16x1xf32> to vector<16x16xf32>
    %387 = arith.mulf %382, %386 : vector<16x16xf32>
    %cst_210 = arith.constant dense<0.000000e+00> : vector<16x32xf32>
    %388 = tpu.matmul %387, %370, %cst_210 {dimension_numbers = #tpu.dot_dimension_numbers<[1], [0], [0], [1], [0, 0, 1, 1], [], []>} : vector<16x16xf32>, vector<16x32xf32>, vector<16x32xf32> -> vector<16x32xf32>
    %389 = tpu.concatenate %325, %346, %367, %388 in 1 : vector<16x32xf32>, vector<16x32xf32>, vector<16x32xf32>, vector<16x32xf32> -> vector<16x128xf32>
    %c0_211 = arith.constant 0 : index
    %c3_212 = arith.constant 3 : index
    %c0_213 = arith.constant 0 : index
    %c0_214 = arith.constant 0 : index
    %390 = vector.load %arg5[%c0_211, %c3_212, %c0_213, %c0_214] : memref<1x8x16x128xf32, #tpu.memory_space<vmem>>, vector<1x1x16x128xf32>
    %391 = vector.shape_cast %390 : vector<1x1x16x128xf32> to vector<16x128xf32>
    %392 = arith.mulf %389, %391 : vector<16x128xf32>
    %c0_215 = arith.constant 0 : index
    %c3_216 = arith.constant 3 : index
    %c0_217 = arith.constant 0 : index
    %c0_218 = arith.constant 0 : index
    %393 = vector.load %arg8[%c0_215, %c3_216, %c0_217, %c0_218] : memref<1x8x16x128xf32, #tpu.memory_space<vmem>>, vector<1x1x16x128xf32>
    %394 = vector.shape_cast %393 : vector<1x1x16x128xf32> to vector<16x128xf32>
    %395 = vector.shape_cast %392 : vector<16x128xf32> to vector<1x1x16x128xf32>
    tpu.vector_store %arg8[%c0_215, %c3_216, %c0_217, %c0_218], %395 {strides = array<i32>} : memref<1x8x16x128xf32, #tpu.memory_space<vmem>>, vector<1x1x16x128xf32>,
    %c0_219 = arith.constant 0 : index
    %c4 = arith.constant 4 : index
    %c0_220 = arith.constant 0 : index
    %c0_221 = arith.constant 0 : index
    %396 = vector.load %arg2[%c0_219, %c4, %c0_220, %c0_221] : memref<1x8x16x128xf32, #tpu.memory_space<vmem>>, vector<1x1x16x128xf32>
    %397 = vector.shape_cast %396 : vector<1x1x16x128xf32> to vector<16x128xf32>
    %c0_222 = arith.constant 0 : index
    %c4_223 = arith.constant 4 : index
    %c0_224 = arith.constant 0 : index
    %c0_225 = arith.constant 0 : index
    %398 = vector.load %arg3[%c0_222, %c4_223, %c0_224, %c0_225] : memref<1x8x16x128xf32, #tpu.memory_space<vmem>>, vector<1x1x16x128xf32>
    %399 = vector.shape_cast %398 : vector<1x1x16x128xf32> to vector<16x128xf32>
    %c0_226 = arith.constant 0 : index
    %c4_227 = arith.constant 4 : index
    %c0_228 = arith.constant 0 : index
    %c0_229 = arith.constant 0 : index
    %400 = vector.load %arg4[%c0_226, %c4_227, %c0_228, %c0_229] : memref<1x8x16x128xf32, #tpu.memory_space<vmem>>, vector<1x1x16x128xf32>
    %401 = vector.shape_cast %400 : vector<1x1x16x128xf32> to vector<16x128xf32>
    %c0_230 = arith.constant 0 : index
    %c4_231 = arith.constant 4 : index
    %c0_232 = arith.constant 0 : index
    %c0_233 = arith.constant 0 : index
    %402 = vector.load %arg6[%c0_230, %c4_231, %c0_232, %c0_233] : memref<1x8x1x16xf32, #tpu.memory_space<vmem>>, vector<1x1x1x16xf32>
    %403 = vector.shape_cast %402 : vector<1x1x1x16xf32> to vector<1x16xf32>
    %404 = vector.extract_strided_slice %397 {offsets = [0, 0], sizes = [16, 32], strides = [1, 1]} : vector<16x128xf32> to vector<16x32xf32>
    %405 = vector.extract_strided_slice %399 {offsets = [0, 0], sizes = [16, 32], strides = [1, 1]} : vector<16x128xf32> to vector<16x32xf32>
    %406 = vector.extract_strided_slice %401 {offsets = [0, 0], sizes = [16, 32], strides = [1, 1]} : vector<16x128xf32> to vector<16x32xf32>
    %c0_234 = arith.constant 0 : index
    %c0_235 = arith.constant 0 : index
    %c0_236 = arith.constant 0 : index
    %c0_237 = arith.constant 0 : index
    %407 = vector.load %arg7[%c0_234, %c0_235, %c0_236, %c0_237] : memref<1x4x16x16xf32, #tpu.memory_space<vmem>>, vector<1x1x16x16xf32>
    %408 = vector.shape_cast %407 : vector<1x1x16x16xf32> to vector<16x16xf32>
    %409 = tpu.transpose %405, [1, 0] : vector<16x32xf32> -> vector<32x16xf32>
    %cst_238 = arith.constant dense<0.000000e+00> : vector<16x16xf32>
    %410 = tpu.matmul %404, %409, %cst_238 {dimension_numbers = #tpu.dot_dimension_numbers<[1], [0], [0], [1], [0, 0, 1, 1], [], []>} : vector<16x32xf32>, vector<32x16xf32>, vector<16x16xf32> -> vector<16x16xf32>
    %411 = vector.broadcast %403 : vector<1x16xf32> to vector<16x16xf32>
    %412 = arith.addf %410, %411 : vector<16x16xf32>
    %413 = arith.addf %412, %408 : vector<16x16xf32>
    %cst_239 = arith.constant dense<0xFF800000> : vector<16xf32>
    %414 = vector.multi_reduction <maximumf>, %413, %cst_239 [1] : vector<16x16xf32> to vector<16xf32>
    %415 = vector.shape_cast %414 : vector<16xf32> to vector<16x1xf32>
    %416 = vector.broadcast %415 : vector<16x1xf32> to vector<16x16xf32>
    %417 = arith.subf %413, %416 : vector<16x16xf32>
    %418 = math.exp %417 : vector<16x16xf32>
    %cst_240 = arith.constant dense<0.000000e+00> : vector<16xf32>
    %419 = vector.multi_reduction <add>, %418, %cst_240 [1] : vector<16x16xf32> to vector<16xf32>
    %420 = vector.shape_cast %419 : vector<16xf32> to vector<16x1xf32>
    %421 = tpu.reciprocal %420 {approx = true} : vector<16x1xf32> -> vector<16x1xf32>
    %422 = vector.broadcast %421 : vector<16x1xf32> to vector<16x16xf32>
    %423 = arith.mulf %418, %422 : vector<16x16xf32>
    %cst_241 = arith.constant dense<0.000000e+00> : vector<16x32xf32>
    %424 = tpu.matmul %423, %406, %cst_241 {dimension_numbers = #tpu.dot_dimension_numbers<[1], [0], [0], [1], [0, 0, 1, 1], [], []>} : vector<16x16xf32>, vector<16x32xf32>, vector<16x32xf32> -> vector<16x32xf32>
    %425 = vector.extract_strided_slice %397 {offsets = [0, 32], sizes = [16, 32], strides = [1, 1]} : vector<16x128xf32> to vector<16x32xf32>
    %426 = vector.extract_strided_slice %399 {offsets = [0, 32], sizes = [16, 32], strides = [1, 1]} : vector<16x128xf32> to vector<16x32xf32>
    %427 = vector.extract_strided_slice %401 {offsets = [0, 32], sizes = [16, 32], strides = [1, 1]} : vector<16x128xf32> to vector<16x32xf32>
    %c0_242 = arith.constant 0 : index
    %c1_243 = arith.constant 1 : index
    %c0_244 = arith.constant 0 : index
    %c0_245 = arith.constant 0 : index
    %428 = vector.load %arg7[%c0_242, %c1_243, %c0_244, %c0_245] : memref<1x4x16x16xf32, #tpu.memory_space<vmem>>, vector<1x1x16x16xf32>
    %429 = vector.shape_cast %428 : vector<1x1x16x16xf32> to vector<16x16xf32>
    %430 = tpu.transpose %426, [1, 0] : vector<16x32xf32> -> vector<32x16xf32>
    %cst_246 = arith.constant dense<0.000000e+00> : vector<16x16xf32>
    %431 = tpu.matmul %425, %430, %cst_246 {dimension_numbers = #tpu.dot_dimension_numbers<[1], [0], [0], [1], [0, 0, 1, 1], [], []>} : vector<16x32xf32>, vector<32x16xf32>, vector<16x16xf32> -> vector<16x16xf32>
    %432 = vector.broadcast %403 : vector<1x16xf32> to vector<16x16xf32>
    %433 = arith.addf %431, %432 : vector<16x16xf32>
    %434 = arith.addf %433, %429 : vector<16x16xf32>
    %cst_247 = arith.constant dense<0xFF800000> : vector<16xf32>
    %435 = vector.multi_reduction <maximumf>, %434, %cst_247 [1] : vector<16x16xf32> to vector<16xf32>
    %436 = vector.shape_cast %435 : vector<16xf32> to vector<16x1xf32>
    %437 = vector.broadcast %436 : vector<16x1xf32> to vector<16x16xf32>
    %438 = arith.subf %434, %437 : vector<16x16xf32>
    %439 = math.exp %438 : vector<16x16xf32>
    %cst_248 = arith.constant dense<0.000000e+00> : vector<16xf32>
    %440 = vector.multi_reduction <add>, %439, %cst_248 [1] : vector<16x16xf32> to vector<16xf32>
    %441 = vector.shape_cast %440 : vector<16xf32> to vector<16x1xf32>
    %442 = tpu.reciprocal %441 {approx = true} : vector<16x1xf32> -> vector<16x1xf32>
    %443 = vector.broadcast %442 : vector<16x1xf32> to vector<16x16xf32>
    %444 = arith.mulf %439, %443 : vector<16x16xf32>
    %cst_249 = arith.constant dense<0.000000e+00> : vector<16x32xf32>
    %445 = tpu.matmul %444, %427, %cst_249 {dimension_numbers = #tpu.dot_dimension_numbers<[1], [0], [0], [1], [0, 0, 1, 1], [], []>} : vector<16x16xf32>, vector<16x32xf32>, vector<16x32xf32> -> vector<16x32xf32>
    %446 = vector.extract_strided_slice %397 {offsets = [0, 64], sizes = [16, 32], strides = [1, 1]} : vector<16x128xf32> to vector<16x32xf32>
    %447 = vector.extract_strided_slice %399 {offsets = [0, 64], sizes = [16, 32], strides = [1, 1]} : vector<16x128xf32> to vector<16x32xf32>
    %448 = vector.extract_strided_slice %401 {offsets = [0, 64], sizes = [16, 32], strides = [1, 1]} : vector<16x128xf32> to vector<16x32xf32>
    %c0_250 = arith.constant 0 : index
    %c2_251 = arith.constant 2 : index
    %c0_252 = arith.constant 0 : index
    %c0_253 = arith.constant 0 : index
    %449 = vector.load %arg7[%c0_250, %c2_251, %c0_252, %c0_253] : memref<1x4x16x16xf32, #tpu.memory_space<vmem>>, vector<1x1x16x16xf32>
    %450 = vector.shape_cast %449 : vector<1x1x16x16xf32> to vector<16x16xf32>
    %451 = tpu.transpose %447, [1, 0] : vector<16x32xf32> -> vector<32x16xf32>
    %cst_254 = arith.constant dense<0.000000e+00> : vector<16x16xf32>
    %452 = tpu.matmul %446, %451, %cst_254 {dimension_numbers = #tpu.dot_dimension_numbers<[1], [0], [0], [1], [0, 0, 1, 1], [], []>} : vector<16x32xf32>, vector<32x16xf32>, vector<16x16xf32> -> vector<16x16xf32>
    %453 = vector.broadcast %403 : vector<1x16xf32> to vector<16x16xf32>
    %454 = arith.addf %452, %453 : vector<16x16xf32>
    %455 = arith.addf %454, %450 : vector<16x16xf32>
    %cst_255 = arith.constant dense<0xFF800000> : vector<16xf32>
    %456 = vector.multi_reduction <maximumf>, %455, %cst_255 [1] : vector<16x16xf32> to vector<16xf32>
    %457 = vector.shape_cast %456 : vector<16xf32> to vector<16x1xf32>
    %458 = vector.broadcast %457 : vector<16x1xf32> to vector<16x16xf32>
    %459 = arith.subf %455, %458 : vector<16x16xf32>
    %460 = math.exp %459 : vector<16x16xf32>
    %cst_256 = arith.constant dense<0.000000e+00> : vector<16xf32>
    %461 = vector.multi_reduction <add>, %460, %cst_256 [1] : vector<16x16xf32> to vector<16xf32>
    %462 = vector.shape_cast %461 : vector<16xf32> to vector<16x1xf32>
    %463 = tpu.reciprocal %462 {approx = true} : vector<16x1xf32> -> vector<16x1xf32>
    %464 = vector.broadcast %463 : vector<16x1xf32> to vector<16x16xf32>
    %465 = arith.mulf %460, %464 : vector<16x16xf32>
    %cst_257 = arith.constant dense<0.000000e+00> : vector<16x32xf32>
    %466 = tpu.matmul %465, %448, %cst_257 {dimension_numbers = #tpu.dot_dimension_numbers<[1], [0], [0], [1], [0, 0, 1, 1], [], []>} : vector<16x16xf32>, vector<16x32xf32>, vector<16x32xf32> -> vector<16x32xf32>
    %467 = vector.extract_strided_slice %397 {offsets = [0, 96], sizes = [16, 32], strides = [1, 1]} : vector<16x128xf32> to vector<16x32xf32>
    %468 = vector.extract_strided_slice %399 {offsets = [0, 96], sizes = [16, 32], strides = [1, 1]} : vector<16x128xf32> to vector<16x32xf32>
    %469 = vector.extract_strided_slice %401 {offsets = [0, 96], sizes = [16, 32], strides = [1, 1]} : vector<16x128xf32> to vector<16x32xf32>
    %c0_258 = arith.constant 0 : index
    %c3_259 = arith.constant 3 : index
    %c0_260 = arith.constant 0 : index
    %c0_261 = arith.constant 0 : index
    %470 = vector.load %arg7[%c0_258, %c3_259, %c0_260, %c0_261] : memref<1x4x16x16xf32, #tpu.memory_space<vmem>>, vector<1x1x16x16xf32>
    %471 = vector.shape_cast %470 : vector<1x1x16x16xf32> to vector<16x16xf32>
    %472 = tpu.transpose %468, [1, 0] : vector<16x32xf32> -> vector<32x16xf32>
    %cst_262 = arith.constant dense<0.000000e+00> : vector<16x16xf32>
    %473 = tpu.matmul %467, %472, %cst_262 {dimension_numbers = #tpu.dot_dimension_numbers<[1], [0], [0], [1], [0, 0, 1, 1], [], []>} : vector<16x32xf32>, vector<32x16xf32>, vector<16x16xf32> -> vector<16x16xf32>
    %474 = vector.broadcast %403 : vector<1x16xf32> to vector<16x16xf32>
    %475 = arith.addf %473, %474 : vector<16x16xf32>
    %476 = arith.addf %475, %471 : vector<16x16xf32>
    %cst_263 = arith.constant dense<0xFF800000> : vector<16xf32>
    %477 = vector.multi_reduction <maximumf>, %476, %cst_263 [1] : vector<16x16xf32> to vector<16xf32>
    %478 = vector.shape_cast %477 : vector<16xf32> to vector<16x1xf32>
    %479 = vector.broadcast %478 : vector<16x1xf32> to vector<16x16xf32>
    %480 = arith.subf %476, %479 : vector<16x16xf32>
    %481 = math.exp %480 : vector<16x16xf32>
    %cst_264 = arith.constant dense<0.000000e+00> : vector<16xf32>
    %482 = vector.multi_reduction <add>, %481, %cst_264 [1] : vector<16x16xf32> to vector<16xf32>
    %483 = vector.shape_cast %482 : vector<16xf32> to vector<16x1xf32>
    %484 = tpu.reciprocal %483 {approx = true} : vector<16x1xf32> -> vector<16x1xf32>
    %485 = vector.broadcast %484 : vector<16x1xf32> to vector<16x16xf32>
    %486 = arith.mulf %481, %485 : vector<16x16xf32>
    %cst_265 = arith.constant dense<0.000000e+00> : vector<16x32xf32>
    %487 = tpu.matmul %486, %469, %cst_265 {dimension_numbers = #tpu.dot_dimension_numbers<[1], [0], [0], [1], [0, 0, 1, 1], [], []>} : vector<16x16xf32>, vector<16x32xf32>, vector<16x32xf32> -> vector<16x32xf32>
    %488 = tpu.concatenate %424, %445, %466, %487 in 1 : vector<16x32xf32>, vector<16x32xf32>, vector<16x32xf32>, vector<16x32xf32> -> vector<16x128xf32>
    %c0_266 = arith.constant 0 : index
    %c4_267 = arith.constant 4 : index
    %c0_268 = arith.constant 0 : index
    %c0_269 = arith.constant 0 : index
    %489 = vector.load %arg5[%c0_266, %c4_267, %c0_268, %c0_269] : memref<1x8x16x128xf32, #tpu.memory_space<vmem>>, vector<1x1x16x128xf32>
    %490 = vector.shape_cast %489 : vector<1x1x16x128xf32> to vector<16x128xf32>
    %491 = arith.mulf %488, %490 : vector<16x128xf32>
    %c0_270 = arith.constant 0 : index
    %c4_271 = arith.constant 4 : index
    %c0_272 = arith.constant 0 : index
    %c0_273 = arith.constant 0 : index
    %492 = vector.load %arg8[%c0_270, %c4_271, %c0_272, %c0_273] : memref<1x8x16x128xf32, #tpu.memory_space<vmem>>, vector<1x1x16x128xf32>
    %493 = vector.shape_cast %492 : vector<1x1x16x128xf32> to vector<16x128xf32>
    %494 = vector.shape_cast %491 : vector<16x128xf32> to vector<1x1x16x128xf32>
    tpu.vector_store %arg8[%c0_270, %c4_271, %c0_272, %c0_273], %494 {strides = array<i32>} : memref<1x8x16x128xf32, #tpu.memory_space<vmem>>, vector<1x1x16x128xf32>,
    %c0_274 = arith.constant 0 : index
    %c5 = arith.constant 5 : index
    %c0_275 = arith.constant 0 : index
    %c0_276 = arith.constant 0 : index
    %495 = vector.load %arg2[%c0_274, %c5, %c0_275, %c0_276] : memref<1x8x16x128xf32, #tpu.memory_space<vmem>>, vector<1x1x16x128xf32>
    %496 = vector.shape_cast %495 : vector<1x1x16x128xf32> to vector<16x128xf32>
    %c0_277 = arith.constant 0 : index
    %c5_278 = arith.constant 5 : index
    %c0_279 = arith.constant 0 : index
    %c0_280 = arith.constant 0 : index
    %497 = vector.load %arg3[%c0_277, %c5_278, %c0_279, %c0_280] : memref<1x8x16x128xf32, #tpu.memory_space<vmem>>, vector<1x1x16x128xf32>
    %498 = vector.shape_cast %497 : vector<1x1x16x128xf32> to vector<16x128xf32>
    %c0_281 = arith.constant 0 : index
    %c5_282 = arith.constant 5 : index
    %c0_283 = arith.constant 0 : index
    %c0_284 = arith.constant 0 : index
    %499 = vector.load %arg4[%c0_281, %c5_282, %c0_283, %c0_284] : memref<1x8x16x128xf32, #tpu.memory_space<vmem>>, vector<1x1x16x128xf32>
    %500 = vector.shape_cast %499 : vector<1x1x16x128xf32> to vector<16x128xf32>
    %c0_285 = arith.constant 0 : index
    %c5_286 = arith.constant 5 : index
    %c0_287 = arith.constant 0 : index
    %c0_288 = arith.constant 0 : index
    %501 = vector.load %arg6[%c0_285, %c5_286, %c0_287, %c0_288] : memref<1x8x1x16xf32, #tpu.memory_space<vmem>>, vector<1x1x1x16xf32>
    %502 = vector.shape_cast %501 : vector<1x1x1x16xf32> to vector<1x16xf32>
    %503 = vector.extract_strided_slice %496 {offsets = [0, 0], sizes = [16, 32], strides = [1, 1]} : vector<16x128xf32> to vector<16x32xf32>
    %504 = vector.extract_strided_slice %498 {offsets = [0, 0], sizes = [16, 32], strides = [1, 1]} : vector<16x128xf32> to vector<16x32xf32>
    %505 = vector.extract_strided_slice %500 {offsets = [0, 0], sizes = [16, 32], strides = [1, 1]} : vector<16x128xf32> to vector<16x32xf32>
    %c0_289 = arith.constant 0 : index
    %c0_290 = arith.constant 0 : index
    %c0_291 = arith.constant 0 : index
    %c0_292 = arith.constant 0 : index
    %506 = vector.load %arg7[%c0_289, %c0_290, %c0_291, %c0_292] : memref<1x4x16x16xf32, #tpu.memory_space<vmem>>, vector<1x1x16x16xf32>
    %507 = vector.shape_cast %506 : vector<1x1x16x16xf32> to vector<16x16xf32>
    %508 = tpu.transpose %504, [1, 0] : vector<16x32xf32> -> vector<32x16xf32>
    %cst_293 = arith.constant dense<0.000000e+00> : vector<16x16xf32>
    %509 = tpu.matmul %503, %508, %cst_293 {dimension_numbers = #tpu.dot_dimension_numbers<[1], [0], [0], [1], [0, 0, 1, 1], [], []>} : vector<16x32xf32>, vector<32x16xf32>, vector<16x16xf32> -> vector<16x16xf32>
    %510 = vector.broadcast %502 : vector<1x16xf32> to vector<16x16xf32>
    %511 = arith.addf %509, %510 : vector<16x16xf32>
    %512 = arith.addf %511, %507 : vector<16x16xf32>
    %cst_294 = arith.constant dense<0xFF800000> : vector<16xf32>
    %513 = vector.multi_reduction <maximumf>, %512, %cst_294 [1] : vector<16x16xf32> to vector<16xf32>
    %514 = vector.shape_cast %513 : vector<16xf32> to vector<16x1xf32>
    %515 = vector.broadcast %514 : vector<16x1xf32> to vector<16x16xf32>
    %516 = arith.subf %512, %515 : vector<16x16xf32>
    %517 = math.exp %516 : vector<16x16xf32>
    %cst_295 = arith.constant dense<0.000000e+00> : vector<16xf32>
    %518 = vector.multi_reduction <add>, %517, %cst_295 [1] : vector<16x16xf32> to vector<16xf32>
    %519 = vector.shape_cast %518 : vector<16xf32> to vector<16x1xf32>
    %520 = tpu.reciprocal %519 {approx = true} : vector<16x1xf32> -> vector<16x1xf32>
    %521 = vector.broadcast %520 : vector<16x1xf32> to vector<16x16xf32>
    %522 = arith.mulf %517, %521 : vector<16x16xf32>
    %cst_296 = arith.constant dense<0.000000e+00> : vector<16x32xf32>
    %523 = tpu.matmul %522, %505, %cst_296 {dimension_numbers = #tpu.dot_dimension_numbers<[1], [0], [0], [1], [0, 0, 1, 1], [], []>} : vector<16x16xf32>, vector<16x32xf32>, vector<16x32xf32> -> vector<16x32xf32>
    %524 = vector.extract_strided_slice %496 {offsets = [0, 32], sizes = [16, 32], strides = [1, 1]} : vector<16x128xf32> to vector<16x32xf32>
    %525 = vector.extract_strided_slice %498 {offsets = [0, 32], sizes = [16, 32], strides = [1, 1]} : vector<16x128xf32> to vector<16x32xf32>
    %526 = vector.extract_strided_slice %500 {offsets = [0, 32], sizes = [16, 32], strides = [1, 1]} : vector<16x128xf32> to vector<16x32xf32>
    %c0_297 = arith.constant 0 : index
    %c1_298 = arith.constant 1 : index
    %c0_299 = arith.constant 0 : index
    %c0_300 = arith.constant 0 : index
    %527 = vector.load %arg7[%c0_297, %c1_298, %c0_299, %c0_300] : memref<1x4x16x16xf32, #tpu.memory_space<vmem>>, vector<1x1x16x16xf32>
    %528 = vector.shape_cast %527 : vector<1x1x16x16xf32> to vector<16x16xf32>
    %529 = tpu.transpose %525, [1, 0] : vector<16x32xf32> -> vector<32x16xf32>
    %cst_301 = arith.constant dense<0.000000e+00> : vector<16x16xf32>
    %530 = tpu.matmul %524, %529, %cst_301 {dimension_numbers = #tpu.dot_dimension_numbers<[1], [0], [0], [1], [0, 0, 1, 1], [], []>} : vector<16x32xf32>, vector<32x16xf32>, vector<16x16xf32> -> vector<16x16xf32>
    %531 = vector.broadcast %502 : vector<1x16xf32> to vector<16x16xf32>
    %532 = arith.addf %530, %531 : vector<16x16xf32>
    %533 = arith.addf %532, %528 : vector<16x16xf32>
    %cst_302 = arith.constant dense<0xFF800000> : vector<16xf32>
    %534 = vector.multi_reduction <maximumf>, %533, %cst_302 [1] : vector<16x16xf32> to vector<16xf32>
    %535 = vector.shape_cast %534 : vector<16xf32> to vector<16x1xf32>
    %536 = vector.broadcast %535 : vector<16x1xf32> to vector<16x16xf32>
    %537 = arith.subf %533, %536 : vector<16x16xf32>
    %538 = math.exp %537 : vector<16x16xf32>
    %cst_303 = arith.constant dense<0.000000e+00> : vector<16xf32>
    %539 = vector.multi_reduction <add>, %538, %cst_303 [1] : vector<16x16xf32> to vector<16xf32>
    %540 = vector.shape_cast %539 : vector<16xf32> to vector<16x1xf32>
    %541 = tpu.reciprocal %540 {approx = true} : vector<16x1xf32> -> vector<16x1xf32>
    %542 = vector.broadcast %541 : vector<16x1xf32> to vector<16x16xf32>
    %543 = arith.mulf %538, %542 : vector<16x16xf32>
    %cst_304 = arith.constant dense<0.000000e+00> : vector<16x32xf32>
    %544 = tpu.matmul %543, %526, %cst_304 {dimension_numbers = #tpu.dot_dimension_numbers<[1], [0], [0], [1], [0, 0, 1, 1], [], []>} : vector<16x16xf32>, vector<16x32xf32>, vector<16x32xf32> -> vector<16x32xf32>
    %545 = vector.extract_strided_slice %496 {offsets = [0, 64], sizes = [16, 32], strides = [1, 1]} : vector<16x128xf32> to vector<16x32xf32>
    %546 = vector.extract_strided_slice %498 {offsets = [0, 64], sizes = [16, 32], strides = [1, 1]} : vector<16x128xf32> to vector<16x32xf32>
    %547 = vector.extract_strided_slice %500 {offsets = [0, 64], sizes = [16, 32], strides = [1, 1]} : vector<16x128xf32> to vector<16x32xf32>
    %c0_305 = arith.constant 0 : index
    %c2_306 = arith.constant 2 : index
    %c0_307 = arith.constant 0 : index
    %c0_308 = arith.constant 0 : index
    %548 = vector.load %arg7[%c0_305, %c2_306, %c0_307, %c0_308] : memref<1x4x16x16xf32, #tpu.memory_space<vmem>>, vector<1x1x16x16xf32>
    %549 = vector.shape_cast %548 : vector<1x1x16x16xf32> to vector<16x16xf32>
    %550 = tpu.transpose %546, [1, 0] : vector<16x32xf32> -> vector<32x16xf32>
    %cst_309 = arith.constant dense<0.000000e+00> : vector<16x16xf32>
    %551 = tpu.matmul %545, %550, %cst_309 {dimension_numbers = #tpu.dot_dimension_numbers<[1], [0], [0], [1], [0, 0, 1, 1], [], []>} : vector<16x32xf32>, vector<32x16xf32>, vector<16x16xf32> -> vector<16x16xf32>
    %552 = vector.broadcast %502 : vector<1x16xf32> to vector<16x16xf32>
    %553 = arith.addf %551, %552 : vector<16x16xf32>
    %554 = arith.addf %553, %549 : vector<16x16xf32>
    %cst_310 = arith.constant dense<0xFF800000> : vector<16xf32>
    %555 = vector.multi_reduction <maximumf>, %554, %cst_310 [1] : vector<16x16xf32> to vector<16xf32>
    %556 = vector.shape_cast %555 : vector<16xf32> to vector<16x1xf32>
    %557 = vector.broadcast %556 : vector<16x1xf32> to vector<16x16xf32>
    %558 = arith.subf %554, %557 : vector<16x16xf32>
    %559 = math.exp %558 : vector<16x16xf32>
    %cst_311 = arith.constant dense<0.000000e+00> : vector<16xf32>
    %560 = vector.multi_reduction <add>, %559, %cst_311 [1] : vector<16x16xf32> to vector<16xf32>
    %561 = vector.shape_cast %560 : vector<16xf32> to vector<16x1xf32>
    %562 = tpu.reciprocal %561 {approx = true} : vector<16x1xf32> -> vector<16x1xf32>
    %563 = vector.broadcast %562 : vector<16x1xf32> to vector<16x16xf32>
    %564 = arith.mulf %559, %563 : vector<16x16xf32>
    %cst_312 = arith.constant dense<0.000000e+00> : vector<16x32xf32>
    %565 = tpu.matmul %564, %547, %cst_312 {dimension_numbers = #tpu.dot_dimension_numbers<[1], [0], [0], [1], [0, 0, 1, 1], [], []>} : vector<16x16xf32>, vector<16x32xf32>, vector<16x32xf32> -> vector<16x32xf32>
    %566 = vector.extract_strided_slice %496 {offsets = [0, 96], sizes = [16, 32], strides = [1, 1]} : vector<16x128xf32> to vector<16x32xf32>
    %567 = vector.extract_strided_slice %498 {offsets = [0, 96], sizes = [16, 32], strides = [1, 1]} : vector<16x128xf32> to vector<16x32xf32>
    %568 = vector.extract_strided_slice %500 {offsets = [0, 96], sizes = [16, 32], strides = [1, 1]} : vector<16x128xf32> to vector<16x32xf32>
    %c0_313 = arith.constant 0 : index
    %c3_314 = arith.constant 3 : index
    %c0_315 = arith.constant 0 : index
    %c0_316 = arith.constant 0 : index
    %569 = vector.load %arg7[%c0_313, %c3_314, %c0_315, %c0_316] : memref<1x4x16x16xf32, #tpu.memory_space<vmem>>, vector<1x1x16x16xf32>
    %570 = vector.shape_cast %569 : vector<1x1x16x16xf32> to vector<16x16xf32>
    %571 = tpu.transpose %567, [1, 0] : vector<16x32xf32> -> vector<32x16xf32>
    %cst_317 = arith.constant dense<0.000000e+00> : vector<16x16xf32>
    %572 = tpu.matmul %566, %571, %cst_317 {dimension_numbers = #tpu.dot_dimension_numbers<[1], [0], [0], [1], [0, 0, 1, 1], [], []>} : vector<16x32xf32>, vector<32x16xf32>, vector<16x16xf32> -> vector<16x16xf32>
    %573 = vector.broadcast %502 : vector<1x16xf32> to vector<16x16xf32>
    %574 = arith.addf %572, %573 : vector<16x16xf32>
    %575 = arith.addf %574, %570 : vector<16x16xf32>
    %cst_318 = arith.constant dense<0xFF800000> : vector<16xf32>
    %576 = vector.multi_reduction <maximumf>, %575, %cst_318 [1] : vector<16x16xf32> to vector<16xf32>
    %577 = vector.shape_cast %576 : vector<16xf32> to vector<16x1xf32>
    %578 = vector.broadcast %577 : vector<16x1xf32> to vector<16x16xf32>
    %579 = arith.subf %575, %578 : vector<16x16xf32>
    %580 = math.exp %579 : vector<16x16xf32>
    %cst_319 = arith.constant dense<0.000000e+00> : vector<16xf32>
    %581 = vector.multi_reduction <add>, %580, %cst_319 [1] : vector<16x16xf32> to vector<16xf32>
    %582 = vector.shape_cast %581 : vector<16xf32> to vector<16x1xf32>
    %583 = tpu.reciprocal %582 {approx = true} : vector<16x1xf32> -> vector<16x1xf32>
    %584 = vector.broadcast %583 : vector<16x1xf32> to vector<16x16xf32>
    %585 = arith.mulf %580, %584 : vector<16x16xf32>
    %cst_320 = arith.constant dense<0.000000e+00> : vector<16x32xf32>
    %586 = tpu.matmul %585, %568, %cst_320 {dimension_numbers = #tpu.dot_dimension_numbers<[1], [0], [0], [1], [0, 0, 1, 1], [], []>} : vector<16x16xf32>, vector<16x32xf32>, vector<16x32xf32> -> vector<16x32xf32>
    %587 = tpu.concatenate %523, %544, %565, %586 in 1 : vector<16x32xf32>, vector<16x32xf32>, vector<16x32xf32>, vector<16x32xf32> -> vector<16x128xf32>
    %c0_321 = arith.constant 0 : index
    %c5_322 = arith.constant 5 : index
    %c0_323 = arith.constant 0 : index
    %c0_324 = arith.constant 0 : index
    %588 = vector.load %arg5[%c0_321, %c5_322, %c0_323, %c0_324] : memref<1x8x16x128xf32, #tpu.memory_space<vmem>>, vector<1x1x16x128xf32>
    %589 = vector.shape_cast %588 : vector<1x1x16x128xf32> to vector<16x128xf32>
    %590 = arith.mulf %587, %589 : vector<16x128xf32>
    %c0_325 = arith.constant 0 : index
    %c5_326 = arith.constant 5 : index
    %c0_327 = arith.constant 0 : index
    %c0_328 = arith.constant 0 : index
    %591 = vector.load %arg8[%c0_325, %c5_326, %c0_327, %c0_328] : memref<1x8x16x128xf32, #tpu.memory_space<vmem>>, vector<1x1x16x128xf32>
    %592 = vector.shape_cast %591 : vector<1x1x16x128xf32> to vector<16x128xf32>
    %593 = vector.shape_cast %590 : vector<16x128xf32> to vector<1x1x16x128xf32>
    tpu.vector_store %arg8[%c0_325, %c5_326, %c0_327, %c0_328], %593 {strides = array<i32>} : memref<1x8x16x128xf32, #tpu.memory_space<vmem>>, vector<1x1x16x128xf32>,
    %c0_329 = arith.constant 0 : index
    %c6 = arith.constant 6 : index
    %c0_330 = arith.constant 0 : index
    %c0_331 = arith.constant 0 : index
    %594 = vector.load %arg2[%c0_329, %c6, %c0_330, %c0_331] : memref<1x8x16x128xf32, #tpu.memory_space<vmem>>, vector<1x1x16x128xf32>
    %595 = vector.shape_cast %594 : vector<1x1x16x128xf32> to vector<16x128xf32>
    %c0_332 = arith.constant 0 : index
    %c6_333 = arith.constant 6 : index
    %c0_334 = arith.constant 0 : index
    %c0_335 = arith.constant 0 : index
    %596 = vector.load %arg3[%c0_332, %c6_333, %c0_334, %c0_335] : memref<1x8x16x128xf32, #tpu.memory_space<vmem>>, vector<1x1x16x128xf32>
    %597 = vector.shape_cast %596 : vector<1x1x16x128xf32> to vector<16x128xf32>
    %c0_336 = arith.constant 0 : index
    %c6_337 = arith.constant 6 : index
    %c0_338 = arith.constant 0 : index
    %c0_339 = arith.constant 0 : index
    %598 = vector.load %arg4[%c0_336, %c6_337, %c0_338, %c0_339] : memref<1x8x16x128xf32, #tpu.memory_space<vmem>>, vector<1x1x16x128xf32>
    %599 = vector.shape_cast %598 : vector<1x1x16x128xf32> to vector<16x128xf32>
    %c0_340 = arith.constant 0 : index
    %c6_341 = arith.constant 6 : index
    %c0_342 = arith.constant 0 : index
    %c0_343 = arith.constant 0 : index
    %600 = vector.load %arg6[%c0_340, %c6_341, %c0_342, %c0_343] : memref<1x8x1x16xf32, #tpu.memory_space<vmem>>, vector<1x1x1x16xf32>
    %601 = vector.shape_cast %600 : vector<1x1x1x16xf32> to vector<1x16xf32>
    %602 = vector.extract_strided_slice %595 {offsets = [0, 0], sizes = [16, 32], strides = [1, 1]} : vector<16x128xf32> to vector<16x32xf32>
    %603 = vector.extract_strided_slice %597 {offsets = [0, 0], sizes = [16, 32], strides = [1, 1]} : vector<16x128xf32> to vector<16x32xf32>
    %604 = vector.extract_strided_slice %599 {offsets = [0, 0], sizes = [16, 32], strides = [1, 1]} : vector<16x128xf32> to vector<16x32xf32>
    %c0_344 = arith.constant 0 : index
    %c0_345 = arith.constant 0 : index
    %c0_346 = arith.constant 0 : index
    %c0_347 = arith.constant 0 : index
    %605 = vector.load %arg7[%c0_344, %c0_345, %c0_346, %c0_347] : memref<1x4x16x16xf32, #tpu.memory_space<vmem>>, vector<1x1x16x16xf32>
    %606 = vector.shape_cast %605 : vector<1x1x16x16xf32> to vector<16x16xf32>
    %607 = tpu.transpose %603, [1, 0] : vector<16x32xf32> -> vector<32x16xf32>
    %cst_348 = arith.constant dense<0.000000e+00> : vector<16x16xf32>
    %608 = tpu.matmul %602, %607, %cst_348 {dimension_numbers = #tpu.dot_dimension_numbers<[1], [0], [0], [1], [0, 0, 1, 1], [], []>} : vector<16x32xf32>, vector<32x16xf32>, vector<16x16xf32> -> vector<16x16xf32>
    %609 = vector.broadcast %601 : vector<1x16xf32> to vector<16x16xf32>
    %610 = arith.addf %608, %609 : vector<16x16xf32>
    %611 = arith.addf %610, %606 : vector<16x16xf32>
    %cst_349 = arith.constant dense<0xFF800000> : vector<16xf32>
    %612 = vector.multi_reduction <maximumf>, %611, %cst_349 [1] : vector<16x16xf32> to vector<16xf32>
    %613 = vector.shape_cast %612 : vector<16xf32> to vector<16x1xf32>
    %614 = vector.broadcast %613 : vector<16x1xf32> to vector<16x16xf32>
    %615 = arith.subf %611, %614 : vector<16x16xf32>
    %616 = math.exp %615 : vector<16x16xf32>
    %cst_350 = arith.constant dense<0.000000e+00> : vector<16xf32>
    %617 = vector.multi_reduction <add>, %616, %cst_350 [1] : vector<16x16xf32> to vector<16xf32>
    %618 = vector.shape_cast %617 : vector<16xf32> to vector<16x1xf32>
    %619 = tpu.reciprocal %618 {approx = true} : vector<16x1xf32> -> vector<16x1xf32>
    %620 = vector.broadcast %619 : vector<16x1xf32> to vector<16x16xf32>
    %621 = arith.mulf %616, %620 : vector<16x16xf32>
    %cst_351 = arith.constant dense<0.000000e+00> : vector<16x32xf32>
    %622 = tpu.matmul %621, %604, %cst_351 {dimension_numbers = #tpu.dot_dimension_numbers<[1], [0], [0], [1], [0, 0, 1, 1], [], []>} : vector<16x16xf32>, vector<16x32xf32>, vector<16x32xf32> -> vector<16x32xf32>
    %623 = vector.extract_strided_slice %595 {offsets = [0, 32], sizes = [16, 32], strides = [1, 1]} : vector<16x128xf32> to vector<16x32xf32>
    %624 = vector.extract_strided_slice %597 {offsets = [0, 32], sizes = [16, 32], strides = [1, 1]} : vector<16x128xf32> to vector<16x32xf32>
    %625 = vector.extract_strided_slice %599 {offsets = [0, 32], sizes = [16, 32], strides = [1, 1]} : vector<16x128xf32> to vector<16x32xf32>
    %c0_352 = arith.constant 0 : index
    %c1_353 = arith.constant 1 : index
    %c0_354 = arith.constant 0 : index
    %c0_355 = arith.constant 0 : index
    %626 = vector.load %arg7[%c0_352, %c1_353, %c0_354, %c0_355] : memref<1x4x16x16xf32, #tpu.memory_space<vmem>>, vector<1x1x16x16xf32>
    %627 = vector.shape_cast %626 : vector<1x1x16x16xf32> to vector<16x16xf32>
    %628 = tpu.transpose %624, [1, 0] : vector<16x32xf32> -> vector<32x16xf32>
    %cst_356 = arith.constant dense<0.000000e+00> : vector<16x16xf32>
    %629 = tpu.matmul %623, %628, %cst_356 {dimension_numbers = #tpu.dot_dimension_numbers<[1], [0], [0], [1], [0, 0, 1, 1], [], []>} : vector<16x32xf32>, vector<32x16xf32>, vector<16x16xf32> -> vector<16x16xf32>
    %630 = vector.broadcast %601 : vector<1x16xf32> to vector<16x16xf32>
    %631 = arith.addf %629, %630 : vector<16x16xf32>
    %632 = arith.addf %631, %627 : vector<16x16xf32>
    %cst_357 = arith.constant dense<0xFF800000> : vector<16xf32>
    %633 = vector.multi_reduction <maximumf>, %632, %cst_357 [1] : vector<16x16xf32> to vector<16xf32>
    %634 = vector.shape_cast %633 : vector<16xf32> to vector<16x1xf32>
    %635 = vector.broadcast %634 : vector<16x1xf32> to vector<16x16xf32>
    %636 = arith.subf %632, %635 : vector<16x16xf32>
    %637 = math.exp %636 : vector<16x16xf32>
    %cst_358 = arith.constant dense<0.000000e+00> : vector<16xf32>
    %638 = vector.multi_reduction <add>, %637, %cst_358 [1] : vector<16x16xf32> to vector<16xf32>
    %639 = vector.shape_cast %638 : vector<16xf32> to vector<16x1xf32>
    %640 = tpu.reciprocal %639 {approx = true} : vector<16x1xf32> -> vector<16x1xf32>
    %641 = vector.broadcast %640 : vector<16x1xf32> to vector<16x16xf32>
    %642 = arith.mulf %637, %641 : vector<16x16xf32>
    %cst_359 = arith.constant dense<0.000000e+00> : vector<16x32xf32>
    %643 = tpu.matmul %642, %625, %cst_359 {dimension_numbers = #tpu.dot_dimension_numbers<[1], [0], [0], [1], [0, 0, 1, 1], [], []>} : vector<16x16xf32>, vector<16x32xf32>, vector<16x32xf32> -> vector<16x32xf32>
    %644 = vector.extract_strided_slice %595 {offsets = [0, 64], sizes = [16, 32], strides = [1, 1]} : vector<16x128xf32> to vector<16x32xf32>
    %645 = vector.extract_strided_slice %597 {offsets = [0, 64], sizes = [16, 32], strides = [1, 1]} : vector<16x128xf32> to vector<16x32xf32>
    %646 = vector.extract_strided_slice %599 {offsets = [0, 64], sizes = [16, 32], strides = [1, 1]} : vector<16x128xf32> to vector<16x32xf32>
    %c0_360 = arith.constant 0 : index
    %c2_361 = arith.constant 2 : index
    %c0_362 = arith.constant 0 : index
    %c0_363 = arith.constant 0 : index
    %647 = vector.load %arg7[%c0_360, %c2_361, %c0_362, %c0_363] : memref<1x4x16x16xf32, #tpu.memory_space<vmem>>, vector<1x1x16x16xf32>
    %648 = vector.shape_cast %647 : vector<1x1x16x16xf32> to vector<16x16xf32>
    %649 = tpu.transpose %645, [1, 0] : vector<16x32xf32> -> vector<32x16xf32>
    %cst_364 = arith.constant dense<0.000000e+00> : vector<16x16xf32>
    %650 = tpu.matmul %644, %649, %cst_364 {dimension_numbers = #tpu.dot_dimension_numbers<[1], [0], [0], [1], [0, 0, 1, 1], [], []>} : vector<16x32xf32>, vector<32x16xf32>, vector<16x16xf32> -> vector<16x16xf32>
    %651 = vector.broadcast %601 : vector<1x16xf32> to vector<16x16xf32>
    %652 = arith.addf %650, %651 : vector<16x16xf32>
    %653 = arith.addf %652, %648 : vector<16x16xf32>
    %cst_365 = arith.constant dense<0xFF800000> : vector<16xf32>
    %654 = vector.multi_reduction <maximumf>, %653, %cst_365 [1] : vector<16x16xf32> to vector<16xf32>
    %655 = vector.shape_cast %654 : vector<16xf32> to vector<16x1xf32>
    %656 = vector.broadcast %655 : vector<16x1xf32> to vector<16x16xf32>
    %657 = arith.subf %653, %656 : vector<16x16xf32>
    %658 = math.exp %657 : vector<16x16xf32>
    %cst_366 = arith.constant dense<0.000000e+00> : vector<16xf32>
    %659 = vector.multi_reduction <add>, %658, %cst_366 [1] : vector<16x16xf32> to vector<16xf32>
    %660 = vector.shape_cast %659 : vector<16xf32> to vector<16x1xf32>
    %661 = tpu.reciprocal %660 {approx = true} : vector<16x1xf32> -> vector<16x1xf32>
    %662 = vector.broadcast %661 : vector<16x1xf32> to vector<16x16xf32>
    %663 = arith.mulf %658, %662 : vector<16x16xf32>
    %cst_367 = arith.constant dense<0.000000e+00> : vector<16x32xf32>
    %664 = tpu.matmul %663, %646, %cst_367 {dimension_numbers = #tpu.dot_dimension_numbers<[1], [0], [0], [1], [0, 0, 1, 1], [], []>} : vector<16x16xf32>, vector<16x32xf32>, vector<16x32xf32> -> vector<16x32xf32>
    %665 = vector.extract_strided_slice %595 {offsets = [0, 96], sizes = [16, 32], strides = [1, 1]} : vector<16x128xf32> to vector<16x32xf32>
    %666 = vector.extract_strided_slice %597 {offsets = [0, 96], sizes = [16, 32], strides = [1, 1]} : vector<16x128xf32> to vector<16x32xf32>
    %667 = vector.extract_strided_slice %599 {offsets = [0, 96], sizes = [16, 32], strides = [1, 1]} : vector<16x128xf32> to vector<16x32xf32>
    %c0_368 = arith.constant 0 : index
    %c3_369 = arith.constant 3 : index
    %c0_370 = arith.constant 0 : index
    %c0_371 = arith.constant 0 : index
    %668 = vector.load %arg7[%c0_368, %c3_369, %c0_370, %c0_371] : memref<1x4x16x16xf32, #tpu.memory_space<vmem>>, vector<1x1x16x16xf32>
    %669 = vector.shape_cast %668 : vector<1x1x16x16xf32> to vector<16x16xf32>
    %670 = tpu.transpose %666, [1, 0] : vector<16x32xf32> -> vector<32x16xf32>
    %cst_372 = arith.constant dense<0.000000e+00> : vector<16x16xf32>
    %671 = tpu.matmul %665, %670, %cst_372 {dimension_numbers = #tpu.dot_dimension_numbers<[1], [0], [0], [1], [0, 0, 1, 1], [], []>} : vector<16x32xf32>, vector<32x16xf32>, vector<16x16xf32> -> vector<16x16xf32>
    %672 = vector.broadcast %601 : vector<1x16xf32> to vector<16x16xf32>
    %673 = arith.addf %671, %672 : vector<16x16xf32>
    %674 = arith.addf %673, %669 : vector<16x16xf32>
    %cst_373 = arith.constant dense<0xFF800000> : vector<16xf32>
    %675 = vector.multi_reduction <maximumf>, %674, %cst_373 [1] : vector<16x16xf32> to vector<16xf32>
    %676 = vector.shape_cast %675 : vector<16xf32> to vector<16x1xf32>
    %677 = vector.broadcast %676 : vector<16x1xf32> to vector<16x16xf32>
    %678 = arith.subf %674, %677 : vector<16x16xf32>
    %679 = math.exp %678 : vector<16x16xf32>
    %cst_374 = arith.constant dense<0.000000e+00> : vector<16xf32>
    %680 = vector.multi_reduction <add>, %679, %cst_374 [1] : vector<16x16xf32> to vector<16xf32>
    %681 = vector.shape_cast %680 : vector<16xf32> to vector<16x1xf32>
    %682 = tpu.reciprocal %681 {approx = true} : vector<16x1xf32> -> vector<16x1xf32>
    %683 = vector.broadcast %682 : vector<16x1xf32> to vector<16x16xf32>
    %684 = arith.mulf %679, %683 : vector<16x16xf32>
    %cst_375 = arith.constant dense<0.000000e+00> : vector<16x32xf32>
    %685 = tpu.matmul %684, %667, %cst_375 {dimension_numbers = #tpu.dot_dimension_numbers<[1], [0], [0], [1], [0, 0, 1, 1], [], []>} : vector<16x16xf32>, vector<16x32xf32>, vector<16x32xf32> -> vector<16x32xf32>
    %686 = tpu.concatenate %622, %643, %664, %685 in 1 : vector<16x32xf32>, vector<16x32xf32>, vector<16x32xf32>, vector<16x32xf32> -> vector<16x128xf32>
    %c0_376 = arith.constant 0 : index
    %c6_377 = arith.constant 6 : index
    %c0_378 = arith.constant 0 : index
    %c0_379 = arith.constant 0 : index
    %687 = vector.load %arg5[%c0_376, %c6_377, %c0_378, %c0_379] : memref<1x8x16x128xf32, #tpu.memory_space<vmem>>, vector<1x1x16x128xf32>
    %688 = vector.shape_cast %687 : vector<1x1x16x128xf32> to vector<16x128xf32>
    %689 = arith.mulf %686, %688 : vector<16x128xf32>
    %c0_380 = arith.constant 0 : index
    %c6_381 = arith.constant 6 : index
    %c0_382 = arith.constant 0 : index
    %c0_383 = arith.constant 0 : index
    %690 = vector.load %arg8[%c0_380, %c6_381, %c0_382, %c0_383] : memref<1x8x16x128xf32, #tpu.memory_space<vmem>>, vector<1x1x16x128xf32>
    %691 = vector.shape_cast %690 : vector<1x1x16x128xf32> to vector<16x128xf32>
    %692 = vector.shape_cast %689 : vector<16x128xf32> to vector<1x1x16x128xf32>
    tpu.vector_store %arg8[%c0_380, %c6_381, %c0_382, %c0_383], %692 {strides = array<i32>} : memref<1x8x16x128xf32, #tpu.memory_space<vmem>>, vector<1x1x16x128xf32>,
    %c0_384 = arith.constant 0 : index
    %c7 = arith.constant 7 : index
    %c0_385 = arith.constant 0 : index
    %c0_386 = arith.constant 0 : index
    %693 = vector.load %arg2[%c0_384, %c7, %c0_385, %c0_386] : memref<1x8x16x128xf32, #tpu.memory_space<vmem>>, vector<1x1x16x128xf32>
    %694 = vector.shape_cast %693 : vector<1x1x16x128xf32> to vector<16x128xf32>
    %c0_387 = arith.constant 0 : index
    %c7_388 = arith.constant 7 : index
    %c0_389 = arith.constant 0 : index
    %c0_390 = arith.constant 0 : index
    %695 = vector.load %arg3[%c0_387, %c7_388, %c0_389, %c0_390] : memref<1x8x16x128xf32, #tpu.memory_space<vmem>>, vector<1x1x16x128xf32>
    %696 = vector.shape_cast %695 : vector<1x1x16x128xf32> to vector<16x128xf32>
    %c0_391 = arith.constant 0 : index
    %c7_392 = arith.constant 7 : index
    %c0_393 = arith.constant 0 : index
    %c0_394 = arith.constant 0 : index
    %697 = vector.load %arg4[%c0_391, %c7_392, %c0_393, %c0_394] : memref<1x8x16x128xf32, #tpu.memory_space<vmem>>, vector<1x1x16x128xf32>
    %698 = vector.shape_cast %697 : vector<1x1x16x128xf32> to vector<16x128xf32>
    %c0_395 = arith.constant 0 : index
    %c7_396 = arith.constant 7 : index
    %c0_397 = arith.constant 0 : index
    %c0_398 = arith.constant 0 : index
    %699 = vector.load %arg6[%c0_395, %c7_396, %c0_397, %c0_398] : memref<1x8x1x16xf32, #tpu.memory_space<vmem>>, vector<1x1x1x16xf32>
    %700 = vector.shape_cast %699 : vector<1x1x1x16xf32> to vector<1x16xf32>
    %701 = vector.extract_strided_slice %694 {offsets = [0, 0], sizes = [16, 32], strides = [1, 1]} : vector<16x128xf32> to vector<16x32xf32>
    %702 = vector.extract_strided_slice %696 {offsets = [0, 0], sizes = [16, 32], strides = [1, 1]} : vector<16x128xf32> to vector<16x32xf32>
    %703 = vector.extract_strided_slice %698 {offsets = [0, 0], sizes = [16, 32], strides = [1, 1]} : vector<16x128xf32> to vector<16x32xf32>
    %c0_399 = arith.constant 0 : index
    %c0_400 = arith.constant 0 : index
    %c0_401 = arith.constant 0 : index
    %c0_402 = arith.constant 0 : index
    %704 = vector.load %arg7[%c0_399, %c0_400, %c0_401, %c0_402] : memref<1x4x16x16xf32, #tpu.memory_space<vmem>>, vector<1x1x16x16xf32>
    %705 = vector.shape_cast %704 : vector<1x1x16x16xf32> to vector<16x16xf32>
    %706 = tpu.transpose %702, [1, 0] : vector<16x32xf32> -> vector<32x16xf32>
    %cst_403 = arith.constant dense<0.000000e+00> : vector<16x16xf32>
    %707 = tpu.matmul %701, %706, %cst_403 {dimension_numbers = #tpu.dot_dimension_numbers<[1], [0], [0], [1], [0, 0, 1, 1], [], []>} : vector<16x32xf32>, vector<32x16xf32>, vector<16x16xf32> -> vector<16x16xf32>
    %708 = vector.broadcast %700 : vector<1x16xf32> to vector<16x16xf32>
    %709 = arith.addf %707, %708 : vector<16x16xf32>
    %710 = arith.addf %709, %705 : vector<16x16xf32>
    %cst_404 = arith.constant dense<0xFF800000> : vector<16xf32>
    %711 = vector.multi_reduction <maximumf>, %710, %cst_404 [1] : vector<16x16xf32> to vector<16xf32>
    %712 = vector.shape_cast %711 : vector<16xf32> to vector<16x1xf32>
    %713 = vector.broadcast %712 : vector<16x1xf32> to vector<16x16xf32>
    %714 = arith.subf %710, %713 : vector<16x16xf32>
    %715 = math.exp %714 : vector<16x16xf32>
    %cst_405 = arith.constant dense<0.000000e+00> : vector<16xf32>
    %716 = vector.multi_reduction <add>, %715, %cst_405 [1] : vector<16x16xf32> to vector<16xf32>
    %717 = vector.shape_cast %716 : vector<16xf32> to vector<16x1xf32>
    %718 = tpu.reciprocal %717 {approx = true} : vector<16x1xf32> -> vector<16x1xf32>
    %719 = vector.broadcast %718 : vector<16x1xf32> to vector<16x16xf32>
    %720 = arith.mulf %715, %719 : vector<16x16xf32>
    %cst_406 = arith.constant dense<0.000000e+00> : vector<16x32xf32>
    %721 = tpu.matmul %720, %703, %cst_406 {dimension_numbers = #tpu.dot_dimension_numbers<[1], [0], [0], [1], [0, 0, 1, 1], [], []>} : vector<16x16xf32>, vector<16x32xf32>, vector<16x32xf32> -> vector<16x32xf32>
    %722 = vector.extract_strided_slice %694 {offsets = [0, 32], sizes = [16, 32], strides = [1, 1]} : vector<16x128xf32> to vector<16x32xf32>
    %723 = vector.extract_strided_slice %696 {offsets = [0, 32], sizes = [16, 32], strides = [1, 1]} : vector<16x128xf32> to vector<16x32xf32>
    %724 = vector.extract_strided_slice %698 {offsets = [0, 32], sizes = [16, 32], strides = [1, 1]} : vector<16x128xf32> to vector<16x32xf32>
    %c0_407 = arith.constant 0 : index
    %c1_408 = arith.constant 1 : index
    %c0_409 = arith.constant 0 : index
    %c0_410 = arith.constant 0 : index
    %725 = vector.load %arg7[%c0_407, %c1_408, %c0_409, %c0_410] : memref<1x4x16x16xf32, #tpu.memory_space<vmem>>, vector<1x1x16x16xf32>
    %726 = vector.shape_cast %725 : vector<1x1x16x16xf32> to vector<16x16xf32>
    %727 = tpu.transpose %723, [1, 0] : vector<16x32xf32> -> vector<32x16xf32>
    %cst_411 = arith.constant dense<0.000000e+00> : vector<16x16xf32>
    %728 = tpu.matmul %722, %727, %cst_411 {dimension_numbers = #tpu.dot_dimension_numbers<[1], [0], [0], [1], [0, 0, 1, 1], [], []>} : vector<16x32xf32>, vector<32x16xf32>, vector<16x16xf32> -> vector<16x16xf32>
    %729 = vector.broadcast %700 : vector<1x16xf32> to vector<16x16xf32>
    %730 = arith.addf %728, %729 : vector<16x16xf32>
    %731 = arith.addf %730, %726 : vector<16x16xf32>
    %cst_412 = arith.constant dense<0xFF800000> : vector<16xf32>
    %732 = vector.multi_reduction <maximumf>, %731, %cst_412 [1] : vector<16x16xf32> to vector<16xf32>
    %733 = vector.shape_cast %732 : vector<16xf32> to vector<16x1xf32>
    %734 = vector.broadcast %733 : vector<16x1xf32> to vector<16x16xf32>
    %735 = arith.subf %731, %734 : vector<16x16xf32>
    %736 = math.exp %735 : vector<16x16xf32>
    %cst_413 = arith.constant dense<0.000000e+00> : vector<16xf32>
    %737 = vector.multi_reduction <add>, %736, %cst_413 [1] : vector<16x16xf32> to vector<16xf32>
    %738 = vector.shape_cast %737 : vector<16xf32> to vector<16x1xf32>
    %739 = tpu.reciprocal %738 {approx = true} : vector<16x1xf32> -> vector<16x1xf32>
    %740 = vector.broadcast %739 : vector<16x1xf32> to vector<16x16xf32>
    %741 = arith.mulf %736, %740 : vector<16x16xf32>
    %cst_414 = arith.constant dense<0.000000e+00> : vector<16x32xf32>
    %742 = tpu.matmul %741, %724, %cst_414 {dimension_numbers = #tpu.dot_dimension_numbers<[1], [0], [0], [1], [0, 0, 1, 1], [], []>} : vector<16x16xf32>, vector<16x32xf32>, vector<16x32xf32> -> vector<16x32xf32>
    %743 = vector.extract_strided_slice %694 {offsets = [0, 64], sizes = [16, 32], strides = [1, 1]} : vector<16x128xf32> to vector<16x32xf32>
    %744 = vector.extract_strided_slice %696 {offsets = [0, 64], sizes = [16, 32], strides = [1, 1]} : vector<16x128xf32> to vector<16x32xf32>
    %745 = vector.extract_strided_slice %698 {offsets = [0, 64], sizes = [16, 32], strides = [1, 1]} : vector<16x128xf32> to vector<16x32xf32>
    %c0_415 = arith.constant 0 : index
    %c2_416 = arith.constant 2 : index
    %c0_417 = arith.constant 0 : index
    %c0_418 = arith.constant 0 : index
    %746 = vector.load %arg7[%c0_415, %c2_416, %c0_417, %c0_418] : memref<1x4x16x16xf32, #tpu.memory_space<vmem>>, vector<1x1x16x16xf32>
    %747 = vector.shape_cast %746 : vector<1x1x16x16xf32> to vector<16x16xf32>
    %748 = tpu.transpose %744, [1, 0] : vector<16x32xf32> -> vector<32x16xf32>
    %cst_419 = arith.constant dense<0.000000e+00> : vector<16x16xf32>
    %749 = tpu.matmul %743, %748, %cst_419 {dimension_numbers = #tpu.dot_dimension_numbers<[1], [0], [0], [1], [0, 0, 1, 1], [], []>} : vector<16x32xf32>, vector<32x16xf32>, vector<16x16xf32> -> vector<16x16xf32>
    %750 = vector.broadcast %700 : vector<1x16xf32> to vector<16x16xf32>
    %751 = arith.addf %749, %750 : vector<16x16xf32>
    %752 = arith.addf %751, %747 : vector<16x16xf32>
    %cst_420 = arith.constant dense<0xFF800000> : vector<16xf32>
    %753 = vector.multi_reduction <maximumf>, %752, %cst_420 [1] : vector<16x16xf32> to vector<16xf32>
    %754 = vector.shape_cast %753 : vector<16xf32> to vector<16x1xf32>
    %755 = vector.broadcast %754 : vector<16x1xf32> to vector<16x16xf32>
    %756 = arith.subf %752, %755 : vector<16x16xf32>
    %757 = math.exp %756 : vector<16x16xf32>
    %cst_421 = arith.constant dense<0.000000e+00> : vector<16xf32>
    %758 = vector.multi_reduction <add>, %757, %cst_421 [1] : vector<16x16xf32> to vector<16xf32>
    %759 = vector.shape_cast %758 : vector<16xf32> to vector<16x1xf32>
    %760 = tpu.reciprocal %759 {approx = true} : vector<16x1xf32> -> vector<16x1xf32>
    %761 = vector.broadcast %760 : vector<16x1xf32> to vector<16x16xf32>
    %762 = arith.mulf %757, %761 : vector<16x16xf32>
    %cst_422 = arith.constant dense<0.000000e+00> : vector<16x32xf32>
    %763 = tpu.matmul %762, %745, %cst_422 {dimension_numbers = #tpu.dot_dimension_numbers<[1], [0], [0], [1], [0, 0, 1, 1], [], []>} : vector<16x16xf32>, vector<16x32xf32>, vector<16x32xf32> -> vector<16x32xf32>
    %764 = vector.extract_strided_slice %694 {offsets = [0, 96], sizes = [16, 32], strides = [1, 1]} : vector<16x128xf32> to vector<16x32xf32>
    %765 = vector.extract_strided_slice %696 {offsets = [0, 96], sizes = [16, 32], strides = [1, 1]} : vector<16x128xf32> to vector<16x32xf32>
    %766 = vector.extract_strided_slice %698 {offsets = [0, 96], sizes = [16, 32], strides = [1, 1]} : vector<16x128xf32> to vector<16x32xf32>
    %c0_423 = arith.constant 0 : index
    %c3_424 = arith.constant 3 : index
    %c0_425 = arith.constant 0 : index
    %c0_426 = arith.constant 0 : index
    %767 = vector.load %arg7[%c0_423, %c3_424, %c0_425, %c0_426] : memref<1x4x16x16xf32, #tpu.memory_space<vmem>>, vector<1x1x16x16xf32>
    %768 = vector.shape_cast %767 : vector<1x1x16x16xf32> to vector<16x16xf32>
    %769 = tpu.transpose %765, [1, 0] : vector<16x32xf32> -> vector<32x16xf32>
    %cst_427 = arith.constant dense<0.000000e+00> : vector<16x16xf32>
    %770 = tpu.matmul %764, %769, %cst_427 {dimension_numbers = #tpu.dot_dimension_numbers<[1], [0], [0], [1], [0, 0, 1, 1], [], []>} : vector<16x32xf32>, vector<32x16xf32>, vector<16x16xf32> -> vector<16x16xf32>
    %771 = vector.broadcast %700 : vector<1x16xf32> to vector<16x16xf32>
    %772 = arith.addf %770, %771 : vector<16x16xf32>
    %773 = arith.addf %772, %768 : vector<16x16xf32>
    %cst_428 = arith.constant dense<0xFF800000> : vector<16xf32>
    %774 = vector.multi_reduction <maximumf>, %773, %cst_428 [1] : vector<16x16xf32> to vector<16xf32>
    %775 = vector.shape_cast %774 : vector<16xf32> to vector<16x1xf32>
    %776 = vector.broadcast %775 : vector<16x1xf32> to vector<16x16xf32>
    %777 = arith.subf %773, %776 : vector<16x16xf32>
    %778 = math.exp %777 : vector<16x16xf32>
    %cst_429 = arith.constant dense<0.000000e+00> : vector<16xf32>
    %779 = vector.multi_reduction <add>, %778, %cst_429 [1] : vector<16x16xf32> to vector<16xf32>
    %780 = vector.shape_cast %779 : vector<16xf32> to vector<16x1xf32>
    %781 = tpu.reciprocal %780 {approx = true} : vector<16x1xf32> -> vector<16x1xf32>
    %782 = vector.broadcast %781 : vector<16x1xf32> to vector<16x16xf32>
    %783 = arith.mulf %778, %782 : vector<16x16xf32>
    %cst_430 = arith.constant dense<0.000000e+00> : vector<16x32xf32>
    %784 = tpu.matmul %783, %766, %cst_430 {dimension_numbers = #tpu.dot_dimension_numbers<[1], [0], [0], [1], [0, 0, 1, 1], [], []>} : vector<16x16xf32>, vector<16x32xf32>, vector<16x32xf32> -> vector<16x32xf32>
    %785 = tpu.concatenate %721, %742, %763, %784 in 1 : vector<16x32xf32>, vector<16x32xf32>, vector<16x32xf32>, vector<16x32xf32> -> vector<16x128xf32>
    %c0_431 = arith.constant 0 : index
    %c7_432 = arith.constant 7 : index
    %c0_433 = arith.constant 0 : index
    %c0_434 = arith.constant 0 : index
    %786 = vector.load %arg5[%c0_431, %c7_432, %c0_433, %c0_434] : memref<1x8x16x128xf32, #tpu.memory_space<vmem>>, vector<1x1x16x128xf32>
    %787 = vector.shape_cast %786 : vector<1x1x16x128xf32> to vector<16x128xf32>
    %788 = arith.mulf %785, %787 : vector<16x128xf32>
    %c0_435 = arith.constant 0 : index
    %c7_436 = arith.constant 7 : index
    %c0_437 = arith.constant 0 : index
    %c0_438 = arith.constant 0 : index
    %789 = vector.load %arg8[%c0_435, %c7_436, %c0_437, %c0_438] : memref<1x8x16x128xf32, #tpu.memory_space<vmem>>, vector<1x1x16x128xf32>
    %790 = vector.shape_cast %789 : vector<1x1x16x128xf32> to vector<16x128xf32>
    %791 = vector.shape_cast %788 : vector<16x128xf32> to vector<1x1x16x128xf32>
    tpu.vector_store %arg8[%c0_435, %c7_436, %c0_437, %c0_438], %791 {strides = array<i32>} : memref<1x8x16x128xf32, #tpu.memory_space<vmem>>, vector<1x1x16x128xf32>,
    return
  }
  func.func @transform_0(%arg0: i32, %arg1: i32) -> (i32, i32, i32, i32) {
    %c0_i32 = arith.constant 0 : i32
    %c0_i32_0 = arith.constant 0 : i32
    %c0_i32_1 = arith.constant 0 : i32
    return %arg0, %arg1, %c0_i32, %c0_i32_0 : i32, i32, i32, i32
  }
  func.func @transform_1(%arg0: i32, %arg1: i32) -> (i32, i32, i32, i32) {
    %c0_i32 = arith.constant 0 : i32
    %c0_i32_0 = arith.constant 0 : i32
    %c0_i32_1 = arith.constant 0 : i32
    return %arg0, %arg1, %c0_i32, %c0_i32_0 : i32, i32, i32, i32
  }
  func.func @transform_2(%arg0: i32, %arg1: i32) -> (i32, i32, i32, i32) {
    %c0_i32 = arith.constant 0 : i32
    %c0_i32_0 = arith.constant 0 : i32
    %c0_i32_1 = arith.constant 0 : i32
    return %arg0, %arg1, %c0_i32, %c0_i32_0 : i32, i32, i32, i32
  }
  func.func @transform_3(%arg0: i32, %arg1: i32) -> (i32, i32, i32, i32) {
    %c0_i32 = arith.constant 0 : i32
    %c0_i32_0 = arith.constant 0 : i32
    %c0_i32_1 = arith.constant 0 : i32
    return %arg0, %arg1, %c0_i32, %c0_i32_0 : i32, i32, i32, i32
  }
  func.func @transform_4(%arg0: i32, %arg1: i32) -> (i32, i32, i32, i32) {
    %c0_i32 = arith.constant 0 : i32
    %c0_i32_0 = arith.constant 0 : i32
    %c0_i32_1 = arith.constant 0 : i32
    return %arg0, %arg1, %c0_i32, %c0_i32_0 : i32, i32, i32, i32
  }
  func.func @transform_5(%arg0: i32, %arg1: i32) -> (i32, i32, i32, i32) {
    %c0_i32 = arith.constant 0 : i32
    %c0_i32_0 = arith.constant 0 : i32
    %c0_i32_1 = arith.constant 0 : i32
    %c0_i32_2 = arith.constant 0 : i32
    return %arg0, %c0_i32, %c0_i32_0, %c0_i32_1 : i32, i32, i32, i32
  }
  func.func @transform_6(%arg0: i32, %arg1: i32) -> (i32, i32, i32, i32) {
    %c0_i32 = arith.constant 0 : i32
    %c0_i32_0 = arith.constant 0 : i32
    %c0_i32_1 = arith.constant 0 : i32
    return %arg0, %arg1, %c0_i32, %c0_i32_0 : i32, i32, i32, i32
  }
}

</mosaic_0001>

<bundles_post_ra>
// kernel: tpu_custom_call.1
= control target key start
LH: loop header
LB: loop body
LE: loop exit
PB: predicated region body
PF: predicated region fallthrough
CT: control target
= control target key end

     0   :  { %s7330_s0 = inlined_call_operand.hbm [shape: f32[2,16,16,128], index: 0, kind: input, shape index: {}]   ;;  %s7331_s1 = inlined_call_operand.hbm [shape: f32[2,16,16,128], index: 1, kind: input, shape index: {}]   ;;  %s7332_s2 = inlined_call_operand.hbm [shape: f32[2,16,16,128], index: 2, kind: input, shape index: {}]   ;;  %s7333_s3 = inlined_call_operand.hbm [shape: f32[2,16,16,128], index: 3, kind: input, shape index: {}]   ;;  %s7334_s4 = inlined_call_operand.hbm [shape: f32[2,16,1,16], index: 4, kind: input, shape index: {}]   ;;  %s7335_s5 = inlined_call_operand.hbm [shape: f32[2,4,16,16], index: 5, kind: input, shape index: {}]   ;;  %s7336_s6 = inlined_call_operand.hbm [shape: f32[2,16,16,128], index: 6, kind: output, shape index: {}]  }
   0x1   :  { %7346 = sst [smem:[#allocation25_spill]] %s7330_s0 }
   0x2   :  { %7347 = sst [smem:[#allocation26_spill]] %s7331_s1 }
   0x3   :  { %7348 = sst [smem:[#allocation27_spill]] %s7333_s3 }
   0x4   :  { %7349 = sst [smem:[#allocation28_spill]] %s7334_s4 }
   0x5   :  { %7350 = sst [smem:[#allocation29_spill]] %s7335_s5 }
   0x6   :  { %7351 = sst [smem:[#allocation30_spill]] %s7336_s6 }
   0x7   :  { %11 = vsyncpa [#allocation3], 0 }
   0x8   :  { %13 = vsyncpa [#allocation3 + $0x1], 0 }
   0x9   :  { %14 = vsyncpa [#allocation6], 0 }
   0xa   :  { %16 = vsyncpa [#allocation6 + $0x1], 0 }
   0xb   :  { %17 = vsyncpa [#allocation9], 0 }
   0xc   :  { %19 = vsyncpa [#allocation9 + $0x1], 0 }
   0xd   :  { %20 = vsyncpa [#allocation12], 0 }
   0xe   :  { %22 = vsyncpa [#allocation12 + $0x1], 0 }
   0xf   :  { %23 = vsyncpa [#allocation4], 0 }
  0x10   :  { %25 = vsyncpa [#allocation4 + $0x1], 0  ;;  %s5554_s21 = smov 0   ;;  %s5556_s22 = smov 0  }
  0x11   :  { %s5558_s23 = smov 0   ;;  %s5560_s24 = smov 0  }
  0x12   :  { %s5562_s25 = smov 0   ;;  %s5564_s26 = smov 0  }
  0x13   :  { %s5566_s27 = smov 0   ;;  %s5568_s28 = smov 0  }
  0x14   :  { %s5570_s29 = smov 0   ;;  %s5572_s30 = smov 0  }
  0x15   :  { %s5574_s7 = smov 0  }
  0x16 LB: > { %7352 = sst [smem:[#allocation19_spill]] %s5488_s26  ;;  %s5610_s8 = sadd.s32 4294967295, %s5508_s7   ;;  %s5508_s7 = sphi %s5574_s7, %s31_s7   ;;  %s5504_s30 = sphi %s5572_s30, %s7391_s30   ;;  %s5500_s29 = sphi %s5570_s29, %s7390_s29   ;;  %s5496_s28 = sphi %s5568_s28, %s7389_s28   ;;  %s5492_s27 = sphi %s5566_s27, %s7388_s27   ;;  %s5488_s26 = sphi %s5564_s26, %s7387_s26   ;;  %s5484_s25 = sphi %s5562_s25, %s7386_s25   ;;  %s5480_s24 = sphi %s5560_s24, %s7385_s24   ;;  %s5476_s23 = sphi %s5558_s23, %s7384_s23   ;;  %s5472_s22 = sphi %s5556_s22, %s7383_s22   ;;  %s5468_s21 = sphi %s5554_s21, %s7382_s21  }
  0x17   : > { %7353 = sst [smem:[#allocation20_spill]] %s5492_s27  ;;  %s4302_s9 = sadd.s32 4294967294, %s5508_s7  }
  0x18   : > { %7354 = sst [smem:[#allocation21_spill]] %s5496_s28  ;;  %s40_s10 = sadd.s32 1, %s5500_s29 }
  0x19   : > { %p5614_p0 = scmp.ge.s32.totalorder %s40_s10, 2  ;;  %p59_p1 = scmp.ne.s32.totalorder %s5488_s26, %s5484_s25 }
  0x1a   : > { %p60_p2 = scmp.eq.s32.totalorder %s5508_s7, 0  ;;  %p65_p3 = scmp.ne.s32.totalorder %s5484_s25, %s5480_s24 }
  0x1b   : > { %s7393_s10 = smov (%p5614_p0, %s40_s10), 0  ;;  %p229_p4 = scmp.eq.s32.totalorder %s5610_s8, 3 }
  0x1c   : > { %p61_p5 = por %p60_p2, %p59_p1  ;;  %p235_p6 = scmp.eq.s32.totalorder %s4302_s9, 3 }
  0x1d   : > { %p5631_p7 = por %p229_p4, %p59_p1  ;;  %p4706_p9 = scmp.lt.s32.totalorder %s5508_s7, 4 }
  0x1e   : > { %p5638_p8 = por %p235_p6, %p65_p3  ;;  %s5644_s15 = sand.u32 1, %s5488_s26  }
  0x1f   : > { %s7356_s13 = scalar_select %p5631_p7, 1, 0 }
  0x20   : > { %s7358_s14 = scalar_select %p5638_p8, 1, 0 }
  0x21   : > { %7357 = sst [smem:[#allocation22_spill]] %s7356_s13  ;;  %s4663_s16 = sshll.u32 %s5500_s29, 4 }
  0x22   : > { %7359 = sst [smem:[#allocation23_spill]] %s7358_s14  ;;  %s5648_s17 = sshll.u32 %s5644_s15, 7 }
  0x23   : > { %s4308_s18 = sshll.u32 %s5504_s30, 5  ;;  %p5653_p10 = pnand %p4706_p9, %p61_p5 }
  0x24   : > { %s265_s19 = sadd.s32 %s4663_s16, %s4308_s18  ;;  %s280_s12 = sand.u32 1, %s5508_s7  }
  0x25   : > { %s5657_s9 = sshll.u32 %s265_s19, 3  ;;  %s7361_s1 = sld [smem:[#allocation26_spill]] }
  0x26   : > { %s284_s27 = scalar_lea.vmem [#allocation5], %s5648_s17  ;;  %s5665_s16 = scalar_lea.sflag [#allocation6], %s280_s12 }
  0x27   : > { %s295_s5 = sshll.u32 %s284_s27, 4  ;;  %s7344_s18 = smov 128   ;;  %s296_s5 = int_to_ptr.vmem [resolvable:$true] %s295_s5 }
  0x28   : > { %s7345_s19 = smov 8   ;;  %p4331_p11 = scmp.ge.s32.totalorder %s5508_s7, 1 }
  0x29   : > { %p398_p12 = scmp.lt.s32.totalorder %s5508_s7, 5  ;;  %s7364_s3 = sld [smem:[#allocation27_spill]] }
  0x2a   : > { %s334_s26 = scalar_lea.vmem [#allocation8], %s5648_s17  ;;  %s7365_s0 = sld [smem:[#allocation25_spill]] }
  0x2b   : > { %s292_s6 = scalar_lea.hbm %s7361_s1, %s5657_s9  ;;  %p5675_p13 = pnand %p4331_p11, %p398_p12 }
  0x2c   : > { %s293_s28 = sshll.u32 %s292_s6, 4  ;;  %s345_s4 = sshll.u32 %s334_s26, 4  ;;  %s294_s28 = int_to_ptr.hbm [resolvable:$true] %s293_s28  ;;  %s346_s4 = int_to_ptr.vmem [resolvable:$true] %s345_s4 }
  0x2d   : > { %4689 = dma.hbm_to_vmem [thread:$0]  (!%p5653_p10), %s294_s28, 2048, %s296_s5, %s5665_s16, %s7344_s18, %s7344_s18, %s7345_s19  }
  0x2e   : > { %s7362_s6 = scalar_select %p5675_p13, 1, 0 }
  0x2f   : > { %s342_s14 = scalar_lea.hbm %s7364_s3, %s5657_s9  ;;  %s5684_s5 = scalar_lea.sflag [#allocation9], %s280_s12 }
  0x30   : > { %7363 = sst [smem:[#allocation24_spill]] %s7362_s6  ;;  %s343_s1 = sshll.u32 %s342_s14, 4  ;;  %s344_s1 = int_to_ptr.hbm [resolvable:$true] %s343_s1 }
  0x31   : > { %4695 = dma.hbm_to_vmem [thread:$0]  (!%p5653_p10), %s344_s1, 2048, %s346_s4, %s5684_s5, %s7344_s18, %s7344_s18, %s7345_s19  }
  0x32   : > { %s267_s13 = scalar_lea.hbm %s7365_s0, %s5657_s9  ;;  %s259_s14 = scalar_lea.vmem [#allocation2], %s5648_s17 }
  0x33   : > { %s270_s26 = sshll.u32 %s259_s14, 4  ;;  %s268_s3 = sshll.u32 %s267_s13, 4  ;;  %s271_s26 = int_to_ptr.vmem [resolvable:$true] %s270_s26  ;;  %s269_s3 = int_to_ptr.hbm [resolvable:$true] %s268_s3 }
  0x34   : > { %s256_s12 = scalar_lea.sflag [#allocation3], %s5644_s15  ;;  %s317_s28 = scalar_lea.hbm %s7332_s2, %s5657_s9 }
  0x35   : > { %4686 = dma.hbm_to_vmem [thread:$0]  (!%p5653_p10), %s269_s3, 2048, %s271_s26, %s256_s12, %s7344_s18, %s7344_s18, %s7345_s19  }
  0x36   : > { %s309_s27 = scalar_lea.vmem [#allocation7], %s5648_s17  ;;  %s318_s0 = sshll.u32 %s317_s28, 4  ;;  %s319_s0 = int_to_ptr.hbm [resolvable:$true] %s318_s0 }
  0x37   : > { %s320_s6 = sshll.u32 %s309_s27, 4  ;;  %s4325_s13 = sshll.u32 %s5644_s15, 3  ;;  %s321_s6 = int_to_ptr.vmem [resolvable:$true] %s320_s6 }
  0x38   : > { %4692 = dma.hbm_to_vmem [thread:$0]  (!%p5653_p10), %s319_s0, 2048, %s321_s6, %s5665_s16, %s7344_s18, %s7344_s18, %s7345_s19  }
  0x39   : > { %s4326_s3 = sshll.u32 %s5500_s29, 3  ;;  %s4327_s17 = sshll.u32 %s5504_s30, 4 }
  0x3a   : > { %s359_s9 = scalar_lea.vmem [#allocation10], %s4325_s13  ;;  %s364_s26 = sadd.s32 %s4327_s17, %s4326_s3 }
  0x3b   : > { %s368_s14 = sshll.u32 %s359_s9, 4  ;;  %s7366_s1 = sld [smem:[#allocation28_spill]]  ;;  %s369_s14 = int_to_ptr.vmem [resolvable:$true] %s368_s14 }
  0x3c   : > { %s5512_s0 = smov 16   ;;  %s5513_s16 = smov 1  }
  0x3d   : > { %s43_s6 = sadd.s32 1, %s5504_s30  ;;  %s48_s27 = ssub.s32 %s5500_s29, %s7393_s10 }
  0x3e   : > { %s7395_s6 = smov (!%p5614_p0, %s43_s6), %s5504_s30  ;;  %s7367_s13 = sld [smem:[#allocation19_spill]] }
  0x3f   : > { %p66_p1 = scmp.eq.s32.totalorder %s5610_s8, 0  ;;  %p45_p4 = scmp.ge.s32.totalorder %s7395_s6, 2 }
  0x40   : > { %p197_p5 = scmp.ne.s32.totalorder %s5476_s23, %s5472_s22  ;;  %p203_p11 = scmp.ne.s32.totalorder %s5472_s22, %s5468_s21 }
  0x41   : > { %s365_s4 = scalar_lea.hbm %s7366_s1, %s364_s26  ;;  %p5735_p6 = por %p66_p1, %p65_p3 }
  0x42   : > { %s366_s28 = sshll.u32 %s365_s4, 4  ;;  %s7397_s6 = smov (%p45_p4, %s7395_s6), 0  ;;  %s367_s28 = int_to_ptr.hbm [resolvable:$true] %s366_s28 }
  0x43   : > { %4698 = dma.hbm_to_vmem [thread:$0]  (!%p5653_p10), %s367_s28, 128, %s369_s14, %s5684_s5, %s5512_s0, %s5512_s0, %s5513_s16  }
  0x44   : > { %s190_s11 = sadd.s32 1, %s5476_s23  ;;  %p5744_p10 = por %p203_p11, %p66_p1 }
  0x45   : > { %s47_s5 = ssub.s32 %s5504_s30, %s7397_s6  ;;  %p5752_p0 = por %p197_p5, %p60_p2 }
  0x46   : > { %s49_s9 = sor.u32 %s48_s27, %s47_s5  ;;  %p188_p3 = scmp.eq.s32.totalorder %s47_s5, 0 }
  0x47   : > { %p50_p12 = scmp.eq.s32.totalorder %s49_s9, 0  ;;  %s378_s21 = sand.u32 1, %s5476_s23  }
  0x48   : > { %s5758_s14 = scalar_select %p188_p3, %s5476_s23, %s190_s11  }
  0x49   : > { %s7371_s26 = sadd.s32 1, %s7367_s13  ;;  %s4328_s15 = sshll.u32 %s378_s21, 6 }
  0x4a   : > { %s7399_s13 = smov (!%p50_p12, %s7367_s13), %s7371_s26  ;;  %s4667_s12 = sshll.u32 %s5504_s30, 6 }
  0x4b   : > { %s7372_s28 = sld [smem:[#allocation29_spill]]  ;;  %s382_s18 = scalar_lea.vmem [#allocation11], %s4328_s15 }
  0x4c   : > { %s390_s19 = sshll.u32 %s382_s18, 4  ;;  %p4699_p2 = pnand %p4706_p9, %p5752_p0  ;;  %s391_s19 = int_to_ptr.vmem [resolvable:$true] %s390_s19 }
  0x4d   : > { %s379_s27 = scalar_lea.sflag [#allocation12], %s378_s21  ;;  %s7373_s11 = smov 8  }
  0x4e   : > { %s7374_s5 = smov 128   ;;  %s5779_s26 = sand.u32 (!%p5675_p13), 1, %s5484_s25  }
  0x4f   : > { %402 = sbr.rel (%p5675_p13) target bundleno = 6719 (0x1a3f), region = 44  ;;  %s5782_s18 = sshll.u32 (!%p5675_p13), %s5779_s26, 7 }
  0x50   : > { %s405_s17 = scalar_lea.sflag (!%p5675_p13), [#allocation3], %s5779_s26  ;;  %s5786_s15 = scalar_lea.vmem (!%p5675_p13), [#allocation2], %s5782_s18 }
  0x51   : > { %s387_s0 = scalar_lea.hbm %s7372_s28, %s4667_s12 }
  0x52   : > { %s388_s16 = sshll.u32 %s387_s0, 4  ;;  %s389_s16 = int_to_ptr.hbm [resolvable:$true] %s388_s16 }
  0x53   : > { %4701 = dma.hbm_to_vmem [thread:$0]  (!%p4699_p2), %s389_s16, 1024, %s391_s19, %s379_s27, %s7374_s5, %s7374_s5, %s7373_s11  }
  0x54   : > { %5447 = dma.done.wait (%p5735_p6), %s405_s17, 2048  }
  0x55   : > { %5449 = vsyncadd (%p5735_p6), %s405_s17, 4294965248  ;;  %s414_s19 = sand.u32 1, %s5610_s8   ;;  %s5794_s12 = scalar_lea.vmem [#allocation5], %s5782_s18 }
  0x56   : > { %s415_s21 = scalar_lea.sflag [#allocation6], %s414_s19 }
  0x57   : > { %5451 = dma.done.wait (%p5735_p6), %s415_s21, 4096  }
  0x58   : > { %5453 = vsyncadd (%p5735_p6), %s415_s21, 4294963200  ;;  %s5801_s1 = scalar_lea.vmem [#allocation7], %s5782_s18  ;;  %s435_s4 = scalar_lea.sflag [#allocation9], %s414_s19 }
  0x59   : > { %s5804_s28 = scalar_lea.vmem [#allocation8], %s5782_s18 }
  0x5a   : > { %5455 = dma.done.wait (%p5735_p6), %s435_s4, 2176  }
  0x5b   : > { %5457 = vsyncadd (%p5735_p6), %s435_s4, 4294965120  ;;  %s4336_s8 = sshll.u32 %s5779_s26, 3  ;;  %s454_s0 = sand.u32 1, %s5472_s22  }
  0x5c   : > { %s4337_s16 = sshll.u32 %s454_s0, 6  ;;  %s5812_s27 = scalar_lea.vmem [#allocation10], %s4336_s8 }
  0x5d   : > { %s455_s11 = scalar_lea.sflag [#allocation12], %s454_s0  ;;  %s5814_s5 = scalar_lea.vmem [#allocation11], %s4337_s16 }
  0x5e   : > { %5459 = dma.done.wait (%p5744_p10), %s455_s11, 1024  }
  0x5f   : > { %5461 = vsyncadd (%p5744_p10), %s455_s11, 4294966272  ;;  %vm531_vm0 = vcmask 261120   ;;  %v522_v0 = vld [vmem:[%s5794_s12 + $0x8] sm:$0xff]  ;;  %v521_v1 = vld [vmem:[%s5794_s12] sm:$0xff]  ;;  %s5514_s3 = smov 96   ;;  %s5515_s20 = smov 64  }
  0x60   : > { %v519_v2 = vld [vmem:[%s5786_s15] sm:$0xff]  ;;  %630 = vrot.lane.b32.xlu1 %v522_v0, %s5514_s3  ;;  %4339 = vmatpush.xpose.msk.msra.mxu0 %vm531_vm0, %v522_v0  ;;  %v524_v4 = vld [vmem:[%s5801_s1 + $0x8] sm:$0xff]  ;;  %s5516_s9 = smov 32   ;;  %v5844_v7 = vld [vmem:[%s5786_s15 + $0x10] sm:$0xff]  ;;  %vm569_vm1 = vcmask 130048   ;;  %vm952_vm2 = vcmask 523264  }
  0x61   : > { %628 = vrot.lane.b32.xlu0 %v521_v1, %s5514_s3  ;;  %624 = vrot.lane.b32.xlu2 %v519_v2, %s5514_s3  ;;  %v523_v3 = vld [vmem:[%s5801_s1] sm:$0xff]  ;;  %v520_v5 = vld [vmem:[%s5786_s15 + $0x8] sm:$0xff]  ;;  %vm955_vm3 = vcmask 785408   ;;  %s6374_s17 = scalar_lea.vmem [#allocation13], %s5782_s18  ;;  %s7376_s18 = sld [smem:[#allocation20_spill]] }
  0x62   : > { %612 = vmatpush.msra.mxu1 %v524_v4  ;;  %v4805_v6 = vpack.i.bf16 %v524_v4, %v523_v3  ;;  %v5850_v8 = vld [vmem:[%s5794_s12 + $0x18] sm:$0xff]  ;;  %v5856_v9 = vld [vmem:[%s5794_s12 + $0x10] sm:$0xff]  ;;  %v5889_v24 = vld [vmem:[%s5812_s27] ss:$0 sm:$0xff]  ;;  %s7378_s0 = sld [smem:[#allocation30_spill]] }
  0x63   : > { %v5861_v10 = vld [vmem:[%s5801_s1 + $0x10] sm:$0xff]  ;;  %v5864_v11 = vld [vmem:[%s5801_s1 + $0x18] sm:$0xff]  ;;  %v5918_v54 = vld [vmem:[%s5814_s5 + $0x10] sm:$0xff] }
  0x64   : > { %4340 = vmatpush.xpose.msk.msra.mxu0 %vm531_vm0, %v521_v1  ;;  %613 = vmatpush.msra.mxu1 %v523_v3  ;;  %v5868_v12 = vpack.i.bf16 %v5864_v11, %v5861_v10  ;;  %v5873_v15 = vld [vmem:[%s5786_s15 + $0x18] sm:$0xff]  ;;  %v5893_v29 = vld [vmem:[%s5814_s5] sm:$0xff]  ;;  %v5927_v62 = vld [vmem:[%s5814_s5 + $0x30] sm:$0xff] }
  0x65   : > { %v5900_v37 = vld [vmem:[%s5814_s5 + $0x8] sm:$0xff]  ;;  %v5936_v3 = vld [vmem:[%s5814_s5 + $0x38] sm:$0xff] }
  0x67   : > { %4341 = vmatmul.msk.f32.vlgmr.msra.gmra.mxu0 %vm531_vm0, %v519_v2  ;;  %s4668_s19 = sshll.u32 %s7376_s18, 4 }
  0x68   : > { %729 = vrot.lane.b32.xlu1 %v520_v5, %s5515_s20 }
  0x69   : > { %727 = vrot.lane.b32.xlu0 %v519_v2, %s5515_s20  ;;  %626 = vrot.lane.b32.xlu2 %v520_v5, %s5514_s3 }
  0x6f   : > { %4342 = vmatmul.msk.f32.gmra.mxu0 %vm531_vm0, %v520_v5 }
  0x70   : > { %830 = vrot.lane.b32.xlu1 %v520_v5, %s5516_s9 }
  0x71   : > { %828 = vrot.lane.b32.xlu0 %v519_v2, %s5516_s9  ;;  %4806 = vrot.lane.b32.xlu2 %v4805_v6, %s5514_s3 }
  0x78   : > { %1072 = vrot.lane.b32.xlu1 %v5873_v15, %s5514_s3 }
  0x79   : > { %832 = vrot.lane.b32.xlu0 %v521_v1, %s5516_s9  ;;  %731 = vrot.lane.b32.xlu2 %v521_v1, %s5515_s20 }
  0x80   : > { %1172 = vrot.lane.b32.xlu1 %v5844_v7, %s5515_s20 }
  0x81   : > { %4816 = vrot.lane.b32.xlu0 %v4805_v6, %s5516_s9  ;;  %733 = vrot.lane.b32.xlu2 %v522_v0, %s5515_s20 }
  0x89   : > { %1070 = vrot.lane.b32.xlu0 %v5844_v7, %s5514_s3  ;;  %4811 = vrot.lane.b32.xlu2 %v4805_v6, %s5515_s20 }
  0x91   : > { %1076 = vrot.lane.b32.xlu0 %v5850_v8, %s5514_s3  ;;  %834 = vrot.lane.b32.xlu2 %v522_v0, %s5516_s9 }
  0x99   : > { %1074 = vrot.lane.b32.xlu2 %v5856_v9, %s5514_s3  ;;  %4821 = vrot.lane.b32.xlu0 %v5868_v12, %s5514_s3 }
  0xa1   : > { %1174 = vrot.lane.b32.xlu2 %v5873_v15, %s5515_s20 }
  0xbb   : > { %v625_v13 = vpop.permute.xlu2 %624 }
  0xc3   : > { %v627_v14 = vpop.permute.xlu2 %626 }
  0xcb   : > { %v4807_v16 = vpop.permute.xlu2 %4806 }
  0xcc   : > { %v4809_v17 = vunpack.i.h.bf16 %v4807_v16  ;;  %v4808_v18 = vunpack.i.l.bf16 %v4807_v16 }
  0xce   : > { %715 = vmatpush.msra.mxu3 %v4809_v17 }
  0xd0   : > { %716 = vmatpush.msra.mxu3 %v4808_v18  ;;  %v5947_v18 = vld [vmem:[%s5814_s5 + $0x18] sm:$0xff] }
  0xd2   : > { %v631_v19 = vpop.permute.xlu1 %630 }
  0xd3   : > { %v629_v20 = vpop.permute.xlu0 %628  ;;  %v732_v21 = vpop.permute.xlu2 %731  ;;  %4347 = vmatpush.xpose.msk.msra.mxu2 %vm531_vm0, %v631_v19 }
  0xd7   : > { %4348 = vmatpush.xpose.msk.msra.mxu2 %vm531_vm0, %v629_v20 }
  0xda   : > { %4349 = vmatmul.msk.f32.vlgmr.msra.gmra.mxu2 %vm531_vm0, %v625_v13  ;;  %v5903_v39 = vpop.permute.xlu1 %729 }
  0xdb   : > { %v5884_v22 = vpop.permute.xlu0 %727  ;;  %v734_v23 = vpop.permute.xlu2 %733 }
  0xdc   : > { %4355 = vmatpush.xpose.msk.msrb.mxu1 %vm531_vm0, %v734_v23 }
  0xe0   : > { %4356 = vmatpush.xpose.msk.msrb.mxu1 %vm531_vm0, %v732_v21  ;;  %v5955_v21 = vld [vmem:[%s5812_s27 + $0x1] ss:$0 sm:$0xff] }
  0xe2   : > { %4350 = vmatmul.msk.f32.gmra.mxu2 %vm531_vm0, %v627_v14  ;;  %v831_v45 = vpop.permute.xlu1 %830 }
  0xe3   : > { %v829_v25 = vpop.permute.xlu0 %828  ;;  %v4812_v26 = vpop.permute.xlu2 %4811 }
  0xe4   : > { %v561_v27 = vpop.f32.mrf.mxu0  ;;  %v4814_v28 = vunpack.i.h.bf16 %v4812_v26  ;;  %v4813_v31 = vunpack.i.l.bf16 %v4812_v26 }
  0xe5   : > { %v562_v30 = vadd.f32 %v5889_v24, %v561_v27 }
  0xe6   : > { %816 = vmatpush.msrb.mxu3 %v4814_v28 }
  0xe7   : > { %v567_v32 = vadd.f32 %v562_v30, %v5893_v29 }
  0xe8   : > { %817 = vmatpush.msrb.mxu3 %v4813_v31 }
  0xe9   : > { %v570_v33 = vsel %vm569_vm1, %v567_v32, -inf }
  0xea   : > { %571 = vmax.xlane.f32.xlu0 %v570_v33  ;;  %v1073_v52 = vpop.permute.xlu1 %1072 }
  0xeb   : > { %v833_v34 = vpop.permute.xlu0 %832  ;;  %v835_v35 = vpop.permute.xlu2 %834 }
  0xec   : > { %4363 = vmatpush.xpose.msk.msrb.mxu0 %vm531_vm0, %v835_v35  ;;  %v564_v36 = vpop.f32.mrf.mxu0 }
  0xed   : > { %v565_v38 = vadd.f32 %v5889_v24, %v564_v36 }
  0xef   : > { %v5906_v40 = vadd.f32 %v565_v38, %v5900_v37 }
  0xf0   : > { %4364 = vmatpush.xpose.msk.msrb.mxu0 %vm531_vm0, %v833_v34 }
  0xf1   : > { %v573_v41 = vsel %vm569_vm1, %v5906_v40, -inf }
  0xf2   : > { %574 = vmax.xlane.f32.xlu0 %v573_v41  ;;  %v1173_v41 = vpop.permute.xlu1 %1172 }
  0xf3   : > { %v4817_v42 = vpop.permute.xlu0 %4816  ;;  %4365 = vmatmul.msk.f32.vlgmr.msrb.gmra.mxu0 %vm531_vm0, %v829_v25  ;;  %v1075_v48 = vpop.permute.xlu2 %1074 }
  0xf4   : > { %v4819_v43 = vunpack.i.h.bf16 %v4817_v42  ;;  %v4818_v44 = vunpack.i.l.bf16 %v4817_v42 }
  0xf6   : > { %917 = vmatpush.msrb.mxu2 %v4819_v43 }
  0xf8   : > { %918 = vmatpush.msrb.mxu2 %v4818_v44 }
  0xfb   : > { %v1071_v46 = vpop.permute.xlu0 %1070  ;;  %4366 = vmatmul.msk.f32.gmra.mxu0 %vm531_vm0, %v831_v45 }
 0x103   : > { %v1077_v47 = vpop.permute.xlu0 %1076 }
 0x104   : > { %4384 = vmatpush.xpose.msk.msra.mxu0 %vm531_vm0, %v1077_v47  ;;  %v1175_v47 = vpop.permute.xlu2 %1174 }
 0x108   : > { %4385 = vmatpush.xpose.msk.msra.mxu0 %vm531_vm0, %v1075_v48 }
 0x10b   : > { %4386 = vmatmul.msk.f32.vlgmr.msra.gmra.mxu0 %vm531_vm0, %v1071_v46  ;;  %v4822_v49 = vpop.permute.xlu0 %4821 }
 0x10c   : > { %v4824_v50 = vunpack.i.h.bf16 %v4822_v49  ;;  %v4823_v51 = vunpack.i.l.bf16 %v4822_v49 }
 0x10e   : > { %1161 = vmatpush.msra.mxu2 %v4824_v50 }
 0x110   : > { %1162 = vmatpush.msra.mxu2 %v4823_v51 }
 0x113   : > { %4387 = vmatmul.msk.f32.gmra.mxu0 %vm531_vm0, %v1073_v52 }
 0x15d   : > { %v657_v53 = vpop.f32.mrf.mxu2  ;;  %v572_v58 = vpop.xlane.xlu0 %571 }
 0x15e   : > { %v658_v55 = vadd.f32 %v5889_v24, %v657_v53  ;;  %v576_v59 = vsub.f32 %v567_v32, %v572_v58 }
 0x160   : > { %v5922_v56 = vadd.f32 %v5918_v54, %v658_v55  ;;  %v578_v60 = vmul.f32 1.442695, %v576_v59 }
 0x162   : > { %v665_v57 = vsel %vm569_vm1, %v5922_v56, -inf  ;;  %4933 = vpow2.f32 %v578_v60  ;;  %v6014_v60 = vld [vmem:[%s5786_s15 + $0x20] sm:$0xff] }
 0x163   : > { %666 = vmax.xlane.f32.xlu2 %v665_v57 }
 0x165   : > { %v660_v6 = vpop.f32.mrf.mxu2  ;;  %v575_v28 = vpop.xlane.xlu0 %574 }
 0x166   : > { %v661_v14 = vadd.f32 %v5889_v24, %v660_v6  ;;  %v577_v30 = vsub.f32 %v5906_v40, %v575_v28  ;;  %v6042_v6 = vld [vmem:[%s5786_s15 + $0x28] sm:$0xff] }
 0x168   : > { %v4934_v5 = vpop.eup %4933  ;;  %v5950_v19 = vadd.f32 %v5947_v18, %v661_v14  ;;  %v580_v33 = vmul.f32 1.442695, %v577_v30 }
 0x169   : > { %v582_v17 = vsel %vm569_vm1, %v4934_v5, 0.0 }
 0x16a   : > { %v668_v20 = vsel %vm569_vm1, %v5950_v19, -inf  ;;  %4935 = vpow2.f32 %v580_v33 }
 0x170   : > { %v861_v61 = vpop.f32.mrf.mxu0  ;;  %v4936_v36 = vpop.eup %4935 }
 0x171   : > { %v862_v63 = vadd.f32 %v5889_v24, %v861_v61  ;;  %v585_v38 = vsel %vm569_vm1, %v4936_v36, 0.0 }
 0x173   : > { %v5931_v0 = vadd.f32 %v5927_v62, %v862_v63 }
 0x175   : > { %v869_v1 = vsel %vm569_vm1, %v5931_v0, -inf }
 0x176   : > { %870 = vmax.xlane.f32.xlu1 %v869_v1 }
 0x178   : > { %v864_v2 = vpop.f32.mrf.mxu0 }
 0x179   : > { %v865_v4 = vadd.f32 %v5889_v24, %v864_v2 }
 0x17b   : > { %v5940_v13 = vadd.f32 %v5936_v3, %v865_v4  ;;  %4826 = vrot.lane.b32.xlu2 %v5868_v12, %s5515_s20  ;;  %v6033_v4 = vld [vmem:[%s5794_s12 + $0x20] sm:$0xff] }
 0x17d   : > { %v872_v16 = vsel %vm569_vm1, %v5940_v13, -inf }
 0x17e   : > { %873 = vmax.xlane.f32.xlu0 %v872_v16  ;;  %583 = vadd.xlane.f32.xlu1 %v582_v17 }
 0x183   : > { %1276 = vrot.lane.b32.xlu2 %v5856_v9, %s5516_s9 }
 0x186   : > { %669 = vmax.xlane.f32.xlu0 %v668_v20 }
 0x188   : > { %v1103_v23 = vpop.f32.mrf.mxu0 }
 0x189   : > { %v1104_v25 = vadd.f32 %v5955_v21, %v1103_v23 }
 0x18b   : > { %v5959_v26 = vadd.f32 %v5918_v54, %v1104_v25 }
 0x18d   : > { %v1111_v27 = vsel %vm569_vm1, %v5959_v26, -inf }
 0x18e   : > { %1112 = vmax.xlane.f32.xlu0 %v1111_v27 }
 0x190   : > { %v1106_v31 = vpop.f32.mrf.mxu0 }
 0x191   : > { %v1107_v32 = vadd.f32 %v5955_v21, %v1106_v31 }
 0x193   : > { %v5980_v34 = vadd.f32 %v5947_v18, %v1107_v32 }
 0x195   : > { %v1114_v35 = vsel %vm569_vm1, %v5980_v34, -inf }
 0x197   : > { %1178 = vrot.lane.b32.xlu1 %v5850_v8, %s5515_s20 }
 0x19f   : > { %1272 = vrot.lane.b32.xlu1 %v5844_v7, %s5516_s9 }
 0x1a2   : > { %1176 = vrot.lane.b32.xlu0 %v5856_v9, %s5515_s20 }
 0x1aa   : > { %1274 = vrot.lane.b32.xlu0 %v5873_v15, %s5516_s9 }
 0x1ac   : > { %1115 = vmax.xlane.f32.xlu2 %v1114_v35 }
 0x1b2   : > { %1278 = vrot.lane.b32.xlu0 %v5850_v8, %s5516_s9 }
 0x1ba   : > { %1514 = vrot.lane.b32.xlu0 %v6014_v60, %s5514_s3 }
 0x1c9   : > { %586 = vadd.xlane.f32.xlu1 %v585_v38 }
 0x1d6   : > { %v667_v49 = vpop.xlane.xlu2 %666 }
 0x1d7   : > { %v671_v14 = vsub.f32 %v5922_v56, %v667_v49 }
 0x1d9   : > { %v673_v16 = vmul.f32 1.442695, %v671_v14 }
 0x1de   : > { %v5994_v52 = vpop.permute.xlu2 %4826 }
 0x1e6   : > { %v1277_v57 = vpop.permute.xlu2 %1276 }
 0x1e9   : > { %v5985_v42 = vpop.xlane.xlu1 %870 }
 0x1ea   : > { %v875_v25 = vsub.f32 %v5931_v0, %v5985_v42 }
 0x1f1   : > { %v584_v40 = vpop.xlane.xlu1 %583  ;;  %v874_v44 = vpop.xlane.xlu0 %873 }
 0x1f2   : > { %4937 = vrcp.f32 %v584_v40  ;;  %v876_v17 = vsub.f32 %v5940_v13, %v874_v44 }
 0x1f4   : > { %v879_v20 = vmul.f32 1.442695, %v876_v17 }
 0x1f8   : > { %v4938_v43 = vpop.eup %4937 }
 0x1f9   : > { %v590_v45 = vmul.f32 %v4938_v43, %v4934_v5  ;;  %v5992_v46 = vpop.xlane.xlu0 %669 }
 0x1fa   : > { %v672_v56 = vsub.f32 %v5950_v19, %v5992_v46 }
 0x1fb   : > { %4343 = vmatmul.msk.f32.vlgmr.msra.gmra.mxu1 %vm569_vm1, %v590_v45 }
 0x1fc   : > { %4376 = vmatpush.xpose.msk.msra.mxu1 %vm531_vm0, %v5850_v8  ;;  %v675_v32 = vmul.f32 1.442695, %v672_v56 }
 0x200   : > { %4377 = vmatpush.xpose.msk.msra.mxu1 %vm531_vm0, %v5856_v9 }
 0x201   : > { %v1113_v48 = vpop.xlane.xlu0 %1112 }
 0x202   : > { %v1117_v27 = vsub.f32 %v5959_v26, %v1113_v48 }
 0x204   : > { %v1119_v30 = vmul.f32 1.442695, %v1117_v27 }
 0x209   : > { %v1179_v53 = vpop.permute.xlu1 %1178 }
 0x211   : > { %v1273_v8 = vpop.permute.xlu1 %1272 }
 0x214   : > { %v1177_v50 = vpop.permute.xlu0 %1176 }
 0x21c   : > { %v1275_v51 = vpop.permute.xlu0 %1274 }
 0x21f   : > { %v1116_v0 = vpop.xlane.xlu2 %1115 }
 0x220   : > { %v1118_v35 = vsub.f32 %v5980_v34, %v1116_v0 }
 0x222   : > { %v1121_v19 = vmul.f32 1.442695, %v1118_v35 }
 0x224   : > { %v1279_v55 = vpop.permute.xlu0 %1278 }
 0x225   : > { %4400 = vmatpush.xpose.msk.msrb.mxu0 %vm531_vm0, %v1279_v55 }
 0x229   : > { %4401 = vmatpush.xpose.msk.msrb.mxu0 %vm531_vm0, %v1277_v57 }
 0x22c   : > { %4402 = vmatmul.msk.f32.vlgmr.msrb.gmra.mxu0 %vm531_vm0, %v1273_v8  ;;  %v1515_v44 = vpop.permute.xlu0 %1514 }
 0x234   : > { %4403 = vmatmul.msk.f32.gmra.mxu0 %vm531_vm0, %v1275_v51 }
 0x23c   : > { %v587_v9 = vpop.xlane.xlu1 %586 }
 0x23d   : > { %4939 = vrcp.f32 %v587_v9 }
 0x23e   : > { %4941 = vpow2.f32 %v673_v16 }
 0x23f   : > { %4943 = vpow2.f32 %v879_v20 }
 0x243   : > { %v4940_v58 = vpop.eup %4939 }
 0x244   : > { %v591_v59 = vmul.f32 %v4940_v58, %v4936_v36  ;;  %v4942_v23 = vpop.eup %4941 }
 0x245   : > { %v677_v28 = vsel %vm569_vm1, %v4942_v23, 0.0  ;;  %v6058_v31 = vpop.eup %4943 }
 0x246   : > { %4344 = vmatmul.msk.f32.gmra.mxu1 %vm569_vm1, %v591_v59  ;;  %v884_v13 = vsel %vm569_vm1, %v6058_v31, 0.0 }
 0x24e   : > { %4357 = vmatmul.msk.f32.vlgmr.msrb.gmra.mxu1 %vm531_vm0, %v5884_v22  ;;  %v6019_v22 = vld [vmem:[%s5794_s12 + $0x28] sm:$0xff] }
 0x24f   : > { %4392 = vmatpush.xpose.msk.msrb.mxu1 %vm531_vm0, %v1179_v53  ;;  %1520 = vrot.lane.b32.xlu0 %v6019_v22, %s5514_s3 }
 0x253   : > { %4393 = vmatpush.xpose.msk.msrb.mxu1 %vm531_vm0, %v1177_v50 }
 0x256   : > { %4358 = vmatmul.msk.f32.gmra.mxu1 %vm531_vm0, %v5903_v39 }
 0x25e   : > { %4378 = vmatmul.msk.f32.vlgmr.msra.gmra.mxu1 %vm531_vm0, %v5844_v7 }
 0x25f   : > { %4417 = vmatpush.xpose.msk.msra.mxu1 %vm531_vm0, %v6019_v22 }
 0x263   : > { %4418 = vmatpush.xpose.msk.msra.mxu1 %vm531_vm0, %v6033_v4 }
 0x266   : > { %4379 = vmatmul.msk.f32.gmra.mxu1 %vm531_vm0, %v5873_v15 }
 0x26e   : > { %4394 = vmatmul.msk.f32.vlgmr.msrb.gmra.mxu1 %vm531_vm0, %v1173_v41 }
 0x276   : > { %4395 = vmatmul.msk.f32.gmra.mxu1 %vm531_vm0, %v1175_v47 }
 0x278   : > { %v6086_v16 = vpop.f32.mrf.mxu1 }
 0x27e   : > { %4419 = vmatmul.msk.f32.vlgmr.msra.gmra.mxu1 %vm531_vm0, %v6014_v60 }
 0x286   : > { %4420 = vmatmul.msk.f32.gmra.mxu1 %vm531_vm0, %v6042_v6 }
 0x2a9   : > { %v1305_v7 = vpop.f32.mrf.mxu0 }
 0x2aa   : > { %v1306_v15 = vadd.f32 %v5955_v21, %v1305_v7 }
 0x2ac   : > { %v1311_v39 = vadd.f32 %v5927_v62, %v1306_v15 }
 0x2ae   : > { %v1313_v61 = vsel %vm569_vm1, %v1311_v39, -inf }
 0x2af   : > { %1314 = vmax.xlane.f32.xlu1 %v1313_v61 }
 0x2b1   : > { %v1308_v63 = vpop.f32.mrf.mxu0 }
 0x2b2   : > { %v1309_v1 = vadd.f32 %v5955_v21, %v1308_v63 }
 0x2b4   : > { %v6030_v2 = vadd.f32 %v5936_v3, %v1309_v1 }
 0x2b6   : > { %v1316_v5 = vsel %vm569_vm1, %v6030_v2, -inf }
 0x2b7   : > { %1317 = vmax.xlane.f32.xlu2 %v1316_v5 }
 0x2c1   : > { %v1521_v45 = vpop.permute.xlu0 %1520 }
 0x2c2   : > { %4425 = vmatpush.xpose.msk.msra.mxu0 %vm531_vm0, %v1521_v45 }
 0x2c8   : > { %1516 = vrot.lane.b32.xlu1 %v6042_v6, %s5514_s3 }
 0x2cf   : > { %4831 = vrot.lane.b32.xlu2 %v5868_v12, %s5516_s9  ;;  %v877_v12 = vmul.f32 1.442695, %v875_v25  ;;  %v6090_v25 = vpop.f32.mrf.mxu1 }
 0x2d1   : > { %4945 = vpow2.f32 %v877_v12 }
 0x2d2   : > { %4947 = vpow2.f32 %v1119_v30 }
 0x2d3   : > { %4949 = vpow2.f32 %v675_v32 }
 0x2d4   : > { %4951 = vpow2.f32 %v1121_v19 }
 0x2d7   : > { %1518 = vrot.lane.b32.xlu2 %v6033_v4, %s5514_s3  ;;  %v4946_v33 = vpop.eup %4945  ;;  %v6093_v12 = vpop.f32.mrf.mxu1 }
 0x2d8   : > { %v6064_v26 = vpop.eup %4947  ;;  %v881_v36 = vsel %vm569_vm1, %v4946_v33, 0.0 }
 0x2d9   : > { %v1123_v38 = vsel %vm569_vm1, %v6064_v26, 0.0  ;;  %v4950_v41 = vpop.eup %4949 }
 0x2da   : > { %v680_v42 = vsel %vm569_vm1, %v4950_v41, 0.0  ;;  %v4952_v40 = vpop.eup %4951 }
 0x2db   : > { %v1126_v43 = vsel %vm569_vm1, %v4952_v40, 0.0 }
 0x2f2   : > { %678 = vadd.xlane.f32.xlu1 %v677_v28 }
 0x2fa   : > { %885 = vadd.xlane.f32.xlu1 %v884_v13 }
 0x300   : > { %882 = vadd.xlane.f32.xlu2 %v881_v36 }
 0x302   : > { %1124 = vadd.xlane.f32.xlu1 %v1123_v38 }
 0x308   : > { %681 = vadd.xlane.f32.xlu2 %v680_v42 }
 0x310   : > { %1127 = vadd.xlane.f32.xlu2 %v1126_v43 }
 0x322   : > { %v1315_v34 = vpop.xlane.xlu1 %1314 }
 0x323   : > { %v1319_v46 = vsub.f32 %v1311_v39, %v1315_v34 }
 0x325   : > { %v1321_v47 = vmul.f32 1.442695, %v1319_v46 }
 0x327   : > { %4953 = vpow2.f32 %v1321_v47 }
 0x32a   : > { %v6073_v48 = vpop.xlane.xlu2 %1317 }
 0x32b   : > { %v1320_v38 = vsub.f32 %v6030_v2, %v6073_v48 }
 0x32d   : > { %v4954_v49 = vpop.eup %4953  ;;  %v1323_v43 = vmul.f32 1.442695, %v1320_v38 }
 0x32e   : > { %v1325_v50 = vsel %vm569_vm1, %v4954_v49, 0.0 }
 0x32f   : > { %1326 = vadd.xlane.f32.xlu0 %v1325_v50 }
 0x332   : > { %v4832_v51 = vpop.permute.xlu2 %4831 }
 0x333   : > { %v4834_v61 = vunpack.i.h.bf16 %v4832_v51  ;;  %v4833_v63 = vunpack.i.l.bf16 %v4832_v51 }
 0x33a   : > { %v1519_v53 = vpop.permute.xlu2 %1518  ;;  %v1517_v55 = vpop.permute.xlu1 %1516 }
 0x33b   : > { %4426 = vmatpush.xpose.msk.msra.mxu0 %vm531_vm0, %v1519_v53 }
 0x33e   : > { %4427 = vmatmul.msk.f32.vlgmr.msra.gmra.mxu0 %vm531_vm0, %v1515_v44 }
 0x346   : > { %4428 = vmatmul.msk.f32.gmra.mxu0 %vm531_vm0, %v1517_v55 }
 0x365   : > { %v679_v57 = vpop.xlane.xlu1 %678 }
 0x366   : > { %4955 = vrcp.f32 %v679_v57 }
 0x36c   : > { %v4956_v8 = vpop.eup %4955 }
 0x36d   : > { %v685_v9 = vmul.f32 %v4956_v8, %v4942_v23  ;;  %v886_v59 = vpop.xlane.xlu1 %885 }
 0x36f   : > { %4351 = vmatmul.msk.f32.vlgmr.msra.gmra.mxu3 %vm569_vm1, %v685_v9 }
 0x370   : > { %1059 = vmatpush.msra.mxu3 %v5864_v11 }
 0x372   : > { %1060 = vmatpush.msra.mxu3 %v5861_v10 }
 0x373   : > { %v883_v58 = vpop.xlane.xlu2 %882 }
 0x374   : > { %4957 = vrcp.f32 %v883_v58 }
 0x375   : > { %4959 = vrcp.f32 %v886_v59  ;;  %v1125_v1 = vpop.xlane.xlu1 %1124 }
 0x37a   : > { %v4958_v7 = vpop.eup %4957 }
 0x37b   : > { %v682_v15 = vpop.xlane.xlu2 %681  ;;  %v889_v39 = vmul.f32 %v4958_v7, %v4946_v33  ;;  %v4960_v5 = vpop.eup %4959  ;;  %v6099_v33 = vld [vmem:[%s5812_s27 + $0x2] ss:$0 sm:$0xff] }
 0x37c   : > { %4961 = vrcp.f32 %v682_v15  ;;  %v890_v10 = vmul.f32 %v4960_v5, %v6058_v31  ;;  %v763_v31 = vpop.f32.mrf.mxu1  ;;  %v6140_v7 = vld [vmem:[%s5801_s1 + $0x20] sm:$0xff]  ;;  %v6143_v15 = vld [vmem:[%s5801_s1 + $0x28] sm:$0xff] }
 0x37d   : > { %4367 = vmatmul.msk.f32.vlgmr.msrb.gmra.mxu2 %vm569_vm1, %v889_v39  ;;  %4963 = vrcp.f32 %v1125_v1  ;;  %v764_v19 = vadd.f32 %v5889_v24, %v763_v31  ;;  %v6147_v39 = vpack.i.bf16 %v6143_v15, %v6140_v7 }
 0x37e   : > { %1361 = vmatpush.msrb.mxu2 %v4834_v61 }
 0x380   : > { %1362 = vmatpush.msrb.mxu2 %v4833_v63 }
 0x382   : > { %v4962_v14 = vpop.eup %4961 }
 0x383   : > { %v686_v11 = vmul.f32 %v4962_v14, %v4950_v41  ;;  %v1128_v17 = vpop.xlane.xlu2 %1127  ;;  %v4964_v20 = vpop.eup %4963 }
 0x384   : > { %4965 = vrcp.f32 %v1128_v17  ;;  %v1131_v23 = vmul.f32 %v4964_v20, %v6064_v26  ;;  %v1009_v32 = vpop.f32.mrf.mxu1 }
 0x385   : > { %4352 = vmatmul.msk.f32.gmra.mxu3 %vm569_vm1, %v686_v11  ;;  %4368 = vmatmul.msk.f32.gmra.mxu2 %vm569_vm1, %v890_v10 }
 0x38a   : > { %v4966_v27 = vpop.eup %4965 }
 0x38b   : > { %v1132_v28 = vmul.f32 %v4966_v27, %v4952_v40  ;;  %v6110_v40 = vld [vmem:[%s5814_s5 + $0x28] sm:$0xff] }
 0x38c   : > { %v6096_v0 = vpop.f32.mrf.mxu1  ;;  %v6114_v34 = vadd.f32 %v6110_v40, %v764_v19 }
 0x38d   : > { %4388 = vmatmul.msk.f32.vlgmr.msra.gmra.mxu2 %vm569_vm1, %v1131_v23 }
 0x38e   : > { %v771_v47 = vsel %vm569_vm1, %v6114_v34, -inf }
 0x394   : > { %v6107_v42 = vpop.f32.mrf.mxu1 }
 0x395   : > { %4389 = vmatmul.msk.f32.gmra.mxu2 %vm569_vm1, %v1132_v28 }
 0x3a2   : > { %v1327_v30 = vpop.xlane.xlu0 %1326 }
 0x3a3   : > { %4967 = vrcp.f32 %v1327_v30  ;;  %v761_v30 = vadd.f32 %v5889_v24, %v6093_v12 }
 0x3a4   : > { %4969 = vpow2.f32 %v1323_v43 }
 0x3a9   : > { %v4968_v56 = vpop.eup %4967 }
 0x3aa   : > { %v1333_v13 = vmul.f32 %v4968_v56, %v4954_v49  ;;  %v1208_v49 = vpop.f32.mrf.mxu1  ;;  %v4970_v50 = vpop.eup %4969  ;;  %v6160_v56 = vld [vmem:[%s5814_s5 + $0x20] sm:$0xff] }
 0x3ab   : > { %v1328_v53 = vsel %vm569_vm1, %v4970_v50, 0.0 }
 0x3ac   : > { %4404 = vmatmul.msk.f32.vlgmr.msrb.gmra.mxu2 %vm569_vm1, %v1333_v13 }
 0x3b2   : > { %v1453_v55 = vpop.f32.mrf.mxu1 }
 0x3b3   : > { %v1454_v8 = vadd.f32 %v6099_v33, %v1453_v55 }
 0x3b5   : > { %v6135_v58 = vadd.f32 %v1454_v8, %v5893_v29 }
 0x3b7   : > { %v1461_v59 = vsel %vm569_vm1, %v6135_v58, -inf }
 0x3bb   : > { %v1547_v26 = vpop.f32.mrf.mxu0 }
 0x3bc   : > { %v1548_v35 = vadd.f32 %v6099_v33, %v1547_v26 }
 0x3be   : > { %v1553_v36 = vadd.f32 %v5918_v54, %v1548_v35  ;;  %v1010_v54 = vadd.f32 %v5955_v21, %v1009_v32  ;;  %v766_v32 = vadd.f32 %v6160_v56, %v761_v30  ;;  %v1013_v35 = vadd.f32 %v5955_v21, %v6096_v0  ;;  %v1456_v0 = vpop.f32.mrf.mxu1 }
 0x3c0   : > { %v1555_v41 = vsel %vm569_vm1, %v1553_v36, -inf  ;;  %v6122_v48 = vadd.f32 %v1010_v54, %v5893_v29  ;;  %v768_v38 = vsel %vm569_vm1, %v766_v32, -inf  ;;  %v6168_v19 = vadd.f32 %v1013_v35, %v5900_v37 }
 0x3c1   : > { %1556 = vmax.xlane.f32.xlu2 %v1555_v41  ;;  %v1206_v41 = vadd.f32 %v5955_v21, %v6107_v42 }
 0x3c2   : > { %v1017_v51 = vsel %vm569_vm1, %v6122_v48, -inf  ;;  %v1020_v43 = vsel %vm569_vm1, %v6168_v19, -inf }
 0x3c3   : > { %v1550_v44 = vpop.f32.mrf.mxu0 }
 0x3c4   : > { %v1551_v45 = vadd.f32 %v6099_v33, %v1550_v44  ;;  %v6176_v44 = vadd.f32 %v6160_v56, %v1206_v41 }
 0x3c6   : > { %v1554_v2 = vadd.f32 %v5947_v18, %v1551_v45  ;;  %v1209_v18 = vadd.f32 %v5955_v21, %v1208_v49  ;;  %v1457_v45 = vadd.f32 %v6099_v33, %v1456_v0  ;;  %v1213_v54 = vsel %vm569_vm1, %v6176_v44, -inf }
 0x3c8   : > { %v1558_v46 = vsel %vm569_vm1, %v1554_v2, -inf  ;;  %v6129_v57 = vadd.f32 %v6110_v40, %v1209_v18 }
 0x3c9   : > { %1559 = vmax.xlane.f32.xlu1 %v1558_v46  ;;  %772 = vmax.xlane.f32.xlu2 %v771_v47 }
 0x3ca   : > { %v1216_v9 = vsel %vm569_vm1, %v6129_v57, -inf }
 0x3d1   : > { %1329 = vadd.xlane.f32.xlu1 %v1328_v53  ;;  %1018 = vmax.xlane.f32.xlu2 %v1017_v51 }
 0x3d9   : > { %1217 = vmax.xlane.f32.xlu2 %v1216_v9 }
 0x3e1   : > { %1462 = vmax.xlane.f32.xlu2 %v1461_v59 }
 0x3ea   : > { %4836 = vrot.lane.b32.xlu1 %v6147_v39, %s5514_s3 }
 0x3f2   : > { %1622 = vrot.lane.b32.xlu1 %v6019_v22, %s5515_s20  ;;  %v718_v61 = vpop.f32.mrf.mxu3 }
 0x400   : > { %v920_v29 = vpop.f32.mrf.mxu2 }
 0x408   : > { %v923_v63 = vpop.f32.mrf.mxu2  ;;  %v721_v1 = vpop.f32.mrf.mxu3 }
 0x409   : > { %946 = vrot.lane.b32.xlu1 %v923_v63, %s5514_s3 }
 0x410   : > { %v1164_v5 = vpop.f32.mrf.mxu2 }
 0x411   : > { %930 = vrot.lane.b32.xlu1 %v721_v1, %s5516_s9 }
 0x418   : > { %v1167_v14 = vpop.f32.mrf.mxu2 }
 0x419   : > { %1374 = vrot.lane.b32.xlu1 %v1167_v14, %s5516_s9 }
 0x434   : > { %v1557_v11 = vpop.xlane.xlu2 %1556 }
 0x435   : > { %v1561_v10 = vsub.f32 %v1553_v36, %v1557_v11 }
 0x437   : > { %v1563_v17 = vmul.f32 1.442695, %v1561_v10 }
 0x439   : > { %4971 = vpow2.f32 %v1563_v17 }
 0x43c   : > { %v1560_v20 = vpop.xlane.xlu1 %1559 }
 0x43d   : > { %v1562_v23 = vsub.f32 %v1554_v2, %v1560_v20  ;;  %v6182_v2 = vadd.f32 %v1457_v45, %v5900_v37  ;;  %v1364_v37 = vpop.f32.mrf.mxu2 }
 0x43f   : > { %v4972_v27 = vpop.eup %4971  ;;  %v1565_v28 = vmul.f32 1.442695, %v1562_v23  ;;  %v1464_v21 = vsel %vm569_vm1, %v6182_v2, -inf }
 0x440   : > { %v1567_v31 = vsel %vm569_vm1, %v4972_v27, 0.0 }
 0x441   : > { %4973 = vpow2.f32 %v1565_v28  ;;  %1568 = vadd.xlane.f32.xlu0 %v1567_v31 }
 0x444   : > { %v1330_v13 = vpop.xlane.xlu1 %1329 }
 0x445   : > { %4975 = vrcp.f32 %v1330_v13 }
 0x447   : > { %v4974_v26 = vpop.eup %4973 }
 0x448   : > { %v1570_v36 = vsel %vm569_vm1, %v4974_v26, 0.0 }
 0x449   : > { %1571 = vadd.xlane.f32.xlu2 %v1570_v36  ;;  %769 = vmax.xlane.f32.xlu0 %v768_v38 }
 0x44b   : > { %v4976_v24 = vpop.eup %4975 }
 0x44c   : > { %v1334_v12 = vmul.f32 %v4976_v24, %v4970_v50  ;;  %v773_v50 = vpop.xlane.xlu2 %772 }
 0x44d   : > { %v775_v18 = vsub.f32 %v6114_v34, %v773_v50 }
 0x44e   : > { %4405 = vmatmul.msk.f32.gmra.mxu2 %vm569_vm1, %v1334_v12 }
 0x44f   : > { %v778_v55 = vmul.f32 1.442695, %v775_v18  ;;  %v4829_v18 = vunpack.i.h.bf16 %v5994_v52 }
 0x451   : > { %1021 = vmax.xlane.f32.xlu0 %v1020_v43  ;;  %4977 = vpow2.f32 %v778_v55  ;;  %v4828_v55 = vunpack.i.l.bf16 %v5994_v52 }
 0x454   : > { %v1019_v51 = vpop.xlane.xlu2 %1018 }
 0x457   : > { %v6200_v59 = vpop.eup %4977 }
 0x458   : > { %v783_v34 = vsel %vm569_vm1, %v6200_v59, 0.0 }
 0x459   : > { %1214 = vmax.xlane.f32.xlu0 %v1213_v54 }
 0x45c   : > { %v4837_v46 = vpop.permute.xlu1 %4836  ;;  %v6198_v53 = vpop.xlane.xlu2 %1217 }
 0x45d   : > { %v4839_v47 = vunpack.i.h.bf16 %v4837_v46  ;;  %v4838_v42 = vunpack.i.l.bf16 %v4837_v46 }
 0x45f   : > { %1605 = vmatpush.msra.mxu2 %v4839_v47 }
 0x461   : > { %1618 = vrot.lane.b32.xlu2 %v6042_v6, %s5515_s20  ;;  %1465 = vmax.xlane.f32.xlu0 %v1464_v21 }
 0x462   : > { %1606 = vmatpush.msra.mxu2 %v4838_v42 }
 0x464   : > { %v1623_v49 = vpop.permute.xlu1 %1622  ;;  %v1463_v8 = vpop.xlane.xlu2 %1462 }
 0x465   : > { %4433 = vmatpush.xpose.msk.msrb.mxu1 %vm531_vm0, %v1623_v49  ;;  %v1467_v12 = vsub.f32 %v6135_v58, %v1463_v8 }
 0x467   : > { %v1469_v43 = vmul.f32 1.442695, %v1467_v12 }
 0x469   : > { %928 = vrot.lane.b32.xlu2 %v718_v61, %s5516_s9 }
 0x475   : > { %1616 = vrot.lane.b32.xlu0 %v6014_v60, %s5515_s20 }
 0x47b   : > { %v6226_v58 = vpop.permute.xlu1 %946 }
 0x47d   : > { %1620 = vrot.lane.b32.xlu0 %v6033_v4, %s5515_s20 }
 0x483   : > { %v6230_v46 = vpop.permute.xlu1 %930 }
 0x485   : > { %944 = vrot.lane.b32.xlu0 %v920_v29, %s5514_s3 }
 0x48b   : > { %v6234_v21 = vpop.permute.xlu1 %1374 }
 0x48d   : > { %1372 = vrot.lane.b32.xlu0 %v1164_v5, %s5516_s9 }
 0x495   : > { %1388 = vrot.lane.b32.xlu0 %v1364_v37, %s5514_s3 }
 0x4b4   : > { %v1569_v9 = vpop.xlane.xlu0 %1568 }
 0x4b5   : > { %4979 = vrcp.f32 %v1569_v9 }
 0x4bb   : > { %v4980_v61 = vpop.eup %4979 }
 0x4bc   : > { %v1575_v29 = vmul.f32 %v4980_v61, %v4972_v27  ;;  %v1572_v63 = vpop.xlane.xlu2 %1571  ;;  %v770_v1 = vpop.xlane.xlu0 %769 }
 0x4bd   : > { %4981 = vrcp.f32 %v1572_v63  ;;  %v774_v5 = vsub.f32 %v766_v32, %v770_v1  ;;  %v1023_v32 = vsub.f32 %v6122_v48, %v1019_v51 }
 0x4be   : > { %4429 = vmatmul.msk.f32.vlgmr.msra.gmra.mxu2 %vm569_vm1, %v1575_v29 }
 0x4bf   : > { %v776_v14 = vmul.f32 1.442695, %v774_v5  ;;  %784 = vadd.xlane.f32.xlu0 %v783_v34  ;;  %v1025_v35 = vmul.f32 1.442695, %v1023_v32  ;;  %v1220_v5 = vsub.f32 %v6129_v57, %v6198_v53 }
 0x4c1   : > { %4983 = vpow2.f32 %v776_v14 }
 0x4c2   : > { %4985 = vpow2.f32 %v1025_v35 }
 0x4c3   : > { %v4982_v11 = vpop.eup %4981 }
 0x4c4   : > { %v1576_v10 = vmul.f32 %v4982_v11, %v4974_v26  ;;  %v1022_v23 = vpop.xlane.xlu0 %1021  ;;  %v1619_v26 = vpop.permute.xlu2 %1618 }
 0x4c5   : > { %v1024_v61 = vsub.f32 %v6168_v19, %v1022_v23 }
 0x4c6   : > { %4430 = vmatmul.msk.f32.gmra.mxu2 %vm569_vm1, %v1576_v10 }
 0x4c7   : > { %v4984_v17 = vpop.eup %4983  ;;  %v1027_v29 = vmul.f32 1.442695, %v1024_v61 }
 0x4c8   : > { %v780_v20 = vsel %vm569_vm1, %v4984_v17, 0.0  ;;  %v6213_v24 = vpop.eup %4985 }
 0x4c9   : > { %781 = vadd.xlane.f32.xlu1 %v780_v20  ;;  %v1029_v41 = vsel %vm569_vm1, %v6213_v24, 0.0 }
 0x4cc   : > { %v1215_v27 = vpop.xlane.xlu0 %1214  ;;  %v6266_v32 = vpop.permute.xlu2 %928 }
 0x4cd   : > { %v1219_v36 = vsub.f32 %v6176_v44, %v1215_v27 }
 0x4cf   : > { %v1221_v38 = vmul.f32 1.442695, %v1219_v36 }
 0x4d1   : > { %v1367_v30 = vpop.f32.mrf.mxu2  ;;  %4987 = vpow2.f32 %v1221_v38 }
 0x4d2   : > { %4989 = vpow2.f32 %v1469_v43 }
 0x4d4   : > { %v1466_v28 = vpop.xlane.xlu0 %1465 }
 0x4d5   : > { %v1468_v52 = vsub.f32 %v6182_v2, %v1466_v28 }
 0x4d7   : > { %v6218_v0 = vpop.eup %4987  ;;  %v1471_v10 = vmul.f32 1.442695, %v1468_v52 }
 0x4d8   : > { %v1225_v48 = vsel %vm569_vm1, %v6218_v0, 0.0  ;;  %v6222_v45 = vpop.eup %4989 }
 0x4d9   : > { %v1473_v44 = vsel %vm569_vm1, %v6222_v45, 0.0 }
 0x4e2   : > { %1390 = vrot.lane.b32.xlu1 %v1367_v30, %s5514_s3 }
 0x4e7   : > { %v1617_v31 = vpop.permute.xlu0 %1616 }
 0x4ef   : > { %v1621_v13 = vpop.permute.xlu0 %1620 }
 0x4f0   : > { %4434 = vmatpush.xpose.msk.msrb.mxu1 %vm531_vm0, %v1621_v13 }
 0x4f3   : > { %4435 = vmatmul.msk.f32.vlgmr.msrb.gmra.mxu1 %vm531_vm0, %v1617_v31 }
 0x4f7   : > { %v6228_v54 = vpop.permute.xlu0 %944 }
 0x4fb   : > { %4436 = vmatmul.msk.f32.gmra.mxu1 %vm531_vm0, %v1619_v26 }
 0x4ff   : > { %v6232_v47 = vpop.permute.xlu0 %1372 }
 0x507   : > { %v6236_v42 = vpop.permute.xlu0 %1388 }
 0x50c   : > { %1030 = vadd.xlane.f32.xlu1 %v1029_v41 }
 0x514   : > { %1226 = vadd.xlane.f32.xlu1 %v1225_v48 }
 0x51c   : > { %1474 = vadd.xlane.f32.xlu1 %v1473_v44 }
 0x532   : > { %v785_v37 = vpop.xlane.xlu0 %784 }
 0x53c   : > { %v782_v49 = vpop.xlane.xlu1 %781 }
 0x53d   : > { %4991 = vrcp.f32 %v782_v49 }
 0x53e   : > { %4993 = vrcp.f32 %v785_v37 }
 0x53f   : > { %4995 = vpow2.f32 %v1027_v29 }
 0x543   : > { %v4992_v50 = vpop.eup %4991 }
 0x544   : > { %v788_v51 = vmul.f32 %v4992_v50, %v4984_v17  ;;  %v4994_v8 = vpop.eup %4993 }
 0x545   : > { %v789_v9 = vmul.f32 %v4994_v8, %v6200_v59  ;;  %v1223_v59 = vmul.f32 1.442695, %v1220_v5  ;;  %v4996_v20 = vpop.eup %4995 }
 0x546   : > { %4359 = vmatmul.msk.f32.vlgmr.msrb.gmra.mxu3 %vm569_vm1, %v788_v51  ;;  %v1032_v53 = vsel %vm569_vm1, %v4996_v20, 0.0 }
 0x547   : > { %1261 = vmatpush.msrb.mxu3 %v4829_v18  ;;  %4997 = vpow2.f32 %v1223_v59 }
 0x548   : > { %4999 = vpow2.f32 %v1471_v10 }
 0x549   : > { %1262 = vmatpush.msrb.mxu3 %v4828_v55 }
 0x54d   : > { %v4998_v27 = vpop.eup %4997 }
 0x54e   : > { %4360 = vmatmul.msk.f32.gmra.mxu3 %vm569_vm1, %v789_v9  ;;  %v5000_v28 = vpop.eup %4999  ;;  %v1228_v30 = vsel %vm569_vm1, %v4998_v27, 0.0 }
 0x54f   : > { %v1476_v31 = vsel %vm569_vm1, %v5000_v28, 0.0 }
 0x554   : > { %v6250_v11 = vpop.permute.xlu1 %1390 }
 0x570   : > { %v1649_v63 = vpop.f32.mrf.mxu1 }
 0x571   : > { %v1650_v1 = vadd.f32 %v6099_v33, %v1649_v63 }
 0x573   : > { %v1655_v34 = vadd.f32 %v6160_v56, %v1650_v1 }
 0x575   : > { %v1657_v14 = vsel %vm569_vm1, %v1655_v34, -inf }
 0x576   : > { %1658 = vmax.xlane.f32.xlu2 %v1657_v14 }
 0x578   : > { %v1652_v19 = vpop.f32.mrf.mxu1 }
 0x579   : > { %v1653_v17 = vadd.f32 %v6099_v33, %v1652_v19 }
 0x57b   : > { %v1656_v23 = vadd.f32 %v6110_v40, %v1653_v17 }
 0x57d   : > { %v1660_v57 = vsel %vm569_vm1, %v1656_v23, -inf }
 0x57e   : > { %1661 = vmax.xlane.f32.xlu0 %v1660_v57  ;;  %1033 = vadd.xlane.f32.xlu2 %v1032_v53 }
 0x57f   : > { %v1031_v2 = vpop.xlane.xlu1 %1030 }
 0x580   : > { %5001 = vrcp.f32 %v1031_v2 }
 0x586   : > { %v5002_v13 = vpop.eup %5001  ;;  %1229 = vadd.xlane.f32.xlu0 %v1228_v30  ;;  %1477 = vadd.xlane.f32.xlu2 %v1476_v31 }
 0x587   : > { %v1037_v40 = vmul.f32 %v5002_v13, %v6213_v24  ;;  %v1227_v41 = vpop.xlane.xlu1 %1226 }
 0x589   : > { %4380 = vmatmul.msk.f32.vlgmr.msra.gmra.mxu3 %vm569_vm1, %v1037_v40 }
 0x58a   : > { %1503 = vmatpush.msra.mxu3 %v6143_v15 }
 0x58c   : > { %1504 = vmatpush.msra.mxu3 %v6140_v7 }
 0x58f   : > { %v1475_v51 = vpop.xlane.xlu1 %1474 }
 0x59a   : > { %4841 = vrot.lane.b32.xlu0 %v6147_v39, %s5515_s20 }
 0x59e   : > { %1718 = vrot.lane.b32.xlu2 %v6042_v6, %s5516_s9 }
 0x5a2   : > { %1720 = vrot.lane.b32.xlu0 %v6033_v4, %s5516_s9 }
 0x5e9   : > { %v1659_v26 = vpop.xlane.xlu2 %1658 }
 0x5ea   : > { %v1663_v35 = vsub.f32 %v1655_v34, %v1659_v26 }
 0x5ec   : > { %v1665_v36 = vmul.f32 1.442695, %v1663_v35  ;;  %v6298_v35 = vld [vmem:[%s5794_s12 + $0x38] sm:$0xff] }
 0x5ed   : > { %4458 = vmatpush.xpose.msk.msra.mxu1 %vm531_vm0, %v6298_v35 }
 0x5ee   : > { %5003 = vpow2.f32 %v1665_v36  ;;  %v6303_v36 = vld [vmem:[%s5794_s12 + $0x30] sm:$0xff] }
 0x5f1   : > { %v1034_v38 = vpop.xlane.xlu2 %1033  ;;  %v1662_v24 = vpop.xlane.xlu0 %1661  ;;  %4459 = vmatpush.xpose.msk.msra.mxu1 %vm531_vm0, %v6303_v36 }
 0x5f2   : > { %5005 = vrcp.f32 %v1034_v38  ;;  %v1664_v15 = vsub.f32 %v1656_v23, %v1662_v24 }
 0x5f4   : > { %v5004_v7 = vpop.eup %5003  ;;  %v1667_v12 = vmul.f32 1.442695, %v1664_v15 }
 0x5f5   : > { %v1669_v6 = vsel %vm569_vm1, %v5004_v7, 0.0 }
 0x5f6   : > { %5007 = vpow2.f32 %v1667_v12  ;;  %1670 = vadd.xlane.f32.xlu1 %v1669_v6 }
 0x5f7   : > { %5009 = vrcp.f32 %v1227_v41 }
 0x5f8   : > { %v5006_v43 = vpop.eup %5005 }
 0x5f9   : > { %v1038_v48 = vmul.f32 %v5006_v43, %v4996_v20  ;;  %v1230_v44 = vpop.xlane.xlu0 %1229  ;;  %v1478_v8 = vpop.xlane.xlu2 %1477 }
 0x5fa   : > { %5011 = vrcp.f32 %v1230_v44 }
 0x5fb   : > { %4381 = vmatmul.msk.f32.gmra.mxu3 %vm569_vm1, %v1038_v48  ;;  %5013 = vrcp.f32 %v1475_v51  ;;  %v6317_v48 = vld [vmem:[%s5786_s15 + $0x38] sm:$0xff] }
 0x5fc   : > { %v5008_v4 = vpop.eup %5007  ;;  %5015 = vrcp.f32 %v1478_v8 }
 0x5fd   : > { %v1672_v49 = vsel %vm569_vm1, %v5008_v4, 0.0  ;;  %v5010_v37 = vpop.eup %5009 }
 0x5fe   : > { %1673 = vadd.xlane.f32.xlu2 %v1672_v49  ;;  %v1233_v50 = vmul.f32 %v5010_v37, %v6218_v0 }
 0x600   : > { %v5012_v18 = vpop.eup %5011 }
 0x601   : > { %v1234_v55 = vmul.f32 %v5012_v18, %v4998_v27  ;;  %v5014_v9 = vpop.eup %5013  ;;  %v1719_v34 = vpop.permute.xlu2 %1718  ;;  %v6326_v18 = vld [vmem:[%s5814_s5] sm:$0xff] }
 0x602   : > { %v1481_v61 = vmul.f32 %v5014_v9, %v6222_v45  ;;  %v5016_v29 = vpop.eup %5015 }
 0x603   : > { %4396 = vmatmul.msk.f32.vlgmr.msrb.gmra.mxu3 %vm569_vm1, %v1233_v50  ;;  %v1482_v0 = vmul.f32 %v5016_v29, %v5000_v28  ;;  %v6323_v50 = vld [vmem:[%s5812_s27 + $0x3] ss:$0 sm:$0xff] }
 0x60b   : > { %4397 = vmatmul.msk.f32.gmra.mxu3 %vm569_vm1, %v1234_v55 }
 0x60c   : > { %v4842_v63 = vpop.permute.xlu0 %4841 }
 0x60d   : > { %v4844_v1 = vunpack.i.h.bf16 %v4842_v63  ;;  %v4843_v5 = vunpack.i.l.bf16 %v4842_v63 }
 0x60f   : > { %1716 = vrot.lane.b32.xlu1 %v6014_v60, %s5516_s9  ;;  %1705 = vmatpush.msrb.mxu3 %v4844_v1 }
 0x611   : > { %1706 = vmatpush.msrb.mxu3 %v4843_v5 }
 0x613   : > { %4421 = vmatmul.msk.f32.vlgmr.msra.gmra.mxu3 %vm569_vm1, %v1481_v61 }
 0x614   : > { %v1721_v17 = vpop.permute.xlu0 %1720 }
 0x617   : > { %1722 = vrot.lane.b32.xlu1 %v6019_v22, %s5516_s9 }
 0x61b   : > { %4422 = vmatmul.msk.f32.gmra.mxu3 %vm569_vm1, %v1482_v0 }
 0x669   : > { %v1671_v52 = vpop.xlane.xlu1 %1670 }
 0x66a   : > { %5017 = vrcp.f32 %v1671_v52 }
 0x670   : > { %v5018_v60 = vpop.eup %5017 }
 0x671   : > { %v1677_v14 = vmul.f32 %v5018_v60, %v5004_v7  ;;  %v1674_v45 = vpop.xlane.xlu2 %1673  ;;  %v1608_v7 = vpop.f32.mrf.mxu2 }
 0x672   : > { %5019 = vrcp.f32 %v1674_v45 }
 0x673   : > { %4437 = vmatmul.msk.f32.vlgmr.msrb.gmra.mxu3 %vm569_vm1, %v1677_v14  ;;  %v6338_v14 = vld [vmem:[%s5814_s5 + $0x8] sm:$0xff] }
 0x678   : > { %v5020_v59 = vpop.eup %5019 }
 0x679   : > { %v1678_v10 = vmul.f32 %v5020_v59, %v5008_v4  ;;  %v1611_v12 = vpop.f32.mrf.mxu2 }
 0x67b   : > { %4438 = vmatmul.msk.f32.gmra.mxu3 %vm569_vm1, %v1678_v10 }
 0x681   : > { %v1717_v22 = vpop.permute.xlu1 %1716 }
 0x689   : > { %v1723_v19 = vpop.permute.xlu1 %1722 }
 0x68a   : > { %4441 = vmatpush.xpose.msk.msrb.mxu0 %vm531_vm0, %v1723_v19 }
 0x68e   : > { %4442 = vmatpush.xpose.msk.msrb.mxu0 %vm531_vm0, %v1721_v17  ;;  %v4456_v17 = vld [vmem:[%s5801_s1 + $0x38] sm:$0xff] }
 0x68f   : > { %1947 = vmatpush.msra.mxu3 %v4456_v17 }
 0x691   : > { %4443 = vmatmul.msk.f32.vlgmr.msrb.gmra.mxu0 %vm531_vm0, %v1717_v22 }
 0x699   : > { %4444 = vmatmul.msk.f32.gmra.mxu0 %vm531_vm0, %v1719_v34 }
 0x70e   : > { %v1749_v20 = vpop.f32.mrf.mxu0 }
 0x70f   : > { %v1750_v23 = vadd.f32 %v6099_v33, %v1749_v20  ;;  %v4455_v20 = vld [vmem:[%s5801_s1 + $0x30] sm:$0xff] }
 0x710   : > { %1948 = vmatpush.msra.mxu3 %v4455_v20 }
 0x711   : > { %v1755_v57 = vadd.f32 %v5927_v62, %v1750_v23 }
 0x713   : > { %v1757_v53 = vsel %vm569_vm1, %v1755_v57, -inf }
 0x714   : > { %1758 = vmax.xlane.f32.xlu0 %v1757_v53 }
 0x716   : > { %v1752_v2 = vpop.f32.mrf.mxu0 }
 0x717   : > { %v1753_v27 = vadd.f32 %v6099_v33, %v1752_v2 }
 0x719   : > { %v1756_v28 = vadd.f32 %v5936_v3, %v1753_v27 }
 0x71b   : > { %v1760_v30 = vsel %vm569_vm1, %v1756_v28, -inf }
 0x71c   : > { %1761 = vmax.xlane.f32.xlu2 %v1760_v30 }
 0x734   : > { %4846 = vrot.lane.b32.xlu2 %v6147_v39, %s5516_s9  ;;  %v6309_v39 = vld [vmem:[%s5786_s15 + $0x30] sm:$0xff] }
 0x735   : > { %4460 = vmatmul.msk.f32.vlgmr.msra.gmra.mxu1 %vm531_vm0, %v6309_v39 }
 0x73d   : > { %4461 = vmatmul.msk.f32.gmra.mxu1 %vm531_vm0, %v6317_v48 }
 0x787   : > { %v1759_v31 = vpop.xlane.xlu0 %1758 }
 0x788   : > { %v1763_v13 = vsub.f32 %v1755_v57, %v1759_v31 }
 0x78a   : > { %v1765_v40 = vmul.f32 1.442695, %v1763_v13 }
 0x78c   : > { %5021 = vpow2.f32 %v1765_v40 }
 0x78f   : > { %v1762_v62 = vpop.xlane.xlu2 %1761 }
 0x790   : > { %v1764_v26 = vsub.f32 %v1756_v28, %v1762_v62 }
 0x792   : > { %v5022_v33 = vpop.eup %5021  ;;  %v1767_v3 = vmul.f32 1.442695, %v1764_v26  ;;  %v819_v26 = vpop.f32.mrf.mxu3 }
 0x793   : > { %v1769_v38 = vsel %vm569_vm1, %v5022_v33, 0.0 }
 0x794   : > { %5023 = vpow2.f32 %v1767_v3  ;;  %1770 = vadd.xlane.f32.xlu1 %v1769_v38 }
 0x797   : > { %v4847_v41 = vpop.permute.xlu2 %4846 }
 0x798   : > { %v4849_v6 = vunpack.i.h.bf16 %v4847_v41  ;;  %v4848_v43 = vunpack.i.l.bf16 %v4847_v41  ;;  %v958_v41 = vld [vmem:[%s5804_s28] sm:$0xff] }
 0x79a   : > { %v5024_v24 = vpop.eup %5023  ;;  %1805 = vmatpush.msrb.mxu2 %v4849_v6 }
 0x79b   : > { %v1772_v15 = vsel %vm569_vm1, %v5024_v24, 0.0 }
 0x79c   : > { %1773 = vadd.xlane.f32.xlu0 %v1772_v15  ;;  %1806 = vmatpush.msrb.mxu2 %v4848_v43 }
 0x7ad   : > { %1816 = vrot.lane.b32.xlu1 %v1608_v7, %s5516_s9 }
 0x7b0   : > { %1818 = vrot.lane.b32.xlu0 %v1611_v12, %s5516_s9  ;;  %v950_v12 = vsel %vm531_vm0, %v6086_v16, %v6266_v32  ;;  %v6379_v16 = vld [vmem:[%s5814_s5 + $0x10] sm:$0xff] }
 0x7b2   : > { %v1897_v51 = vpop.f32.mrf.mxu1 }
 0x7b3   : > { %v1898_v8 = vadd.f32 %v6323_v50, %v1897_v51 }
 0x7b5   : > { %v1903_v61 = vadd.f32 %v1898_v8, %v6326_v18 }
 0x7b7   : > { %v1905_v29 = vsel %vm569_vm1, %v1903_v61, -inf }
 0x7ba   : > { %v1900_v34 = vpop.f32.mrf.mxu1 }
 0x7bb   : > { %v1901_v60 = vadd.f32 %v6323_v50, %v1900_v34 }
 0x7bd   : > { %v1904_v59 = vadd.f32 %v1901_v60, %v6338_v14 }
 0x7bf   : > { %v1908_v10 = vsel %vm569_vm1, %v1904_v59, -inf }
 0x7da   : > { %1906 = vmax.xlane.f32.xlu0 %v1905_v29 }
 0x807   : > { %v1771_v4 = vpop.xlane.xlu1 %1770 }
 0x808   : > { %5025 = vrcp.f32 %v1771_v4 }
 0x80e   : > { %v5026_v44 = vpop.eup %5025 }
 0x80f   : > { %v1777_v49 = vmul.f32 %v5026_v44, %v5022_v33  ;;  %v1774_v37 = vpop.xlane.xlu0 %1773 }
 0x810   : > { %5027 = vrcp.f32 %v1774_v37 }
 0x811   : > { %4445 = vmatmul.msk.f32.vlgmr.msrb.gmra.mxu2 %vm569_vm1, %v1777_v49 }
 0x816   : > { %v5028_v55 = vpop.eup %5027 }
 0x817   : > { %v1778_v9 = vmul.f32 %v5028_v55, %v5024_v24 }
 0x819   : > { %4446 = vmatmul.msk.f32.gmra.mxu2 %vm569_vm1, %v1778_v9 }
 0x81f   : > { %v6349_v23 = vpop.permute.xlu1 %1816 }
 0x822   : > { %v6334_v1 = vpop.permute.xlu0 %1818 }
 0x84d   : > { %v1907_v5 = vpop.xlane.xlu0 %1906 }
 0x84e   : > { %v1911_v52 = vsub.f32 %v1903_v61, %v1907_v5 }
 0x850   : > { %v1913_v45 = vmul.f32 1.442695, %v1911_v52 }
 0x852   : > { %5029 = vpow2.f32 %v1913_v45 }
 0x858   : > { %v5030_v22 = vpop.eup %5029 }
 0x859   : > { %v1917_v19 = vsel %vm569_vm1, %v5030_v22, 0.0 }
 0x894   : > { %v1808_v0 = vpop.f32.mrf.mxu2 }
 0x895   : > { %1832 = vrot.lane.b32.xlu1 %v1808_v0, %s5514_s3  ;;  %v6390_v0 = vpack.i.bf16 %v4456_v17, %v4455_v20 }
 0x89c   : > { %v1811_v63 = vpop.f32.mrf.mxu2 }
 0x89d   : > { %1834 = vrot.lane.b32.xlu2 %v1811_v63, %s5514_s3  ;;  %v822_v63 = vpop.f32.mrf.mxu3 }
 0x8a5   : > { %v1062_v5 = vpop.f32.mrf.mxu3 }
 0x8ad   : > { %v1065_v34 = vpop.f32.mrf.mxu3 }
 0x8bf   : > { %1909 = vmax.xlane.f32.xlu1 %v1908_v10 }
 0x8c6   : > { %1918 = vadd.xlane.f32.xlu2 %v1917_v19 }
 0x8d8   : > { %1958 = vrot.lane.b32.xlu1 %v6309_v39, %s5514_s3 }
 0x8de   : > { %1960 = vrot.lane.b32.xlu2 %v6317_v48, %s5514_s3 }
 0x8f7   : > { %v6353_v53 = vpop.permute.xlu2 %1834 }
 0x907   : > { %v6351_v57 = vpop.permute.xlu1 %1832 }
 0x932   : > { %v1910_v2 = vpop.xlane.xlu1 %1909 }
 0x933   : > { %v1912_v27 = vsub.f32 %v1904_v59, %v1910_v2  ;;  %v1264_v59 = vpop.f32.mrf.mxu3 }
 0x935   : > { %v1915_v28 = vmul.f32 1.442695, %v1912_v27 }
 0x937   : > { %5031 = vpow2.f32 %v1915_v28 }
 0x939   : > { %v1919_v30 = vpop.xlane.xlu2 %1918 }
 0x93a   : > { %5033 = vrcp.f32 %v1919_v30 }
 0x93b   : > { %v1267_v20 = vpop.f32.mrf.mxu3 }
 0x93d   : > { %v5032_v31 = vpop.eup %5031 }
 0x93e   : > { %v1920_v13 = vsel %vm569_vm1, %v5032_v31, 0.0 }
 0x93f   : > { %1921 = vadd.xlane.f32.xlu0 %v1920_v13 }
 0x940   : > { %v5034_v40 = vpop.eup %5033 }
 0x941   : > { %v1925_v62 = vmul.f32 %v5034_v40, %v5030_v22  ;;  %v1961_v49 = vpop.permute.xlu2 %1960 }
 0x943   : > { %4462 = vmatmul.msk.f32.vlgmr.msra.gmra.mxu3 %vm569_vm1, %v1925_v62  ;;  %v1506_v30 = vpop.f32.mrf.mxu3 }
 0x94a   : > { %v1959_v7 = vpop.permute.xlu1 %1958 }
 0x953   : > { %1962 = vrot.lane.b32.xlu0 %v6303_v36, %s5514_s3 }
 0x95b   : > { %1964 = vrot.lane.b32.xlu0 %v6298_v35, %s5514_s3 }
 0x963   : > { %936 = vrot.lane.b32.xlu0 %v819_v26, %s5515_s20 }
 0x9b2   : > { %v1922_v33 = vpop.xlane.xlu0 %1921 }
 0x9b3   : > { %5035 = vrcp.f32 %v1922_v33 }
 0x9b9   : > { %v5036_v3 = vpop.eup %5035 }
 0x9ba   : > { %v1926_v38 = vmul.f32 %v5036_v3, %v5032_v31  ;;  %v1509_v31 = vpop.f32.mrf.mxu3 }
 0x9bc   : > { %4463 = vmatmul.msk.f32.gmra.mxu3 %vm569_vm1, %v1926_v38 }
 0x9c2   : > { %v1708_v13 = vpop.f32.mrf.mxu3 }
 0x9c5   : > { %v1963_v24 = vpop.permute.xlu0 %1962 }
 0x9ca   : > { %v1711_v40 = vpop.f32.mrf.mxu3 }
 0x9cd   : > { %v1965_v15 = vpop.permute.xlu0 %1964 }
 0x9ce   : > { %4466 = vmatpush.xpose.msk.msra.mxu0 %vm531_vm0, %v1965_v15 }
 0x9d2   : > { %4467 = vmatpush.xpose.msk.msra.mxu0 %vm531_vm0, %v1963_v24 }
 0x9d5   : > { %4468 = vmatmul.msk.f32.vlgmr.msra.gmra.mxu0 %vm531_vm0, %v1959_v7  ;;  %v937_v6 = vpop.permute.xlu0 %936 }
 0x9d6   : > { %v953_v43 = vsel %vm952_vm2, %v950_v12, %v937_v6  ;;  %v951_v12 = vsel %vm531_vm0, %v6090_v25, %v6230_v46  ;;  %v1394_v25 = vsel %vm531_vm0, %v1062_v5, %v6232_v47  ;;  %v4406_v46 = vld [vmem:[%s5804_s28 + $0x10] sm:$0xff] }
 0x9d7   : > { %v956_v4 = vsel %vm955_vm3, %v953_v43, %v6228_v54  ;;  %v6385_v54 = vld [vmem:[%s5814_s5 + $0x18] sm:$0xff] }
 0x9d8   : > { %v960_v44 = vmul.f32 %v958_v41, %v956_v4  ;;  %v959_v41 = vld [vmem:[%s5804_s28 + $0x8] sm:$0xff] }
 0x9da   : > { %962 = vst [vmem:[%s6374_s17] sm:$0xff] %v960_v44 }
 0x9dd   : > { %4469 = vmatmul.msk.f32.gmra.mxu0 %vm531_vm0, %v1961_v49 }
 0xa52   : > { %v1991_v37 = vpop.f32.mrf.mxu0 }
 0xa53   : > { %v1992_v32 = vadd.f32 %v6323_v50, %v1991_v37 }
 0xa55   : > { %v1997_v51 = vadd.f32 %v6379_v16, %v1992_v32 }
 0xa57   : > { %v1999_v55 = vsel %vm569_vm1, %v1997_v51, -inf }
 0xa58   : > { %2000 = vmax.xlane.f32.xlu2 %v1999_v55 }
 0xa5a   : > { %v1994_v8 = vpop.f32.mrf.mxu0 }
 0xa5b   : > { %v1995_v9 = vadd.f32 %v6323_v50, %v1994_v8 }
 0xa5d   : > { %v1998_v61 = vadd.f32 %v6385_v54, %v1995_v9 }
 0xa5f   : > { %v2002_v29 = vsel %vm569_vm1, %v1998_v61, -inf }
 0xa60   : > { %2003 = vmax.xlane.f32.xlu1 %v2002_v29 }
 0xa79   : > { %4851 = vrot.lane.b32.xlu1 %v6390_v0, %s5514_s3 }
 0xa81   : > { %2064 = vrot.lane.b32.xlu1 %v6303_v36, %s5515_s20 }
 0xacb   : > { %v2001_v52 = vpop.xlane.xlu2 %2000 }
 0xacc   : > { %v2005_v60 = vsub.f32 %v1997_v51, %v2001_v52 }
 0xace   : > { %v2007_v45 = vmul.f32 1.442695, %v2005_v60 }
 0xad0   : > { %5037 = vpow2.f32 %v2007_v45 }
 0xad3   : > { %v2004_v10 = vpop.xlane.xlu1 %2003 }
 0xad4   : > { %v2006_v22 = vsub.f32 %v1998_v61, %v2004_v10  ;;  %v4407_v61 = vld [vmem:[%s5804_s28 + $0x18] sm:$0xff] }
 0xad6   : > { %v5038_v19 = vpop.eup %5037  ;;  %v2009_v2 = vmul.f32 1.442695, %v2006_v22  ;;  %v4448_v22 = vld [vmem:[%s5804_s28 + $0x28] sm:$0xff] }
 0xad7   : > { %v2011_v17 = vsel %vm569_vm1, %v5038_v19, 0.0 }
 0xad8   : > { %5039 = vpow2.f32 %v2009_v2  ;;  %2012 = vadd.xlane.f32.xlu0 %v2011_v17 }
 0xade   : > { %v5040_v27 = vpop.eup %5039 }
 0xadf   : > { %v2014_v28 = vsel %vm569_vm1, %v5040_v27, 0.0 }
 0xae0   : > { %2015 = vadd.xlane.f32.xlu2 %v2014_v28 }
 0xaeb   : > { %v4852_v62 = vpop.permute.xlu1 %4851 }
 0xaec   : > { %2062 = vrot.lane.b32.xlu0 %v6317_v48, %s5515_s20  ;;  %v4854_v26 = vunpack.i.h.bf16 %v4852_v62  ;;  %v4853_v33 = vunpack.i.l.bf16 %v4852_v62 }
 0xaee   : > { %2049 = vmatpush.msra.mxu2 %v4854_v26 }
 0xaf0   : > { %2050 = vmatpush.msra.mxu2 %v4853_v33 }
 0xaf4   : > { %1380 = vrot.lane.b32.xlu0 %v1264_v59, %s5515_s20  ;;  %v1839_v59 = vsel %vm531_vm0, %v1509_v31, %v6334_v1  ;;  %v5189_v31 = vld [vmem:[%s5814_s5 + $0x28] sm:$0xff] }
 0xaf8   : > { %938 = vrot.lane.b32.xlu2 %v822_v63, %s5515_s20 }
 0xafc   : > { %2066 = vrot.lane.b32.xlu0 %v6298_v35, %s5515_s20 }
 0xb00   : > { %2060 = vrot.lane.b32.xlu2 %v6309_v39, %s5515_s20 }
 0xb04   : > { %1826 = vrot.lane.b32.xlu0 %v1711_v40, %s5515_s20 }
 0xb08   : > { %1382 = vrot.lane.b32.xlu2 %v1267_v20, %s5515_s20 }
 0xb10   : > { %1824 = vrot.lane.b32.xlu2 %v1708_v13, %s5515_s20 }
 0xb4b   : > { %v2013_v3 = vpop.xlane.xlu0 %2012 }
 0xb4c   : > { %5041 = vrcp.f32 %v2013_v3 }
 0xb52   : > { %v5042_v38 = vpop.eup %5041 }
 0xb53   : > { %v2019_v24 = vmul.f32 %v5042_v38, %v5038_v19  ;;  %v2016_v15 = vpop.xlane.xlu2 %2015 }
 0xb54   : > { %5043 = vrcp.f32 %v2016_v15 }
 0xb55   : > { %4470 = vmatmul.msk.f32.vlgmr.msra.gmra.mxu2 %vm569_vm1, %v2019_v24 }
 0xb5a   : > { %v5044_v7 = vpop.eup %5043 }
 0xb5b   : > { %v939_v6 = vpop.permute.xlu2 %938  ;;  %v2020_v43 = vmul.f32 %v5044_v7, %v5040_v27 }
 0xb5c   : > { %v954_v4 = vsel %vm952_vm2, %v951_v12, %v939_v6 }
 0xb5d   : > { %v957_v44 = vsel %vm955_vm3, %v954_v4, %v6226_v58  ;;  %4471 = vmatmul.msk.f32.gmra.mxu2 %vm569_vm1, %v2020_v43  ;;  %v1395_v58 = vsel %vm531_vm0, %v1065_v34, %v6234_v21  ;;  %v1838_v21 = vsel %vm531_vm0, %v1506_v30, %v6349_v23  ;;  %v4447_v34 = vld [vmem:[%s5804_s28 + $0x20] sm:$0xff] }
 0xb5e   : > { %v961_v49 = vmul.f32 %v959_v41, %v957_v44  ;;  %v2063_v37 = vpop.permute.xlu0 %2062 }
 0xb60   : > { %963 = vst [vmem:[%s6374_s17 + $0x8] sm:$0xff] %v961_v49 }
 0xb63   : > { %v2061_v32 = vpop.permute.xlu2 %2060 }
 0xb66   : > { %v1381_v51 = vpop.permute.xlu0 %1380 }
 0xb67   : > { %v1396_v55 = vsel %vm952_vm2, %v1394_v25, %v1381_v51 }
 0xb68   : > { %v1398_v8 = vsel %vm955_vm3, %v1396_v55, %v6236_v42  ;;  %v2065_v42 = vpop.permute.xlu1 %2064 }
 0xb69   : > { %v1403_v9 = vmul.f32 %v4406_v46, %v1398_v8  ;;  %v6476_v46 = vld [vmem:[%s5814_s5 + $0x30] sm:$0xff] }
 0xb6b   : > { %4408 = vst [vmem:[%s6374_s17 + $0x10] sm:$0xff] %v1403_v9  ;;  %v1383_v29 = vpop.permute.xlu2 %1382  ;;  %v6482_v9 = vld [vmem:[%s5814_s5 + $0x38] sm:$0xff] }
 0xb6c   : > { %v1397_v63 = vsel %vm952_vm2, %v1395_v58, %v1383_v29 }
 0xb6d   : > { %v1399_v47 = vsel %vm955_vm3, %v1397_v63, %v6250_v11 }
 0xb6e   : > { %v1404_v5 = vmul.f32 %v4407_v61, %v1399_v47  ;;  %v2067_v52 = vpop.permute.xlu0 %2066  ;;  %v6487_v47 = vpop.f32.mrf.mxu3 }
 0xb6f   : > { %4474 = vmatpush.xpose.msk.msrb.mxu1 %vm531_vm0, %v2067_v52 }
 0xb70   : > { %4409 = vst [vmem:[%s6374_s17 + $0x18] sm:$0xff] %v1404_v5 }
 0xb73   : > { %4475 = vmatpush.xpose.msk.msrb.mxu1 %vm531_vm0, %v2065_v42  ;;  %v1825_v60 = vpop.permute.xlu2 %1824 }
 0xb74   : > { %v1840_v45 = vsel %vm952_vm2, %v1838_v21, %v1825_v60 }
 0xb75   : > { %v1842_v11 = vsel %vm955_vm3, %v1840_v45, %v6351_v57 }
 0xb76   : > { %v1847_v10 = vmul.f32 %v4447_v34, %v1842_v11  ;;  %4476 = vmatmul.msk.f32.vlgmr.msrb.gmra.mxu1 %vm531_vm0, %v2061_v32  ;;  %v1827_v19 = vpop.permute.xlu0 %1826  ;;  %v6489_v5 = vpop.f32.mrf.mxu3 }
 0xb77   : > { %v1841_v23 = vsel %vm952_vm2, %v1839_v59, %v1827_v19  ;;  %v6507_v19 = vld [vmem:[%s5786_s15 + $0x40] sm:$0xff] }
 0xb78   : > { %4449 = vst [vmem:[%s6374_s17 + $0x20] sm:$0xff] %v1847_v10  ;;  %v1843_v2 = vsel %vm955_vm3, %v1841_v23, %v6353_v53 }
 0xb79   : > { %v1848_v17 = vmul.f32 %v4448_v22, %v1843_v2  ;;  %v6502_v22 = vld [vmem:[%s5794_s12 + $0x40] sm:$0xff] }
 0xb7b   : > { %4450 = vst [vmem:[%s6374_s17 + $0x28] sm:$0xff] %v1848_v17 }
 0xb7e   : > { %4477 = vmatmul.msk.f32.gmra.mxu1 %vm531_vm0, %v2063_v37 }
 0xbf3   : > { %v2093_v57 = vpop.f32.mrf.mxu1 }
 0xbf4   : > { %v2094_v20 = vadd.f32 %v6323_v50, %v2093_v57 }
 0xbf6   : > { %v2099_v1 = vadd.f32 %v6160_v56, %v2094_v20 }
 0xbf8   : > { %v2101_v27 = vsel %vm569_vm1, %v2099_v1, -inf }
 0xbf9   : > { %2102 = vmax.xlane.f32.xlu2 %v2101_v27 }
 0xbfb   : > { %v2096_v28 = vpop.f32.mrf.mxu1 }
 0xbfc   : > { %v2097_v30 = vadd.f32 %v6323_v50, %v2096_v28  ;;  %v6515_v28 = vld [vmem:[%s5786_s15 + $0x48] sm:$0xff] }
 0xbfe   : > { %v2100_v13 = vadd.f32 %v5189_v31, %v2097_v30 }
 0xc00   : > { %v2104_v40 = vsel %vm569_vm1, %v2100_v13, -inf }
 0xc01   : > { %2105 = vmax.xlane.f32.xlu1 %v2104_v40 }
 0xc1a   : > { %4856 = vrot.lane.b32.xlu1 %v6390_v0, %s5515_s20 }
 0xc22   : > { %2166 = vrot.lane.b32.xlu1 %v6298_v35, %s5516_s9 }
 0xc6c   : > { %v2103_v53 = vpop.xlane.xlu2 %2102 }
 0xc6d   : > { %v2107_v62 = vsub.f32 %v2099_v1, %v2103_v53  ;;  %v2052_v1 = vpop.f32.mrf.mxu2 }
 0xc6f   : > { %v2109_v56 = vmul.f32 1.442695, %v2107_v62  ;;  %v6521_v62 = vld [vmem:[%s5812_s27 + $0x4] ss:$0 sm:$0xff] }
 0xc71   : > { %5045 = vpow2.f32 %v2109_v56 }
 0xc74   : > { %v2106_v26 = vpop.xlane.xlu1 %2105 }
 0xc75   : > { %v2108_v33 = vsub.f32 %v2100_v13, %v2106_v26  ;;  %v2055_v27 = vpop.f32.mrf.mxu2 }
 0xc77   : > { %v5046_v3 = vpop.eup %5045  ;;  %v2111_v38 = vmul.f32 1.442695, %v2108_v33 }
 0xc78   : > { %v2113_v24 = vsel %vm569_vm1, %v5046_v3, 0.0 }
 0xc79   : > { %5047 = vpow2.f32 %v2111_v38  ;;  %2114 = vadd.xlane.f32.xlu0 %v2113_v24 }
 0xc7f   : > { %v5048_v15 = vpop.eup %5047 }
 0xc80   : > { %v2116_v7 = vsel %vm569_vm1, %v5048_v15, 0.0 }
 0xc81   : > { %2117 = vadd.xlane.f32.xlu2 %v2116_v7 }
 0xc8c   : > { %v4857_v35 = vpop.permute.xlu1 %4856 }
 0xc8d   : > { %2160 = vrot.lane.b32.xlu0 %v6309_v39, %s5516_s9  ;;  %v4859_v12 = vunpack.i.h.bf16 %v4857_v35  ;;  %v4858_v41 = vunpack.i.l.bf16 %v4857_v35 }
 0xc8f   : > { %2149 = vmatpush.msrb.mxu3 %v4859_v12 }
 0xc91   : > { %2150 = vmatpush.msrb.mxu3 %v4858_v41 }
 0xc94   : > { %v2167_v6 = vpop.permute.xlu1 %2166 }
 0xc95   : > { %2164 = vrot.lane.b32.xlu0 %v6303_v36, %s5516_s9  ;;  %4482 = vmatpush.xpose.msk.msrb.mxu0 %vm531_vm0, %v2167_v6 }
 0xc99   : > { %2162 = vrot.lane.b32.xlu2 %v6317_v48, %s5516_s9 }
 0xcec   : > { %v2115_v43 = vpop.xlane.xlu0 %2114 }
 0xced   : > { %5049 = vrcp.f32 %v2115_v43 }
 0xcf3   : > { %v5050_v4 = vpop.eup %5049 }
 0xcf4   : > { %v2121_v44 = vmul.f32 %v5050_v4, %v5046_v3  ;;  %v2118_v39 = vpop.xlane.xlu2 %2117 }
 0xcf5   : > { %5051 = vrcp.f32 %v2118_v39 }
 0xcf6   : > { %4478 = vmatmul.msk.f32.vlgmr.msrb.gmra.mxu3 %vm569_vm1, %v2121_v44 }
 0xcfb   : > { %v5052_v36 = vpop.eup %5051 }
 0xcfc   : > { %v2122_v48 = vmul.f32 %v5052_v36, %v5048_v15  ;;  %v2163_v32 = vpop.permute.xlu2 %2162 }
 0xcfe   : > { %4479 = vmatmul.msk.f32.gmra.mxu3 %vm569_vm1, %v2122_v48 }
 0xcff   : > { %v2161_v49 = vpop.permute.xlu0 %2160 }
 0xd07   : > { %v2165_v37 = vpop.permute.xlu0 %2164 }
 0xd08   : > { %4483 = vmatpush.xpose.msk.msrb.mxu0 %vm531_vm0, %v2165_v37 }
 0xd0b   : > { %4484 = vmatmul.msk.f32.vlgmr.msrb.gmra.mxu0 %vm531_vm0, %v2161_v49  ;;  %v4489_v49 = vld [vmem:[%s5804_s28 + $0x38] sm:$0xff] }
 0xd13   : > { %4485 = vmatmul.msk.f32.gmra.mxu0 %vm531_vm0, %v2163_v32 }
 0xd79   : > { %v2152_v52 = vpop.f32.mrf.mxu3 }
 0xd81   : > { %v2155_v42 = vpop.f32.mrf.mxu3 }
 0xd88   : > { %v2193_v25 = vpop.f32.mrf.mxu0 }
 0xd89   : > { %v2194_v51 = vadd.f32 %v6323_v50, %v2193_v25 }
 0xd8b   : > { %v2199_v55 = vadd.f32 %v6476_v46, %v2194_v51 }
 0xd8d   : > { %v2201_v8 = vsel %vm569_vm1, %v2199_v55, -inf }
 0xd8e   : > { %2202 = vmax.xlane.f32.xlu2 %v2201_v8 }
 0xd90   : > { %v2196_v58 = vpop.f32.mrf.mxu0 }
 0xd91   : > { %v2197_v61 = vadd.f32 %v6323_v50, %v2196_v58  ;;  %v4488_v58 = vld [vmem:[%s5804_s28 + $0x30] sm:$0xff] }
 0xd93   : > { %v2200_v29 = vadd.f32 %v6482_v9, %v2197_v61 }
 0xd95   : > { %v2204_v63 = vsel %vm569_vm1, %v2200_v29, -inf }
 0xd96   : > { %2205 = vmax.xlane.f32.xlu0 %v2204_v63 }
 0xdaa   : > { %4861 = vrot.lane.b32.xlu0 %v6390_v0, %s5516_s9  ;;  %v6497_v0 = vld [vmem:[%s5794_s12 + $0x48] sm:$0xff] }
 0xdab   : > { %4499 = vmatpush.xpose.msk.msra.mxu1 %vm531_vm0, %v6497_v0 }
 0xdaf   : > { %4500 = vmatpush.xpose.msk.msra.mxu1 %vm531_vm0, %v6502_v22 }
 0xdb2   : > { %2268 = vrot.lane.b32.xlu0 %v2152_v52, %s5515_s20  ;;  %4501 = vmatmul.msk.f32.vlgmr.msra.gmra.mxu1 %vm531_vm0, %v6507_v19  ;;  %v4497_v52 = vld [vmem:[%s5801_s1 + $0x48] sm:$0xff] }
 0xdb3   : > { %2391 = vmatpush.msra.mxu3 %v4497_v52 }
 0xdba   : > { %2270 = vrot.lane.b32.xlu0 %v2155_v42, %s5515_s20  ;;  %4502 = vmatmul.msk.f32.gmra.mxu1 %vm531_vm0, %v6515_v28  ;;  %v4496_v42 = vld [vmem:[%s5801_s1 + $0x40] sm:$0xff] }
 0xdbb   : > { %2392 = vmatpush.msra.mxu3 %v4496_v42 }
 0xe01   : > { %v2203_v50 = vpop.xlane.xlu2 %2202 }
 0xe02   : > { %v2207_v21 = vsub.f32 %v2199_v55, %v2203_v50 }
 0xe04   : > { %v2209_v34 = vmul.f32 1.442695, %v2207_v21 }
 0xe06   : > { %5053 = vpow2.f32 %v2209_v34 }
 0xe09   : > { %v2206_v60 = vpop.xlane.xlu0 %2205 }
 0xe0a   : > { %v2208_v45 = vsub.f32 %v2200_v29, %v2206_v60 }
 0xe0c   : > { %v5054_v11 = vpop.eup %5053  ;;  %v2211_v59 = vmul.f32 1.442695, %v2208_v45 }
 0xe0d   : > { %v2213_v10 = vsel %vm569_vm1, %v5054_v11, 0.0 }
 0xe0e   : > { %5055 = vpow2.f32 %v2211_v59  ;;  %2214 = vadd.xlane.f32.xlu1 %v2213_v10 }
 0xe14   : > { %v5056_v23 = vpop.eup %5055 }
 0xe15   : > { %v2216_v2 = vsel %vm569_vm1, %v5056_v23, 0.0 }
 0xe16   : > { %2217 = vadd.xlane.f32.xlu2 %v2216_v2 }
 0xe1c   : > { %v4862_v17 = vpop.permute.xlu0 %4861 }
 0xe1d   : > { %v4864_v57 = vunpack.i.h.bf16 %v4862_v17  ;;  %v4863_v20 = vunpack.i.l.bf16 %v4862_v17 }
 0xe1f   : > { %2249 = vmatpush.msrb.mxu2 %v4864_v57 }
 0xe21   : > { %2250 = vmatpush.msrb.mxu2 %v4863_v20 }
 0xe24   : > { %v2269_v7 = vpop.permute.xlu0 %2268 }
 0xe27   : > { %2260 = vrot.lane.b32.xlu1 %v2052_v1, %s5516_s9 }
 0xe2c   : > { %v2271_v35 = vpop.permute.xlu0 %2270 }
 0xe2e   : > { %2262 = vrot.lane.b32.xlu2 %v2055_v27, %s5516_s9 }
 0xe2f   : > { %v2341_v26 = vpop.f32.mrf.mxu1 }
 0xe30   : > { %v2342_v33 = vadd.f32 %v6521_v62, %v2341_v26 }
 0xe32   : > { %v2347_v3 = vadd.f32 %v2342_v33, %v6326_v18  ;;  %v6568_v33 = vpack.i.bf16 %v4497_v52, %v4496_v42 }
 0xe34   : > { %v2349_v38 = vsel %vm569_vm1, %v2347_v3, -inf }
 0xe35   : > { %2350 = vmax.xlane.f32.xlu0 %v2349_v38 }
 0xe37   : > { %v2344_v41 = vpop.f32.mrf.mxu1 }
 0xe38   : > { %v2345_v43 = vadd.f32 %v6521_v62, %v2344_v41 }
 0xe3a   : > { %v2348_v18 = vadd.f32 %v2345_v43, %v6338_v14 }
 0xe3c   : > { %v2352_v44 = vsel %vm569_vm1, %v2348_v18, -inf }
 0xe81   : > { %v2215_v30 = vpop.xlane.xlu1 %2214 }
 0xe82   : > { %5057 = vrcp.f32 %v2215_v30 }
 0xe88   : > { %v5058_v31 = vpop.eup %5057 }
 0xe89   : > { %v2221_v13 = vmul.f32 %v5058_v31, %v5054_v11  ;;  %v2218_v40 = vpop.xlane.xlu2 %2217 }
 0xe8a   : > { %5059 = vrcp.f32 %v2218_v40 }
 0xe8b   : > { %4486 = vmatmul.msk.f32.vlgmr.msrb.gmra.mxu2 %vm569_vm1, %v2221_v13 }
 0xe90   : > { %v5060_v53 = vpop.eup %5059 }
 0xe91   : > { %v2222_v56 = vmul.f32 %v5060_v53, %v5056_v23  ;;  %v2263_v14 = vpop.permute.xlu2 %2262 }
 0xe92   : > { %v2283_v48 = vsel %vm531_vm0, %v6489_v5, %v2263_v14 }
 0xe93   : > { %4487 = vmatmul.msk.f32.gmra.mxu2 %vm569_vm1, %v2222_v56  ;;  %v2285_v32 = vsel %vm952_vm2, %v2283_v48, %v2271_v35 }
 0xe99   : > { %v2261_v55 = vpop.permute.xlu1 %2260 }
 0xe9a   : > { %v2282_v8 = vsel %vm531_vm0, %v6487_v47, %v2261_v55 }
 0xe9b   : > { %v2284_v29 = vsel %vm952_vm2, %v2282_v8, %v2269_v7 }
 0xea8   : > { %v2351_v12 = vpop.xlane.xlu0 %2350 }
 0xea9   : > { %v2355_v6 = vsub.f32 %v2347_v3, %v2351_v12 }
 0xeab   : > { %v2357_v4 = vmul.f32 1.442695, %v2355_v6 }
 0xead   : > { %5061 = vpow2.f32 %v2357_v4 }
 0xeb3   : > { %v5062_v39 = vpop.eup %5061 }
 0xeb4   : > { %v2361_v36 = vsel %vm569_vm1, %v5062_v39, 0.0 }
 0xf0e   : > { %v2252_v24 = vpop.f32.mrf.mxu2 }
 0xf0f   : > { %2276 = vrot.lane.b32.xlu1 %v2252_v24, %s5514_s3 }
 0xf16   : > { %v2255_v15 = vpop.f32.mrf.mxu2 }
 0xf17   : > { %2278 = vrot.lane.b32.xlu2 %v2255_v15, %s5514_s3 }
 0xf39   : > { %2353 = vmax.xlane.f32.xlu1 %v2352_v44 }
 0xf40   : > { %2362 = vadd.xlane.f32.xlu2 %v2361_v36 }
 0xf52   : > { %2402 = vrot.lane.b32.xlu1 %v6507_v19, %s5514_s3 }
 0xf58   : > { %2404 = vrot.lane.b32.xlu2 %v6515_v28, %s5514_s3 }
 0xf60   : > { %2408 = vrot.lane.b32.xlu2 %v6497_v0, %s5514_s3 }
 0xf71   : > { %v2279_v37 = vpop.permute.xlu2 %2278 }
 0xf72   : > { %v2287_v25 = vsel %vm955_vm3, %v2285_v32, %v2279_v37 }
 0xf73   : > { %v2292_v51 = vmul.f32 %v4489_v49, %v2287_v25 }
 0xf75   : > { %4491 = vst [vmem:[%s6374_s17 + $0x38] sm:$0xff] %v2292_v51  ;;  %v6589_v51 = vld [vmem:[%s5814_s5 + $0x20] sm:$0xff] }
 0xf81   : > { %v2277_v61 = vpop.permute.xlu1 %2276 }
 0xf82   : > { %v2286_v63 = vsel %vm955_vm3, %v2284_v29, %v2277_v61  ;;  %v6595_v29 = vld [vmem:[%s5814_s5 + $0x28] sm:$0xff] }
 0xf83   : > { %v2291_v5 = vmul.f32 %v4488_v58, %v2286_v63 }
 0xf85   : > { %4490 = vst [vmem:[%s6374_s17 + $0x30] sm:$0xff] %v2291_v5 }
 0xfac   : > { %v2354_v50 = vpop.xlane.xlu1 %2353 }
 0xfad   : > { %v2356_v21 = vsub.f32 %v2348_v18, %v2354_v50 }
 0xfaf   : > { %v2359_v34 = vmul.f32 1.442695, %v2356_v21 }
 0xfb1   : > { %5063 = vpow2.f32 %v2359_v34 }
 0xfb3   : > { %v2363_v60 = vpop.xlane.xlu2 %2362 }
 0xfb4   : > { %5065 = vrcp.f32 %v2363_v60 }
 0xfb7   : > { %v5064_v45 = vpop.eup %5063 }
 0xfb8   : > { %v2364_v47 = vsel %vm569_vm1, %v5064_v45, 0.0 }
 0xfb9   : > { %2365 = vadd.xlane.f32.xlu0 %v2364_v47 }
 0xfba   : > { %v5066_v11 = vpop.eup %5065 }
 0xfbb   : > { %v2369_v59 = vmul.f32 %v5066_v11, %v5062_v39  ;;  %v2405_v10 = vpop.permute.xlu2 %2404 }
 0xfbd   : > { %4503 = vmatmul.msk.f32.vlgmr.msra.gmra.mxu3 %vm569_vm1, %v2369_v59 }
 0xfc3   : > { %v2409_v23 = vpop.permute.xlu2 %2408 }
 0xfc4   : > { %4507 = vmatpush.xpose.msk.msra.mxu0 %vm531_vm0, %v2409_v23  ;;  %v2403_v1 = vpop.permute.xlu1 %2402 }
 0xfcd   : > { %2406 = vrot.lane.b32.xlu0 %v6502_v22, %s5514_s3 }
0x102c   : > { %v2366_v2 = vpop.xlane.xlu0 %2365 }
0x102d   : > { %5067 = vrcp.f32 %v2366_v2 }
0x1033   : > { %v5068_v17 = vpop.eup %5067 }
0x1034   : > { %v2370_v57 = vmul.f32 %v5068_v17, %v5064_v45 }
0x1036   : > { %4504 = vmatmul.msk.f32.gmra.mxu3 %vm569_vm1, %v2370_v57 }
0x103f   : > { %v2407_v20 = vpop.permute.xlu0 %2406 }
0x1040   : > { %4508 = vmatpush.xpose.msk.msra.mxu0 %vm531_vm0, %v2407_v20 }
0x1043   : > { %4509 = vmatmul.msk.f32.vlgmr.msra.gmra.mxu0 %vm531_vm0, %v2403_v1 }
0x104b   : > { %4510 = vmatmul.msk.f32.gmra.mxu0 %vm531_vm0, %v2405_v10 }
0x10c0   : > { %v2435_v27 = vpop.f32.mrf.mxu0 }
0x10c1   : > { %v2436_v30 = vadd.f32 %v6521_v62, %v2435_v27 }
0x10c3   : > { %v2441_v31 = vadd.f32 %v6379_v16, %v2436_v30 }
0x10c5   : > { %v2443_v13 = vsel %vm569_vm1, %v2441_v31, -inf }
0x10c6   : > { %2444 = vmax.xlane.f32.xlu1 %v2443_v13 }
0x10c8   : > { %v2438_v40 = vpop.f32.mrf.mxu0 }
0x10c9   : > { %v2439_v53 = vadd.f32 %v6521_v62, %v2438_v40 }
0x10cb   : > { %v2442_v56 = vadd.f32 %v6385_v54, %v2439_v53 }
0x10cd   : > { %v2446_v26 = vsel %vm569_vm1, %v2442_v56, -inf }
0x10ce   : > { %2447 = vmax.xlane.f32.xlu0 %v2446_v26 }
0x10e2   : > { %4866 = vrot.lane.b32.xlu0 %v6568_v33, %s5514_s3 }
0x10ea   : > { %2508 = vrot.lane.b32.xlu0 %v6502_v22, %s5515_s20 }
0x1139   : > { %v2445_v16 = vpop.xlane.xlu1 %2444 }
0x113a   : > { %v2449_v3 = vsub.f32 %v2441_v31, %v2445_v16 }
0x113c   : > { %v2451_v38 = vmul.f32 1.442695, %v2449_v3 }
0x113e   : > { %5069 = vpow2.f32 %v2451_v38 }
0x1141   : > { %v2448_v24 = vpop.xlane.xlu0 %2447 }
0x1142   : > { %v2450_v15 = vsub.f32 %v2442_v56, %v2448_v24 }
0x1144   : > { %v5070_v7 = vpop.eup %5069  ;;  %v2453_v35 = vmul.f32 1.442695, %v2450_v15  ;;  %v6624_v15 = vpop.f32.mrf.mxu3 }
0x1145   : > { %v2455_v54 = vsel %vm569_vm1, %v5070_v7, 0.0 }
0x1146   : > { %5071 = vpow2.f32 %v2453_v35  ;;  %2456 = vadd.xlane.f32.xlu2 %v2455_v54 }
0x114c   : > { %v5072_v12 = vpop.eup %5071 }
0x114d   : > { %v2458_v41 = vsel %vm569_vm1, %v5072_v12, 0.0 }
0x114e   : > { %2459 = vadd.xlane.f32.xlu1 %v2458_v41 }
0x1154   : > { %v4867_v6 = vpop.permute.xlu0 %4866 }
0x1155   : > { %v4869_v43 = vunpack.i.h.bf16 %v4867_v6  ;;  %v4868_v4 = vunpack.i.l.bf16 %v4867_v6 }
0x1157   : > { %2493 = vmatpush.msra.mxu2 %v4869_v43 }
0x1159   : > { %2494 = vmatpush.msra.mxu2 %v4868_v4 }
0x115c   : > { %v2509_v32 = vpop.permute.xlu0 %2508 }
0x115e   : > { %2504 = vrot.lane.b32.xlu2 %v6507_v19, %s5515_s20 }
0x1166   : > { %2510 = vrot.lane.b32.xlu2 %v6497_v0, %s5515_s20 }
0x1167   : > { %2506 = vrot.lane.b32.xlu1 %v6515_v28, %s5515_s20 }
0x11b9   : > { %v2457_v18 = vpop.xlane.xlu2 %2456 }
0x11ba   : > { %5073 = vrcp.f32 %v2457_v18  ;;  %v6633_v18 = vld [vmem:[%s5794_s12 + $0x58] sm:$0xff] }
0x11c0   : > { %v5074_v44 = vpop.eup %5073 }
0x11c1   : > { %v2463_v39 = vmul.f32 %v5074_v44, %v5070_v7  ;;  %v2505_v36 = vpop.permute.xlu2 %2504  ;;  %v2460_v14 = vpop.xlane.xlu1 %2459  ;;  %v6642_v44 = vld [vmem:[%s5786_s15 + $0x50] sm:$0xff] }
0x11c2   : > { %5075 = vrcp.f32 %v2460_v14  ;;  %v6626_v7 = vpop.f32.mrf.mxu3 }
0x11c3   : > { %4511 = vmatmul.msk.f32.vlgmr.msra.gmra.mxu2 %vm569_vm1, %v2463_v39 }
0x11c8   : > { %v5076_v48 = vpop.eup %5075 }
0x11c9   : > { %v2511_v49 = vpop.permute.xlu2 %2510  ;;  %v2464_v37 = vmul.f32 %v5076_v48, %v5072_v12 }
0x11ca   : > { %4515 = vmatpush.xpose.msk.msrb.mxu1 %vm531_vm0, %v2511_v49 }
0x11cb   : > { %4512 = vmatmul.msk.f32.gmra.mxu2 %vm569_vm1, %v2464_v37 }
0x11ce   : > { %4516 = vmatpush.xpose.msk.msrb.mxu1 %vm531_vm0, %v2509_v32 }
0x11d1   : > { %4517 = vmatmul.msk.f32.vlgmr.msrb.gmra.mxu1 %vm531_vm0, %v2505_v36 }
0x11d2   : > { %4540 = vmatpush.xpose.msk.msra.mxu1 %vm531_vm0, %v6633_v18 }
0x11d9   : > { %v2507_v25 = vpop.permute.xlu1 %2506 }
0x11da   : > { %4518 = vmatmul.msk.f32.gmra.mxu1 %vm531_vm0, %v2507_v25  ;;  %v4534_v25 = vld [vmem:[%s5786_s15 + $0x58] sm:$0xff] }
0x1246   : > { %v2496_v14 = vpop.f32.mrf.mxu2 }
0x124e   : > { %v2537_v55 = vpop.f32.mrf.mxu1  ;;  %v2499_v32 = vpop.f32.mrf.mxu2 }
0x124f   : > { %v2538_v8 = vadd.f32 %v6521_v62, %v2537_v55 }
0x1251   : > { %v2543_v58 = vadd.f32 %v6589_v51, %v2538_v8 }
0x1253   : > { %v2545_v61 = vsel %vm569_vm1, %v2543_v58, -inf }
0x1254   : > { %2546 = vmax.xlane.f32.xlu0 %v2545_v61 }
0x1257   : > { %v2540_v63 = vpop.f32.mrf.mxu1 }
0x1258   : > { %v2541_v5 = vadd.f32 %v6521_v62, %v2540_v63 }
0x125a   : > { %v2544_v52 = vadd.f32 %v6595_v29, %v2541_v5  ;;  %v6654_v5 = vld [vmem:[%s5812_s27 + $0x5] ss:$0 sm:$0xff] }
0x125c   : > { %v2548_v42 = vsel %vm569_vm1, %v2544_v52, -inf }
0x125d   : > { %2549 = vmax.xlane.f32.xlu1 %v2548_v42 }
0x1276   : > { %4871 = vrot.lane.b32.xlu1 %v6568_v33, %s5515_s20 }
0x127e   : > { %2608 = vrot.lane.b32.xlu1 %v6502_v22, %s5516_s9 }
0x12c7   : > { %v2547_v50 = vpop.xlane.xlu0 %2546 }
0x12c8   : > { %v2551_v21 = vsub.f32 %v2543_v58, %v2547_v50 }
0x12ca   : > { %v2553_v34 = vmul.f32 1.442695, %v2551_v21  ;;  %v5190_v21 = vld [vmem:[%s5814_s5] sm:$0xff] }
0x12cc   : > { %5077 = vpow2.f32 %v2553_v34 }
0x12d0   : > { %v2550_v60 = vpop.xlane.xlu1 %2549 }
0x12d1   : > { %v2552_v45 = vsub.f32 %v2544_v52, %v2550_v60 }
0x12d2   : > { %v5078_v47 = vpop.eup %5077 }
0x12d3   : > { %v2555_v11 = vmul.f32 1.442695, %v2552_v45  ;;  %v2557_v59 = vsel %vm569_vm1, %v5078_v47, 0.0  ;;  %v6664_v45 = vld [vmem:[%s5786_s15 + $0x60] sm:$0xff] }
0x12d4   : > { %2558 = vadd.xlane.f32.xlu2 %v2557_v59  ;;  %v6681_v59 = vld [vmem:[%s5794_s12 + $0x70] sm:$0xff] }
0x12d5   : > { %5079 = vpow2.f32 %v2555_v11  ;;  %v6676_v11 = vld [vmem:[%s5786_s15 + $0x78] sm:$0xff] }
0x12db   : > { %v5080_v10 = vpop.eup %5079 }
0x12dc   : > { %v2560_v23 = vsel %vm569_vm1, %v5080_v10, 0.0 }
0x12dd   : > { %2561 = vadd.xlane.f32.xlu0 %v2560_v23 }
0x12e8   : > { %v4872_v22 = vpop.permute.xlu1 %4871 }
0x12e9   : > { %v4874_v2 = vunpack.i.h.bf16 %v4872_v22  ;;  %v4873_v17 = vunpack.i.l.bf16 %v4872_v22 }
0x12eb   : > { %2593 = vmatpush.msrb.mxu3 %v4874_v2  ;;  %v5191_v2 = vld [vmem:[%s5814_s5 + $0x8] sm:$0xff] }
0x12ec   : > { %2604 = vrot.lane.b32.xlu2 %v6507_v19, %s5516_s9 }
0x12ed   : > { %2594 = vmatpush.msrb.mxu3 %v4873_v17 }
0x12f1   : > { %2606 = vrot.lane.b32.xlu0 %v6515_v28, %s5516_s9 }
0x12f9   : > { %2610 = vrot.lane.b32.xlu0 %v6497_v0, %s5516_s9  ;;  %v2609_v0 = vpop.permute.xlu1 %2608 }
0x1347   : > { %v2559_v57 = vpop.xlane.xlu2 %2558 }
0x1348   : > { %5081 = vrcp.f32 %v2559_v57 }
0x134e   : > { %v5082_v20 = vpop.eup %5081 }
0x134f   : > { %v2565_v1 = vmul.f32 %v5082_v20, %v5078_v47  ;;  %v2605_v13 = vpop.permute.xlu2 %2604  ;;  %v6671_v47 = vld [vmem:[%s5794_s12 + $0x78] sm:$0xff] }
0x1350   : > { %v2562_v27 = vpop.xlane.xlu0 %2561 }
0x1351   : > { %5083 = vrcp.f32 %v2562_v27  ;;  %4519 = vmatmul.msk.f32.vlgmr.msrb.gmra.mxu3 %vm569_vm1, %v2565_v1 }
0x1357   : > { %v5084_v19 = vpop.eup %5083 }
0x1358   : > { %v2566_v30 = vmul.f32 %v5084_v19, %v5080_v10  ;;  %v6686_v10 = vld [vmem:[%s5786_s15 + $0x70] sm:$0xff] }
0x135a   : > { %4520 = vmatmul.msk.f32.gmra.mxu3 %vm569_vm1, %v2566_v30  ;;  %v6716_v30 = vld [vmem:[%s5794_s12 + $0x60] sm:$0xff] }
0x1363   : > { %v2607_v28 = vpop.permute.xlu0 %2606 }
0x136b   : > { %v2611_v31 = vpop.permute.xlu0 %2610 }
0x136c   : > { %4523 = vmatpush.xpose.msk.msrb.mxu0 %vm531_vm0, %v2611_v31  ;;  %v6726_v31 = vld [vmem:[%s5786_s15 + $0x68] sm:$0xff]  ;;  %s7377_s15 = sld [smem:[#allocation21_spill]] }
0x1370   : > { %4524 = vmatpush.xpose.msk.msrb.mxu0 %vm531_vm0, %v2609_v0 }
0x1372   : > { %s4659_s21 = sshll.u32 %s7377_s15, 5  ;;  %s5394_s15 = scalar_lea.hbm %s7378_s0, 512 }
0x1373   : > { %4525 = vmatmul.msk.f32.vlgmr.msrb.gmra.mxu0 %vm531_vm0, %v2605_v13 }
0x137b   : > { %4526 = vmatmul.msk.f32.gmra.mxu0 %vm531_vm0, %v2607_v28  ;;  %v6719_v28 = vld [vmem:[%s5794_s12 + $0x68] sm:$0xff] }
0x13d4   : > { %v2596_v35 = vpop.f32.mrf.mxu3 }
0x13f0   : > { %v2637_v40 = vpop.f32.mrf.mxu0 }
0x13f1   : > { %v2638_v53 = vadd.f32 %v6521_v62, %v2637_v40 }
0x13f3   : > { %v2643_v56 = vadd.f32 %v6476_v46, %v2638_v53  ;;  %v2599_v46 = vpop.f32.mrf.mxu3 }
0x13f5   : > { %v2645_v26 = vsel %vm569_vm1, %v2643_v56, -inf }
0x13f6   : > { %2646 = vmax.xlane.f32.xlu2 %v2645_v26 }
0x13f8   : > { %v2640_v16 = vpop.f32.mrf.mxu0 }
0x13f9   : > { %v2641_v3 = vadd.f32 %v6521_v62, %v2640_v16 }
0x13fb   : > { %v2644_v38 = vadd.f32 %v6482_v9, %v2641_v3  ;;  %v4529_v3 = vld [vmem:[%s5804_s28 + $0x40] sm:$0xff] }
0x13fd   : > { %v2648_v24 = vsel %vm569_vm1, %v2644_v38, -inf }
0x13fe   : > { %2649 = vmax.xlane.f32.xlu1 %v2648_v24 }
0x1417   : > { %4876 = vrot.lane.b32.xlu1 %v6568_v33, %s5516_s9  ;;  %v4535_v33 = vld [vmem:[%s5794_s12 + $0x50] sm:$0xff]  ;;  %s4085_s12 = sadd.s32 %s4668_s19, %s4659_s21 }
0x1418   : > { %4541 = vmatpush.xpose.msk.msra.mxu1 %vm531_vm0, %v4535_v33 }
0x141b   : > { %4542 = vmatmul.msk.f32.vlgmr.msra.gmra.mxu1 %vm531_vm0, %v6642_v44 }
0x141f   : > { %2714 = vrot.lane.b32.xlu1 %v2599_v46, %s5515_s20 }
0x1423   : > { %4543 = vmatmul.msk.f32.gmra.mxu1 %vm531_vm0, %v4534_v25 }
0x1427   : > { %2852 = vrot.lane.b32.xlu1 %v6633_v18, %s5514_s3 }
0x1469   : > { %v2647_v54 = vpop.xlane.xlu2 %2646 }
0x146a   : > { %v2651_v62 = vsub.f32 %v2643_v56, %v2647_v54 }
0x146c   : > { %v2653_v9 = vmul.f32 1.442695, %v2651_v62 }
0x146e   : > { %5085 = vpow2.f32 %v2653_v9 }
0x1471   : > { %v2650_v12 = vpop.xlane.xlu1 %2649 }
0x1472   : > { %v2652_v41 = vsub.f32 %v2644_v38, %v2650_v12 }
0x1474   : > { %v5086_v6 = vpop.eup %5085  ;;  %v2655_v43 = vmul.f32 1.442695, %v2652_v41 }
0x1475   : > { %v2657_v4 = vsel %vm569_vm1, %v5086_v6, 0.0 }
0x1476   : > { %5087 = vpow2.f32 %v2655_v43  ;;  %2658 = vadd.xlane.f32.xlu0 %v2657_v4  ;;  %v4530_v43 = vld [vmem:[%s5804_s28 + $0x48] sm:$0xff] }
0x147c   : > { %v5088_v39 = vpop.eup %5087 }
0x147d   : > { %v2660_v36 = vsel %vm569_vm1, %v5088_v39, 0.0 }
0x147e   : > { %2661 = vadd.xlane.f32.xlu2 %v2660_v36 }
0x1489   : > { %v4877_v48 = vpop.permute.xlu1 %4876 }
0x148a   : > { %v4879_v49 = vunpack.i.h.bf16 %v4877_v48  ;;  %v4878_v37 = vunpack.i.l.bf16 %v4877_v48  ;;  %2704 = vrot.lane.b32.xlu0 %v2496_v14, %s5516_s9 }
0x148c   : > { %2693 = vmatpush.msrb.mxu2 %v4879_v49 }
0x148e   : > { %2694 = vmatpush.msrb.mxu2 %v4878_v37 }
0x1491   : > { %v2715_v27 = vpop.permute.xlu1 %2714 }
0x1492   : > { %2712 = vrot.lane.b32.xlu0 %v2596_v35, %s5515_s20 }
0x1496   : > { %2706 = vrot.lane.b32.xlu2 %v2499_v32, %s5516_s9 }
0x1498   : > { %v2785_v42 = vpop.f32.mrf.mxu1 }
0x1499   : > { %v2786_v50 = vadd.f32 %v6654_v5, %v2785_v42  ;;  %v2853_v19 = vpop.permute.xlu1 %2852 }
0x149a   : > { %4548 = vmatpush.xpose.msk.msra.mxu0 %vm531_vm0, %v2853_v19 }
0x149b   : > { %v6659_v34 = vadd.f32 %v5190_v21, %v2786_v50 }
0x149d   : > { %v2793_v60 = vsel %vm569_vm1, %v6659_v34, -inf }
0x149e   : > { %2794 = vmax.xlane.f32.xlu1 %v2793_v60 }
0x14a0   : > { %v2788_v23 = vpop.f32.mrf.mxu1 }
0x14a1   : > { %v2789_v22 = vadd.f32 %v6654_v5, %v2788_v23 }
0x14a3   : > { %v6692_v17 = vadd.f32 %v5191_v2, %v2789_v22 }
0x14a5   : > { %v2796_v20 = vsel %vm569_vm1, %v6692_v17, -inf }
0x14b7   : > { %3290 = vrot.lane.b32.xlu1 %v6664_v45, %s5514_s3 }
0x14bf   : > { %3492 = vrot.lane.b32.xlu1 %v6664_v45, %s5516_s9 }
0x14c7   : > { %3740 = vrot.lane.b32.xlu1 %v6671_v47, %s5514_s3 }
0x14cf   : > { %3736 = vrot.lane.b32.xlu1 %v6676_v11, %s5514_s3 }
0x14d7   : > { %3840 = vrot.lane.b32.xlu1 %v6681_v59, %s5515_s20 }
0x14df   : > { %3936 = vrot.lane.b32.xlu1 %v6686_v10, %s5516_s9 }
0x14e9   : > { %v2659_v55 = vpop.xlane.xlu0 %2658 }
0x14ea   : > { %5089 = vrcp.f32 %v2659_v55 }
0x14f0   : > { %v5090_v8 = vpop.eup %5089 }
0x14f1   : > { %v2665_v58 = vmul.f32 %v5090_v8, %v5086_v6  ;;  %v2662_v61 = vpop.xlane.xlu2 %2661 }
0x14f2   : > { %5091 = vrcp.f32 %v2662_v61 }
0x14f3   : > { %4527 = vmatmul.msk.f32.vlgmr.msrb.gmra.mxu2 %vm569_vm1, %v2665_v58 }
0x14f8   : > { %v5092_v63 = vpop.eup %5091 }
0x14f9   : > { %v2666_v52 = vmul.f32 %v5092_v63, %v5088_v39  ;;  %v2707_v53 = vpop.permute.xlu2 %2706 }
0x14fa   : > { %v2727_v6 = vsel %vm531_vm0, %v6626_v7, %v2707_v53 }
0x14fb   : > { %4528 = vmatmul.msk.f32.gmra.mxu2 %vm569_vm1, %v2666_v52 }
0x14fc   : > { %v2705_v13 = vpop.permute.xlu0 %2704 }
0x14fd   : > { %v2726_v16 = vsel %vm531_vm0, %v6624_v15, %v2705_v13  ;;  %v6860_v13 = vld [vmem:[%s5814_s5 + $0x10] sm:$0xff] }
0x1504   : > { %v2713_v56 = vpop.permute.xlu0 %2712 }
0x1505   : > { %v2728_v38 = vsel %vm952_vm2, %v2726_v16, %v2713_v56  ;;  %v6866_v16 = vld [vmem:[%s5814_s5 + $0x18] sm:$0xff] }
0x1509   : > { %2797 = vmax.xlane.f32.xlu1 %v2796_v20 }
0x1511   : > { %v2795_v0 = vpop.xlane.xlu1 %2794 }
0x1529   : > { %v6736_v40 = vpop.permute.xlu1 %3290 }
0x1531   : > { %v6742_v26 = vpop.permute.xlu1 %3492 }
0x1539   : > { %v6758_v54 = vpop.permute.xlu1 %3740 }
0x1541   : > { %v6765_v9 = vpop.permute.xlu1 %3736 }
0x1549   : > { %v6772_v41 = vpop.permute.xlu1 %3840 }
0x1551   : > { %v6785_v36 = vpop.permute.xlu1 %3936 }
0x1576   : > { %v2696_v57 = vpop.f32.mrf.mxu2 }
0x1577   : > { %2720 = vrot.lane.b32.xlu2 %v2696_v57, %s5514_s3 }
0x157c   : > { %v2798_v48 = vpop.xlane.xlu1 %2797 }
0x157d   : > { %v2800_v32 = vsub.f32 %v6692_v17, %v2798_v48  ;;  %v6894_v48 = vld [vmem:[%s5814_s5] sm:$0xff] }
0x157e   : > { %v2699_v1 = vpop.f32.mrf.mxu2 }
0x157f   : > { %2850 = vrot.lane.b32.xlu2 %v4535_v33, %s5514_s3  ;;  %2722 = vrot.lane.b32.xlu0 %v2699_v1, %s5514_s3  ;;  %v2803_v55 = vmul.f32 1.442695, %v2800_v32 }
0x1581   : > { %5093 = vpow2.f32 %v2803_v55  ;;  %v6903_v55 = vld [vmem:[%s5812_s27 + $0x7] ss:$0 sm:$0xff] }
0x1587   : > { %2848 = vrot.lane.b32.xlu2 %v4534_v25, %s5514_s3  ;;  %2846 = vrot.lane.b32.xlu0 %v6642_v44, %s5514_s3  ;;  %v6798_v42 = vpop.eup %5093 }
0x1588   : > { %v2808_v21 = vsel %vm569_vm1, %v6798_v42, 0.0 }
0x158f   : > { %3054 = vrot.lane.b32.xlu2 %v6633_v18, %s5516_s9  ;;  %2954 = vrot.lane.b32.xlu0 %v6633_v18, %s5515_s20  ;;  %v2729_v18 = vsel %vm952_vm2, %v2727_v6, %v2715_v27 }
0x1597   : > { %3052 = vrot.lane.b32.xlu2 %v4535_v33, %s5516_s9  ;;  %2952 = vrot.lane.b32.xlu0 %v4535_v33, %s5515_s20 }
0x159f   : > { %3048 = vrot.lane.b32.xlu2 %v6642_v44, %s5516_s9  ;;  %2948 = vrot.lane.b32.xlu0 %v6642_v44, %s5515_s20 }
0x15a7   : > { %3050 = vrot.lane.b32.xlu2 %v4534_v25, %s5516_s9  ;;  %2950 = vrot.lane.b32.xlu0 %v4534_v25, %s5515_s20  ;;  %v2799_v25 = vsub.f32 %v6659_v34, %v2795_v0  ;;  %v6856_v0 = vld [vmem:[%s5801_s1 + $0x50] sm:$0xff] }
0x15a9   : > { %v2801_v61 = vmul.f32 1.442695, %v2799_v25 }
0x15ab   : > { %5095 = vpow2.f32 %v2801_v61 }
0x15af   : > { %3294 = vrot.lane.b32.xlu2 %v6716_v30, %s5514_s3  ;;  %3296 = vrot.lane.b32.xlu0 %v6719_v28, %s5514_s3 }
0x15b1   : > { %v6803_v50 = vpop.eup %5095 }
0x15b2   : > { %v2805_v34 = vsel %vm569_vm1, %v6803_v50, 0.0 }
0x15b7   : > { %3398 = vrot.lane.b32.xlu2 %v6719_v28, %s5515_s20  ;;  %3292 = vrot.lane.b32.xlu0 %v6726_v31, %s5514_s3 }
0x15bf   : > { %3396 = vrot.lane.b32.xlu2 %v6716_v30, %s5515_s20  ;;  %3498 = vrot.lane.b32.xlu0 %v6719_v28, %s5516_s9 }
0x15c7   : > { %3392 = vrot.lane.b32.xlu2 %v6664_v45, %s5515_s20  ;;  %3496 = vrot.lane.b32.xlu0 %v6716_v30, %s5516_s9 }
0x15cf   : > { %3494 = vrot.lane.b32.xlu2 %v6726_v31, %s5516_s9  ;;  %3394 = vrot.lane.b32.xlu0 %v6726_v31, %s5515_s20 }
0x15d1   : > { %v2721_v24 = vpop.permute.xlu2 %2720 }
0x15d2   : > { %v2730_v35 = vsel %vm955_vm3, %v2728_v38, %v2721_v24 }
0x15d3   : > { %v2735_v46 = vmul.f32 %v4529_v3, %v2730_v35 }
0x15d5   : > { %4531 = vst [vmem:[%s6374_s17 + $0x40] sm:$0xff] %v2735_v46 }
0x15d7   : > { %3734 = vrot.lane.b32.xlu2 %v6686_v10, %s5514_s3  ;;  %3738 = vrot.lane.b32.xlu0 %v6681_v59, %s5514_s3 }
0x15d9   : > { %v2851_v62 = vpop.permute.xlu2 %2850 }
0x15da   : > { %4549 = vmatpush.xpose.msk.msra.mxu0 %vm531_vm0, %v2851_v62 }
0x15df   : > { %3942 = vrot.lane.b32.xlu2 %v6671_v47, %s5516_s9  ;;  %3842 = vrot.lane.b32.xlu0 %v6671_v47, %s5515_s20 }
0x15e1   : > { %v2849_v15 = vpop.permute.xlu2 %2848 }
0x15e7   : > { %3836 = vrot.lane.b32.xlu2 %v6686_v10, %s5515_s20  ;;  %3940 = vrot.lane.b32.xlu0 %v6681_v59, %s5516_s9 }
0x15e9   : > { %v3055_v12 = vpop.permute.xlu2 %3054 }
0x15ea   : > { %4564 = vmatpush.xpose.msk.msrb.mxu0 %vm531_vm0, %v3055_v12 }
0x15ef   : > { %3938 = vrot.lane.b32.xlu2 %v6676_v11, %s5516_s9  ;;  %3838 = vrot.lane.b32.xlu0 %v6676_v11, %s5515_s20 }
0x15f1   : > { %v2723_v4 = vpop.permute.xlu0 %2722  ;;  %v3053_v33 = vpop.permute.xlu2 %3052 }
0x15f2   : > { %v2731_v44 = vsel %vm955_vm3, %v2729_v18, %v2723_v4  ;;  %4565 = vmatpush.xpose.msk.msrb.mxu0 %vm531_vm0, %v3053_v33 }
0x15f3   : > { %v2736_v39 = vmul.f32 %v4530_v43, %v2731_v44 }
0x15f5   : > { %4532 = vst [vmem:[%s6374_s17 + $0x48] sm:$0xff] %v2736_v39 }
0x15f9   : > { %v2847_v7 = vpop.permute.xlu0 %2846  ;;  %v3049_v14 = vpop.permute.xlu2 %3048 }
0x15fa   : > { %4550 = vmatmul.msk.f32.vlgmr.msra.gmra.mxu0 %vm531_vm0, %v2847_v7 }
0x1601   : > { %v2955_v49 = vpop.permute.xlu0 %2954  ;;  %v3051_v37 = vpop.permute.xlu2 %3050 }
0x1602   : > { %4551 = vmatmul.msk.f32.gmra.mxu0 %vm531_vm0, %v2849_v15  ;;  %4556 = vmatpush.xpose.msk.msrb.mxu1 %vm531_vm0, %v2955_v49 }
0x1609   : > { %v2953_v8 = vpop.permute.xlu0 %2952  ;;  %v3295_v58 = vpop.permute.xlu2 %3294 }
0x160a   : > { %4566 = vmatmul.msk.f32.vlgmr.msrb.gmra.mxu0 %vm531_vm0, %v3049_v14  ;;  %4557 = vmatpush.xpose.msk.msrb.mxu1 %vm531_vm0, %v2953_v8 }
0x160e   : > { %4581 = vmatpush.xpose.msk.msra.mxu1 %vm531_vm0, %v6719_v28 }
0x1611   : > { %v2949_v63 = vpop.permute.xlu0 %2948  ;;  %v3399_v52 = vpop.permute.xlu2 %3398 }
0x1612   : > { %4582 = vmatpush.xpose.msk.msra.mxu1 %vm531_vm0, %v6716_v30  ;;  %4567 = vmatmul.msk.f32.gmra.mxu0 %vm531_vm0, %v3051_v37 }
0x1613   : > { %4558 = vmatmul.msk.f32.vlgmr.msrb.gmra.mxu1 %vm531_vm0, %v2949_v63 }
0x1616   : > { %4597 = vmatpush.xpose.msk.msrb.mxu1 %vm531_vm0, %v3399_v52 }
0x1618   : > { %2809 = vadd.xlane.f32.xlu2 %v2808_v21 }
0x1619   : > { %v2951_v60 = vpop.permute.xlu0 %2950  ;;  %2806 = vadd.xlane.f32.xlu0 %v2805_v34  ;;  %v3397_v23 = vpop.permute.xlu2 %3396 }
0x161a   : > { %4598 = vmatpush.xpose.msk.msrb.mxu1 %vm531_vm0, %v3397_v23 }
0x161b   : > { %4559 = vmatmul.msk.f32.gmra.mxu1 %vm531_vm0, %v2951_v60 }
0x1621   : > { %v3297_v22 = vpop.permute.xlu0 %3296  ;;  %v3393_v17 = vpop.permute.xlu2 %3392 }
0x1622   : > { %4589 = vmatpush.xpose.msk.msra.mxu0 %vm531_vm0, %v3297_v22 }
0x1623   : > { %4583 = vmatmul.msk.f32.vlgmr.msra.gmra.mxu1 %vm531_vm0, %v6664_v45 }
0x1624   : > { %4622 = vmatpush.xpose.msk.msra.mxu1 %vm531_vm0, %v6671_v47 }
0x1626   : > { %4590 = vmatpush.xpose.msk.msra.mxu0 %vm531_vm0, %v3295_v58 }
0x1628   : > { %4623 = vmatpush.xpose.msk.msra.mxu1 %vm531_vm0, %v6681_v59 }
0x1629   : > { %v3293_v2 = vpop.permute.xlu0 %3292  ;;  %4591 = vmatmul.msk.f32.vlgmr.msra.gmra.mxu0 %vm531_vm0, %v6736_v40  ;;  %v3495_v45 = vpop.permute.xlu2 %3494 }
0x162b   : > { %4584 = vmatmul.msk.f32.gmra.mxu1 %vm531_vm0, %v6726_v31  ;;  %v6852_v31 = vld [vmem:[%s5801_s1 + $0x58] sm:$0xff] }
0x162c   : > { %2835 = vmatpush.msra.mxu3 %v6852_v31  ;;  %v4880_v12 = vpack.i.bf16 %v6852_v31, %v6856_v0 }
0x162e   : > { %2836 = vmatpush.msra.mxu3 %v6856_v0 }
0x1631   : > { %v3499_v57 = vpop.permute.xlu0 %3498  ;;  %4592 = vmatmul.msk.f32.gmra.mxu0 %vm531_vm0, %v3293_v2  ;;  %v3735_v20 = vpop.permute.xlu2 %3734 }
0x1632   : > { %4605 = vmatpush.xpose.msk.msrb.mxu0 %vm531_vm0, %v3499_v57 }
0x1633   : > { %4599 = vmatmul.msk.f32.vlgmr.msrb.gmra.mxu1 %vm531_vm0, %v3393_v17 }
0x1639   : > { %v3497_v47 = vpop.permute.xlu0 %3496  ;;  %v3943_v27 = vpop.permute.xlu2 %3942 }
0x163a   : > { %4606 = vmatpush.xpose.msk.msrb.mxu0 %vm531_vm0, %v3497_v47 }
0x163d   : > { %4607 = vmatmul.msk.f32.vlgmr.msrb.gmra.mxu0 %vm531_vm0, %v6742_v26 }
0x163e   : > { %4630 = vmatpush.xpose.msk.msra.mxu0 %vm531_vm0, %v6758_v54 }
0x1641   : > { %v3395_v59 = vpop.permute.xlu0 %3394 }
0x1642   : > { %4600 = vmatmul.msk.f32.gmra.mxu1 %vm531_vm0, %v3395_v59 }
0x1645   : > { %4608 = vmatmul.msk.f32.gmra.mxu0 %vm531_vm0, %v3495_v45 }
0x1649   : > { %v3739_v1 = vpop.permute.xlu0 %3738 }
0x164a   : > { %4631 = vmatpush.xpose.msk.msra.mxu0 %vm531_vm0, %v3739_v1  ;;  %4624 = vmatmul.msk.f32.vlgmr.msra.gmra.mxu1 %vm531_vm0, %v6686_v10  ;;  %v3837_v10 = vpop.permute.xlu2 %3836 }
0x164d   : > { %4632 = vmatmul.msk.f32.vlgmr.msra.gmra.mxu0 %vm531_vm0, %v3735_v20 }
0x164e   : > { %4646 = vmatpush.xpose.msk.msrb.mxu0 %vm531_vm0, %v3943_v27 }
0x1651   : > { %v3843_v19 = vpop.permute.xlu0 %3842 }
0x1652   : > { %4625 = vmatmul.msk.f32.gmra.mxu1 %vm531_vm0, %v6676_v11  ;;  %v3939_v28 = vpop.permute.xlu2 %3938 }
0x1653   : > { %4638 = vmatpush.xpose.msk.msrb.mxu1 %vm531_vm0, %v3843_v19 }
0x1655   : > { %4633 = vmatmul.msk.f32.gmra.mxu0 %vm531_vm0, %v6765_v9 }
0x1657   : > { %4639 = vmatpush.xpose.msk.msrb.mxu1 %vm531_vm0, %v6772_v41 }
0x1659   : > { %v3941_v30 = vpop.permute.xlu0 %3940 }
0x165a   : > { %4640 = vmatmul.msk.f32.vlgmr.msrb.gmra.mxu1 %vm531_vm0, %v3837_v10  ;;  %4647 = vmatpush.xpose.msk.msrb.mxu0 %vm531_vm0, %v3941_v30 }
0x165d   : > { %4648 = vmatmul.msk.f32.vlgmr.msrb.gmra.mxu0 %vm531_vm0, %v6785_v36  ;;  %v6890_v36 = vld [vmem:[%s5812_s27 + $0x6] ss:$0 sm:$0xff]  ;;  %s4088_s27 = sshll.u32 %s6374_s17, 4  ;;  %s4089_s27 = int_to_ptr.vmem [resolvable:$true] %s4088_s27 }
0x1661   : > { %v3839_v11 = vpop.permute.xlu0 %3838 }
0x1662   : > { %4641 = vmatmul.msk.f32.gmra.mxu1 %vm531_vm0, %v3839_v11 }
0x1665   : > { %4649 = vmatmul.msk.f32.gmra.mxu0 %vm531_vm0, %v3939_v28 }
0x1677   : > { %v2879_v40 = vpop.f32.mrf.mxu0 }
0x1678   : > { %v2880_v53 = vadd.f32 %v6654_v5, %v2879_v40 }
0x167a   : > { %v2885_v56 = vadd.f32 %v6860_v13, %v2880_v53 }
0x167c   : > { %v2887_v26 = vsel %vm569_vm1, %v2885_v56, -inf }
0x167d   : > { %2888 = vmax.xlane.f32.xlu1 %v2887_v26 }
0x167f   : > { %v2882_v3 = vpop.f32.mrf.mxu0 }
0x1680   : > { %v2883_v38 = vadd.f32 %v6654_v5, %v2882_v3 }
0x1682   : > { %v2886_v24 = vadd.f32 %v6866_v16, %v2883_v38 }
0x1684   : > { %v2890_v35 = vsel %vm569_vm1, %v2886_v24, -inf }
0x1685   : > { %2891 = vmax.xlane.f32.xlu0 %v2890_v35 }
0x1687   : > { %v6871_v62 = vpop.f32.mrf.mxu0 }
0x168b   : > { %v2810_v54 = vpop.xlane.xlu2 %2809 }
0x168c   : > { %v2807_v46 = vpop.xlane.xlu0 %2806 }
0x168d   : > { %5097 = vrcp.f32 %v2807_v46 }
0x168e   : > { %5099 = vrcp.f32 %v2810_v54 }
0x168f   : > { %v6879_v43 = vpop.f32.mrf.mxu0 }
0x1690   : > { %v2981_v18 = vpop.f32.mrf.mxu1 }
0x1691   : > { %v2982_v17 = vadd.f32 %v6654_v5, %v2981_v18 }
0x1693   : > { %v5098_v15 = vpop.eup %5097  ;;  %v2987_v59 = vadd.f32 %v6589_v51, %v2982_v17 }
0x1694   : > { %v2813_v9 = vmul.f32 %v5098_v15, %v6803_v50  ;;  %v5100_v41 = vpop.eup %5099 }
0x1695   : > { %v2814_v6 = vmul.f32 %v5100_v41, %v6798_v42  ;;  %v2989_v27 = vsel %vm569_vm1, %v2987_v59, -inf }
0x1696   : > { %4544 = vmatmul.msk.f32.vlgmr.msra.gmra.mxu3 %vm569_vm1, %v2813_v9 }
0x1698   : > { %v2984_v44 = vpop.f32.mrf.mxu1 }
0x1699   : > { %4881 = vrot.lane.b32.xlu0 %v4880_v12, %s5514_s3  ;;  %v2985_v1 = vadd.f32 %v6654_v5, %v2984_v44 }
0x169b   : > { %v2988_v30 = vadd.f32 %v6595_v29, %v2985_v1 }
0x169d   : > { %v2992_v40 = vsel %vm569_vm1, %v2988_v30, -inf }
0x169e   : > { %4545 = vmatmul.msk.f32.gmra.mxu3 %vm569_vm1, %v2814_v6 }
0x16a0   : > { %v3229_v7 = vpop.f32.mrf.mxu1 }
0x16a1   : > { %4886 = vrot.lane.b32.xlu0 %v4880_v12, %s5515_s20  ;;  %v3230_v14 = vadd.f32 %v6890_v36, %v3229_v7 }
0x16a3   : > { %v3235_v37 = vadd.f32 %v3230_v14, %v6894_v48 }
0x16a5   : > { %v3237_v32 = vsel %vm569_vm1, %v3235_v37, -inf }
0x16a6   : > { %v6883_v4 = vpop.f32.mrf.mxu0 }
0x16a8   : > { %v6911_v52 = vpop.f32.mrf.mxu1 }
0x16ae   : > { %v6885_v33 = vpop.f32.mrf.mxu0 }
0x16b0   : > { %v6913_v42 = vpop.f32.mrf.mxu1 }
0x16ba   : > { %v6887_v39 = vpop.f32.mrf.mxu0 }
0x16bf   : > { %v6915_v21 = vpop.f32.mrf.mxu1 }
0x16c2   : > { %v6896_v49 = vpop.f32.mrf.mxu0 }
0x16c7   : > { %v6917_v22 = vpop.f32.mrf.mxu1 }
0x16ca   : > { %v6900_v25 = vpop.f32.mrf.mxu0 }
0x16cb   : > { %3238 = vmax.xlane.f32.xlu0 %v3237_v32 }
0x16cf   : > { %v6922_v20 = vpop.f32.mrf.mxu1 }
0x16d2   : > { %v3770_v8 = vpop.f32.mrf.mxu0 }
0x16d3   : > { %v3771_v58 = vadd.f32 %v6903_v55, %v3770_v8 }
0x16d5   : > { %v6907_v61 = vadd.f32 %v6866_v16, %v3771_v58 }
0x16d7   : > { %v3778_v63 = vsel %vm569_vm1, %v6907_v61, -inf  ;;  %v3869_v11 = vpop.f32.mrf.mxu1 }
0x16d8   : > { %3779 = vmax.xlane.f32.xlu0 %v3778_v63  ;;  %v3870_v28 = vadd.f32 %v6903_v55, %v3869_v11  ;;  %v5193_v11 = vld [vmem:[%s5814_s5 + $0x38] sm:$0xff] }
0x16df   : > { %v3872_v12 = vpop.f32.mrf.mxu1 }
0x16e0   : > { %v3873_v41 = vadd.f32 %v6903_v55, %v3872_v12 }
0x16e2   : > { %v6941_v44 = vadd.f32 %v6595_v29, %v3873_v41 }
0x16e4   : > { %v3880_v7 = vsel %vm569_vm1, %v6941_v44, -inf }
0x16f0   : > { %v2889_v50 = vpop.xlane.xlu1 %2888 }
0x16f1   : > { %v2893_v34 = vsub.f32 %v2885_v56, %v2889_v50  ;;  %v6931_v56 = vadd.f32 %v6589_v51, %v3870_v28 }
0x16f3   : > { %v2895_v60 = vmul.f32 1.442695, %v2893_v34  ;;  %v3877_v38 = vsel %vm569_vm1, %v6931_v56, -inf }
0x16f4   : > { %3878 = vmax.xlane.f32.xlu0 %v3877_v38 }
0x16f5   : > { %5101 = vpow2.f32 %v2895_v60 }
0x16f8   : > { %v2892_v23 = vpop.xlane.xlu0 %2891 }
0x16f9   : > { %v2894_v2 = vsub.f32 %v2886_v24, %v2892_v23 }
0x16fb   : > { %v5102_v57 = vpop.eup %5101  ;;  %v2897_v45 = vmul.f32 1.442695, %v2894_v2 }
0x16fc   : > { %v2899_v47 = vsel %vm569_vm1, %v5102_v57, 0.0 }
0x16fd   : > { %5103 = vpow2.f32 %v2897_v45  ;;  %2900 = vadd.xlane.f32.xlu2 %v2899_v47 }
0x1703   : > { %v5104_v19 = vpop.eup %5103 }
0x1704   : > { %v2902_v10 = vsel %vm569_vm1, %v5104_v19, 0.0 }
0x1705   : > { %2903 = vadd.xlane.f32.xlu1 %v2902_v10  ;;  %2990 = vmax.xlane.f32.xlu2 %v2989_v27  ;;  %v3324_v10 = vadd.f32 %v6890_v36, %v6883_v4  ;;  %v3327_v4 = vadd.f32 %v6890_v36, %v6885_v33  ;;  %v3426_v33 = vadd.f32 %v6890_v36, %v6913_v42 }
0x1707   : > { %v6984_v38 = vadd.f32 %v6866_v16, %v3327_v4  ;;  %v3529_v16 = vadd.f32 %v6890_v36, %v6896_v49 }
0x170b   : > { %v4882_v53 = vpop.permute.xlu0 %4881 }
0x170c   : > { %v4884_v26 = vunpack.i.h.bf16 %v4882_v53  ;;  %v4883_v3 = vunpack.i.l.bf16 %v4882_v53 }
0x170d   : > { %2993 = vmax.xlane.f32.xlu1 %v2992_v40  ;;  %v6970_v40 = vadd.f32 %v6860_v13, %v3324_v10 }
0x170e   : > { %2937 = vmatpush.msra.mxu2 %v4884_v26 }
0x170f   : > { %v3331_v53 = vsel %vm569_vm1, %v6970_v40, -inf }
0x1710   : > { %2938 = vmatpush.msra.mxu2 %v4883_v3 }
0x1713   : > { %v4887_v24 = vpop.permute.xlu0 %4886 }
0x1714   : > { %v4889_v35 = vunpack.i.h.bf16 %v4887_v24  ;;  %v4888_v46 = vunpack.i.l.bf16 %v4887_v24  ;;  %v3526_v24 = vadd.f32 %v6890_v36, %v6887_v39 }
0x1716   : > { %3037 = vmatpush.msrb.mxu3 %v4889_v35  ;;  %v3334_v35 = vsel %vm569_vm1, %v6984_v38, -inf }
0x1718   : > { %3038 = vmatpush.msrb.mxu3 %v4888_v46 }
0x173e   : > { %v3239_v54 = vpop.xlane.xlu0 %3238 }
0x173f   : > { %v3243_v15 = vsub.f32 %v3235_v37, %v3239_v54  ;;  %v6997_v54 = vadd.f32 %v6589_v51, %v3426_v33  ;;  %v3674_v51 = vadd.f32 %v6903_v55, %v6917_v22  ;;  %v3677_v22 = vadd.f32 %v6903_v55, %v6922_v20 }
0x1741   : > { %v3245_v9 = vmul.f32 1.442695, %v3243_v15  ;;  %v3429_v15 = vadd.f32 %v6890_v36, %v6915_v21  ;;  %v3433_v42 = vsel %vm569_vm1, %v6997_v54, -inf  ;;  %v7021_v41 = vadd.f32 %v3674_v51, %v6894_v48 }
0x1743   : > { %5105 = vpow2.f32 %v3245_v9  ;;  %v7007_v9 = vadd.f32 %v5193_v11, %v3529_v16  ;;  %v7010_v12 = vadd.f32 %v6595_v29, %v3429_v15 }
0x1745   : > { %v3536_v49 = vsel %vm569_vm1, %v7007_v9, -inf  ;;  %v3436_v21 = vsel %vm569_vm1, %v7010_v12, -inf }
0x1749   : > { %v6936_v6 = vpop.eup %5105 }
0x174a   : > { %v3249_v18 = vsel %vm569_vm1, %v6936_v6, 0.0 }
0x174b   : > { %3250 = vadd.xlane.f32.xlu0 %v3249_v18  ;;  %v7042_v20 = vpop.xlane.xlu0 %3779 }
0x1753   : > { %3881 = vmax.xlane.f32.xlu0 %v3880_v7 }
0x1770   : > { %v2901_v14 = vpop.xlane.xlu2 %2900 }
0x1771   : > { %5107 = vrcp.f32 %v2901_v14  ;;  %v4578_v14 = vld [vmem:[%s5801_s1 + $0x60] sm:$0xff] }
0x1777   : > { %v5108_v37 = vpop.eup %5107 }
0x1778   : > { %v2907_v32 = vmul.f32 %v5108_v37, %v5102_v57  ;;  %v2991_v8 = vpop.xlane.xlu2 %2990  ;;  %v2904_v58 = vpop.xlane.xlu1 %2903  ;;  %v3082_v57 = vadd.f32 %v6654_v5, %v6871_v62 }
0x1779   : > { %v2995_v63 = vsub.f32 %v2987_v59, %v2991_v8  ;;  %5109 = vrcp.f32 %v2904_v58  ;;  %v5192_v59 = vld [vmem:[%s5814_s5 + $0x30] sm:$0xff]  ;;  %v7044_v8 = vpop.xlane.xlu0 %3878 }
0x177a   : > { %4552 = vmatmul.msk.f32.vlgmr.msra.gmra.mxu2 %vm569_vm1, %v2907_v32  ;;  %v6954_v1 = vadd.f32 %v5192_v59, %v3082_v57  ;;  %v6994_v46 = vadd.f32 %v5192_v59, %v3526_v24 }
0x177b   : > { %v2997_v50 = vmul.f32 1.442695, %v2995_v63 }
0x177c   : > { %v3089_v62 = vsel %vm569_vm1, %v6954_v1, -inf  ;;  %v3533_v39 = vsel %vm569_vm1, %v6994_v46, -inf }
0x177d   : > { %5111 = vpow2.f32 %v2997_v50 }
0x177f   : > { %v5110_v34 = vpop.eup %5109 }
0x1780   : > { %v2994_v60 = vpop.xlane.xlu1 %2993  ;;  %v2908_v23 = vmul.f32 %v5110_v34, %v5104_v19  ;;  %v3085_v19 = vadd.f32 %v6654_v5, %v6879_v43  ;;  %v3233_v5 = vadd.f32 %v6890_v36, %v6911_v52  ;;  %v3196_v43 = vld [vmem:[%s5814_s5 + $0x8] sm:$0xff]  ;;  %v3768_v36 = vadd.f32 %v6903_v55, %v6900_v25 }
0x1781   : > { %v2996_v2 = vsub.f32 %v2988_v30, %v2994_v60  ;;  %v3681_v25 = vsel %vm569_vm1, %v7021_v41, -inf  ;;  %v7032_v7 = vadd.f32 %v3677_v22, %v3196_v43 }
0x1782   : > { %4553 = vmatmul.msk.f32.gmra.mxu2 %vm569_vm1, %v2908_v23  ;;  %v6967_v28 = vadd.f32 %v5193_v11, %v3085_v19  ;;  %v6981_v3 = vadd.f32 %v3233_v5, %v3196_v43  ;;  %v7024_v29 = vadd.f32 %v6860_v13, %v3768_v36  ;;  %v4579_v13 = vld [vmem:[%s5801_s1 + $0x68] sm:$0xff]  ;;  %v3969_v43 = vpop.f32.mrf.mxu0 }
0x1783   : > { %v6947_v17 = vpop.eup %5111  ;;  %v2999_v45 = vmul.f32 1.442695, %v2996_v2  ;;  %v3684_v48 = vsel %vm569_vm1, %v7032_v7, -inf  ;;  %v7038_v37 = vpack.i.bf16 %v4578_v14, %v4579_v13  ;;  %3279 = vmatpush.msra.mxu3 %v4579_v13  ;;  %v3970_v4 = vadd.f32 %v6903_v55, %v3969_v43 }
0x1784   : > { %v3001_v47 = vsel %vm569_vm1, %v6947_v17, 0.0  ;;  %v3092_v26 = vsel %vm569_vm1, %v6967_v28, -inf  ;;  %v3240_v52 = vsel %vm569_vm1, %v6981_v3, -inf  ;;  %v3775_v18 = vsel %vm569_vm1, %v7024_v29, -inf }
0x1785   : > { %5113 = vpow2.f32 %v2999_v45  ;;  %3002 = vadd.xlane.f32.xlu2 %v3001_v47  ;;  %4896 = vrot.lane.b32.xlu0 %v7038_v37, %s5514_s3 }
0x1786   : > { %3280 = vmatpush.msra.mxu3 %v4578_v14 }
0x178b   : > { %v6956_v27 = vpop.eup %5113 }
0x178c   : > { %v3004_v30 = vsel %vm569_vm1, %v6956_v27, 0.0 }
0x178d   : > { %3090 = vmax.xlane.f32.xlu2 %v3089_v62  ;;  %3005 = vadd.xlane.f32.xlu1 %v3004_v30 }
0x1795   : > { %3332 = vmax.xlane.f32.xlu2 %v3331_v53  ;;  %3093 = vmax.xlane.f32.xlu1 %v3092_v26  ;;  %v4644_v26 = vld [vmem:[%s5814_s5 + $0x30] sm:$0xff] }
0x179d   : > { %3335 = vmax.xlane.f32.xlu2 %v3334_v35  ;;  %3241 = vmax.xlane.f32.xlu1 %v3240_v52 }
0x17a5   : > { %3534 = vmax.xlane.f32.xlu2 %v3533_v39  ;;  %3434 = vmax.xlane.f32.xlu1 %v3433_v42 }
0x17ad   : > { %3537 = vmax.xlane.f32.xlu2 %v3536_v49  ;;  %3437 = vmax.xlane.f32.xlu1 %v3436_v21  ;;  %v4890_v49 = vpack.i.bf16 %v6856_v0, %v6852_v31 }
0x17b5   : > { %3776 = vmax.xlane.f32.xlu2 %v3775_v18  ;;  %3682 = vmax.xlane.f32.xlu1 %v3681_v25 }
0x17bd   : > { %3685 = vmax.xlane.f32.xlu2 %v3684_v48 }
0x17be   : > { %v3251_v2 = vpop.xlane.xlu0 %3250 }
0x17f8   : > { %v3003_v32 = vpop.xlane.xlu2 %3002 }
0x17f9   : > { %5115 = vrcp.f32 %v3003_v32 }
0x17ff   : > { %v5116_v58 = vpop.eup %5115 }
0x1800   : > { %v3009_v63 = vmul.f32 %v5116_v58, %v6947_v17  ;;  %v3091_v50 = vpop.xlane.xlu2 %3090  ;;  %v3006_v34 = vpop.xlane.xlu1 %3005 }
0x1801   : > { %v3095_v60 = vsub.f32 %v6954_v1, %v3091_v50  ;;  %5117 = vrcp.f32 %v3006_v34 }
0x1802   : > { %4560 = vmatmul.msk.f32.vlgmr.msrb.gmra.mxu3 %vm569_vm1, %v3009_v63 }
0x1803   : > { %v3097_v23 = vmul.f32 1.442695, %v3095_v60 }
0x1805   : > { %5119 = vpow2.f32 %v3097_v23 }
0x1806   : > { %5121 = vrcp.f32 %v3251_v2 }
0x1807   : > { %v5118_v45 = vpop.eup %5117 }
0x1808   : > { %v3333_v57 = vpop.xlane.xlu2 %3332  ;;  %v3094_v47 = vpop.xlane.xlu1 %3093  ;;  %v3010_v59 = vmul.f32 %v5118_v45, %v6956_v27 }
0x1809   : > { %v3096_v19 = vsub.f32 %v6967_v28, %v3094_v47  ;;  %v3337_v28 = vsub.f32 %v6970_v40, %v3333_v57  ;;  %v3972_v57 = vpop.f32.mrf.mxu0 }
0x180a   : > { %4561 = vmatmul.msk.f32.gmra.mxu3 %vm569_vm1, %v3010_v59  ;;  %v3973_v59 = vadd.f32 %v6903_v55, %v3972_v57 }
0x180b   : > { %v7052_v17 = vpop.eup %5119  ;;  %v3099_v1 = vmul.f32 1.442695, %v3096_v19  ;;  %v3339_v52 = vmul.f32 1.442695, %v3337_v28  ;;  %v4645_v19 = vld [vmem:[%s5814_s5 + $0x38] sm:$0xff] }
0x180c   : > { %v3101_v10 = vsel %vm569_vm1, %v7052_v17, 0.0  ;;  %v5122_v62 = vpop.eup %5121 }
0x180d   : > { %3102 = vadd.xlane.f32.xlu1 %v3101_v10  ;;  %5123 = vpow2.f32 %v3099_v1  ;;  %v3257_v30 = vmul.f32 %v5122_v62, %v6936_v6  ;;  %v7065_v6 = vadd.f32 %v4644_v26, %v3970_v4  ;;  %v7111_v10 = vadd.f32 %v4645_v19, %v3973_v59  ;;  %v2940_v59 = vpop.f32.mrf.mxu2 }
0x180e   : > { %5125 = vpow2.f32 %v3339_v52  ;;  %v3782_v4 = vsub.f32 %v6907_v61, %v7042_v20  ;;  %v3883_v52 = vsub.f32 %v6931_v56, %v7044_v8  ;;  %v3882_v56 = vpop.xlane.xlu0 %3881 }
0x180f   : > { %v3977_v40 = vsel %vm569_vm1, %v7065_v6, -inf  ;;  %v3980_v62 = vsel %vm569_vm1, %v7111_v10, -inf }
0x1810   : > { %v3336_v11 = vpop.xlane.xlu2 %3335  ;;  %v3242_v5 = vpop.xlane.xlu1 %3241 }
0x1811   : > { %v3244_v15 = vsub.f32 %v6981_v3, %v3242_v5 }
0x1812   : > { %4585 = vmatmul.msk.f32.vlgmr.msra.gmra.mxu3 %vm569_vm1, %v3257_v30  ;;  %v7116_v30 = vld [vmem:[%s5801_s1 + $0x70] sm:$0xff] }
0x1813   : > { %v7058_v27 = vpop.eup %5123  ;;  %v3247_v39 = vmul.f32 1.442695, %v3244_v15 }
0x1814   : > { %v3104_v53 = vsel %vm569_vm1, %v7058_v27, 0.0  ;;  %v7071_v36 = vpop.eup %5125 }
0x1815   : > { %3105 = vadd.xlane.f32.xlu2 %v3104_v53  ;;  %v3343_v22 = vsel %vm569_vm1, %v7071_v36, 0.0  ;;  %v3785_v53 = vmul.f32 1.442695, %v3782_v4 }
0x1818   : > { %v3535_v24 = vpop.xlane.xlu2 %3534  ;;  %v3435_v33 = vpop.xlane.xlu1 %3434 }
0x1819   : > { %v3539_v35 = vsub.f32 %v6994_v46, %v3535_v24  ;;  %v3338_v46 = vsub.f32 %v6984_v38, %v3336_v11  ;;  %v3439_v14 = vsub.f32 %v6997_v54, %v3435_v33  ;;  %v7119_v11 = vld [vmem:[%s5801_s1 + $0x78] sm:$0xff]  ;;  %s4660_s1 = sshll.u32 %s4085_s12, 3 }
0x181a   : > { %v7123_v5 = vpack.i.bf16 %v7116_v30, %v7119_v11  ;;  %s4087_s16 = scalar_lea.hbm %s7378_s0, %s4660_s1 }
0x181b   : > { %v3541_v16 = vmul.f32 1.442695, %v3539_v35  ;;  %v3341_v25 = vmul.f32 1.442695, %v3338_v46  ;;  %v3441_v32 = vmul.f32 1.442695, %v3439_v14 }
0x181c   : > { %s4090_s11 = sshll.u32 %s4087_s16, 4  ;;  %s4091_s11 = int_to_ptr.hbm [resolvable:$true] %s4090_s11 }
0x181d   : > { %5127 = vpow2.f32 %v3541_v16  ;;  %3978 = vmax.xlane.f32.xlu2 %v3977_v40  ;;  %v3884_v40 = vsub.f32 %v6941_v44, %v3882_v56 }
0x181e   : > { %5129 = vpow2.f32 %v3247_v39 }
0x181f   : > { %5131 = vpow2.f32 %v3341_v25 }
0x1820   : > { %v3538_v42 = vpop.xlane.xlu2 %3537  ;;  %v3438_v51 = vpop.xlane.xlu1 %3437 }
0x1821   : > { %v3440_v47 = vsub.f32 %v7010_v12, %v3438_v51  ;;  %v3540_v43 = vsub.f32 %v7007_v9, %v3538_v42  ;;  %v3885_v9 = vmul.f32 1.442695, %v3883_v52  ;;  %v7189_v52 = vpop.f32.mrf.mxu3 }
0x1823   : > { %v7075_v21 = vpop.eup %5127  ;;  %v3443_v1 = vmul.f32 1.442695, %v3440_v47  ;;  %v3543_v28 = vmul.f32 1.442695, %v3540_v43 }
0x1824   : > { %v3545_v3 = vsel %vm569_vm1, %v7075_v21, 0.0  ;;  %v7086_v0 = vpop.eup %5129 }
0x1825   : > { %3546 = vadd.xlane.f32.xlu0 %v3545_v3  ;;  %3344 = vadd.xlane.f32.xlu2 %v3343_v22  ;;  %v3252_v13 = vsel %vm569_vm1, %v7086_v0, 0.0  ;;  %v7092_v50 = vpop.eup %5131 }
0x1826   : > { %4891 = vrot.lane.b32.xlu1 %v4890_v49, %s5516_s9  ;;  %v3346_v54 = vsel %vm569_vm1, %v7092_v50, 0.0  ;;  %v3887_v49 = vmul.f32 1.442695, %v3884_v40 }
0x1828   : > { %v7083_v18 = vpop.xlane.xlu2 %3776  ;;  %v3683_v48 = vpop.xlane.xlu1 %3682 }
0x1829   : > { %v3687_v31 = vsub.f32 %v7021_v41, %v3683_v48  ;;  %v3781_v61 = vsub.f32 %v7024_v29, %v7083_v18  ;;  %v4897_v18 = vpop.permute.xlu0 %4896 }
0x182a   : > { %v4898_v44 = vunpack.i.l.bf16 %v4897_v18  ;;  %v4899_v14 = vunpack.i.h.bf16 %v4897_v18 }
0x182b   : > { %v3689_v38 = vmul.f32 1.442695, %v3687_v31  ;;  %v3783_v16 = vmul.f32 1.442695, %v3781_v61 }
0x182d   : > { %5133 = vpow2.f32 %v3689_v38  ;;  %3253 = vadd.xlane.f32.xlu2 %v3252_v13 }
0x182e   : > { %5135 = vpow2.f32 %v3441_v32 }
0x1830   : > { %v3686_v58 = vpop.xlane.xlu2 %3685 }
0x1831   : > { %v3688_v63 = vsub.f32 %v7032_v7, %v3686_v58 }
0x1833   : > { %v3691_v34 = vmul.f32 1.442695, %v3688_v63  ;;  %v7094_v60 = vpop.eup %5133 }
0x1834   : > { %v3693_v41 = vsel %vm569_vm1, %v7094_v60, 0.0  ;;  %v7100_v23 = vpop.eup %5135 }
0x1835   : > { %5137 = vpow2.f32 %v3691_v34  ;;  %3347 = vadd.xlane.f32.xlu2 %v3346_v54  ;;  %3694 = vadd.xlane.f32.xlu0 %v3693_v41  ;;  %v3445_v45 = vsel %vm569_vm1, %v7100_v23, 0.0 }
0x1836   : > { %5139 = vpow2.f32 %v3443_v1 }
0x1837   : > { %5141 = vpow2.f32 %v3543_v28 }
0x1838   : > { %5143 = vpow2.f32 %v3785_v53 }
0x1839   : > { %5145 = vpow2.f32 %v3885_v9  ;;  %v7196_v9 = vpop.f32.mrf.mxu3 }
0x183a   : > { %5147 = vpow2.f32 %v3783_v16 }
0x183b   : > { %v7102_v7 = vpop.eup %5137 }
0x183c   : > { %v3696_v2 = vsel %vm569_vm1, %v7102_v7, 0.0  ;;  %v7125_v12 = vpop.eup %5139 }
0x183d   : > { %3446 = vadd.xlane.f32.xlu2 %v3445_v45  ;;  %3697 = vadd.xlane.f32.xlu0 %v3696_v2  ;;  %v3448_v55 = vsel %vm569_vm1, %v7125_v12, 0.0  ;;  %v7138_v26 = vpop.eup %5141 }
0x183e   : > { %v3548_v24 = vsel %vm569_vm1, %v7138_v26, 0.0  ;;  %v7144_v33 = vpop.eup %5143 }
0x183f   : > { %v7150_v35 = vpop.eup %5145 }
0x1840   : > { %v3889_v8 = vsel %vm569_vm1, %v7150_v35, 0.0  ;;  %v7156_v29 = vpop.eup %5147 }
0x1841   : > { %v3787_v48 = vsel %vm569_vm1, %v7156_v29, 0.0 }
0x1850   : > { %3981 = vmax.xlane.f32.xlu1 %v3980_v62 }
0x1851   : > { %4911 = vrot.lane.b32.xlu0 %v7123_v5, %s5514_s3 }
0x1855   : > { %4901 = vrot.lane.b32.xlu2 %v7038_v37, %s5515_s20 }
0x1858   : > { %3449 = vadd.xlane.f32.xlu1 %v3448_v55 }
0x1871   : > { %4906 = vrot.lane.b32.xlu1 %v7038_v37, %s5516_s9  ;;  %v3790_v37 = vsel %vm569_vm1, %v7144_v33, 0.0 }
0x187e   : > { %3549 = vadd.xlane.f32.xlu2 %v3548_v24 }
0x1880   : > { %v3103_v15 = vpop.xlane.xlu1 %3102 }
0x1881   : > { %5149 = vrcp.f32 %v3103_v15 }
0x1885   : > { %v7200_v16 = vpop.f32.mrf.mxu3 }
0x1886   : > { %3791 = vadd.xlane.f32.xlu2 %v3790_v37 }
0x1887   : > { %v5150_v3 = vpop.eup %5149 }
0x1888   : > { %v3106_v20 = vpop.xlane.xlu2 %3105  ;;  %v3109_v38 = vmul.f32 %v5150_v3, %v7052_v17 }
0x188e   : > { %3890 = vadd.xlane.f32.xlu2 %v3889_v8 }
0x1890   : > { %v3979_v39 = vpop.xlane.xlu2 %3978 }
0x1891   : > { %v3983_v42 = vsub.f32 %v7065_v6, %v3979_v39 }
0x1893   : > { %v3985_v51 = vmul.f32 1.442695, %v3983_v42  ;;  %v3043_v42 = vpop.f32.mrf.mxu3 }
0x1895   : > { %5151 = vpow2.f32 %v3985_v51 }
0x1896   : > { %5153 = vpow2.f32 %v3887_v49 }
0x1897   : > { %5155 = vrcp.f32 %v3106_v20 }
0x1898   : > { %v4892_v46 = vpop.permute.xlu1 %4891  ;;  %v3345_v22 = vpop.xlane.xlu2 %3344 }
0x1899   : > { %v4893_v25 = vunpack.i.l.bf16 %v4892_v46  ;;  %v4894_v31 = vunpack.i.h.bf16 %v4892_v46  ;;  %v3547_v4 = vpop.xlane.xlu0 %3546 }
0x189b   : > { %3788 = vadd.xlane.f32.xlu1 %v3787_v48  ;;  %3137 = vmatpush.msrb.mxu2 %v4893_v25  ;;  %v7160_v6 = vpop.eup %5151 }
0x189c   : > { %v3989_v13 = vsel %vm569_vm1, %v7160_v6, 0.0  ;;  %v7166_v32 = vpop.eup %5153 }
0x189d   : > { %3138 = vmatpush.msrb.mxu2 %v4894_v31  ;;  %3990 = vadd.xlane.f32.xlu0 %v3989_v13  ;;  %v5156_v58 = vpop.eup %5155  ;;  %v3892_v34 = vsel %vm569_vm1, %v7166_v32, 0.0 }
0x189e   : > { %4568 = vmatmul.msk.f32.vlgmr.msrb.gmra.mxu2 %vm569_vm1, %v3109_v38  ;;  %v3110_v17 = vmul.f32 %v5156_v58, %v7058_v27 }
0x189f   : > { %3381 = vmatpush.msra.mxu2 %v4898_v44 }
0x18a0   : > { %v3254_v63 = vpop.xlane.xlu2 %3253 }
0x18a1   : > { %3382 = vmatpush.msra.mxu2 %v4899_v14  ;;  %5157 = vrcp.f32 %v3254_v63 }
0x18a2   : > { %5159 = vrcp.f32 %v3345_v22 }
0x18a3   : > { %3893 = vadd.xlane.f32.xlu1 %v3892_v34 }
0x18a6   : > { %4569 = vmatmul.msk.f32.gmra.mxu2 %vm569_vm1, %v3110_v17  ;;  %4916 = vrot.lane.b32.xlu2 %v7123_v5, %s5515_s20 }
0x18a7   : > { %v5158_v54 = vpop.eup %5157 }
0x18a8   : > { %v5160_v41 = vpop.eup %5159  ;;  %v3348_v2 = vpop.xlane.xlu2 %3347  ;;  %v3258_v45 = vmul.f32 %v5158_v54, %v7086_v0 }
0x18a9   : > { %5161 = vrcp.f32 %v3348_v2  ;;  %v3351_v57 = vmul.f32 %v5160_v41, %v7071_v36 }
0x18aa   : > { %4586 = vmatmul.msk.f32.gmra.mxu3 %vm569_vm1, %v3258_v45 }
0x18ae   : > { %4593 = vmatmul.msk.f32.vlgmr.msra.gmra.mxu2 %vm569_vm1, %v3351_v57 }
0x18af   : > { %v5162_v47 = vpop.eup %5161 }
0x18b0   : > { %v3447_v27 = vpop.xlane.xlu2 %3446  ;;  %v3352_v19 = vmul.f32 %v5162_v47, %v7092_v50  ;;  %v2943_v50 = vpop.f32.mrf.mxu2 }
0x18b1   : > { %3148 = vrot.lane.b32.xlu0 %v2940_v59, %s5516_s9  ;;  %5163 = vrcp.f32 %v3447_v27 }
0x18b6   : > { %4594 = vmatmul.msk.f32.gmra.mxu2 %vm569_vm1, %v3352_v19 }
0x18b7   : > { %v5164_v62 = vpop.eup %5163 }
0x18b8   : > { %v4902_v1 = vpop.permute.xlu2 %4901  ;;  %v3453_v36 = vmul.f32 %v5164_v62, %v7100_v23  ;;  %v3695_v23 = vpop.xlane.xlu0 %3694 }
0x18b9   : > { %v4904_v0 = vunpack.i.h.bf16 %v4902_v1  ;;  %v4903_v55 = vunpack.i.l.bf16 %v4902_v1 }
0x18bb   : > { %3481 = vmatpush.msrb.mxu3 %v4903_v55 }
0x18bc   : > { %4921 = vrot.lane.b32.xlu1 %v7123_v5, %s5516_s9 }
0x18bd   : > { %3482 = vmatpush.msrb.mxu3 %v4904_v0  ;;  %v3282_v0 = vpop.f32.mrf.mxu3 }
0x18be   : > { %4601 = vmatmul.msk.f32.vlgmr.msrb.gmra.mxu3 %vm569_vm1, %v3453_v36 }
0x18bf   : > { %3723 = vmatpush.msra.mxu3 %v7119_v11 }
0x18c0   : > { %v3698_v37 = vpop.xlane.xlu0 %3697 }
0x18c1   : > { %3724 = vmatpush.msra.mxu3 %v7116_v30 }
0x18c3   : > { %v3982_v43 = vpop.xlane.xlu1 %3981 }
0x18c4   : > { %v3984_v28 = vsub.f32 %v7111_v10, %v3982_v43  ;;  %3150 = vrot.lane.b32.xlu1 %v2943_v50, %s5516_s9 }
0x18c6   : > { %v3987_v53 = vmul.f32 1.442695, %v3984_v28 }
0x18c8   : > { %5165 = vpow2.f32 %v3987_v53 }
0x18cb   : > { %v3450_v5 = vpop.xlane.xlu1 %3449 }
0x18cc   : > { %5167 = vrcp.f32 %v3450_v5 }
0x18cd   : > { %5169 = vrcp.f32 %v3695_v23 }
0x18ce   : > { %v7191_v24 = vpop.eup %5165  ;;  %5171 = vrcp.f32 %v3698_v37 }
0x18cf   : > { %v3992_v11 = vsel %vm569_vm1, %v7191_v24, 0.0  ;;  %5173 = vrcp.f32 %v3547_v4 }
0x18d0   : > { %3993 = vadd.xlane.f32.xlu2 %v3992_v11 }
0x18d2   : > { %v5168_v30 = vpop.eup %5167 }
0x18d3   : > { %v3454_v10 = vmul.f32 %v5168_v30, %v7125_v12  ;;  %v5170_v61 = vpop.eup %5169 }
0x18d4   : > { %v3701_v20 = vmul.f32 %v5170_v61, %v7094_v60  ;;  %v5172_v56 = vpop.eup %5171  ;;  %v4912_v60 = vpop.permute.xlu0 %4911 }
0x18d5   : > { %4602 = vmatmul.msk.f32.gmra.mxu3 %vm569_vm1, %v3454_v10  ;;  %v3702_v15 = vmul.f32 %v5172_v56, %v7102_v7  ;;  %v5174_v40 = vpop.eup %5173  ;;  %v4914_v49 = vunpack.i.h.bf16 %v4912_v60  ;;  %v4913_v46 = vunpack.i.l.bf16 %v4912_v60 }
0x18d6   : > { %v3553_v51 = vmul.f32 %v5174_v40, %v7075_v21 }
0x18dd   : > { %4626 = vmatmul.msk.f32.vlgmr.msra.gmra.mxu3 %vm569_vm1, %v3701_v20 }
0x18e3   : > { %v4907_v8 = vpop.permute.xlu1 %4906 }
0x18e4   : > { %v4908_v12 = vunpack.i.l.bf16 %v4907_v8  ;;  %v4909_v39 = vunpack.i.h.bf16 %v4907_v8 }
0x18e5   : > { %4627 = vmatmul.msk.f32.gmra.mxu3 %vm569_vm1, %v3702_v15 }
0x18e6   : > { %3581 = vmatpush.msrb.mxu2 %v4908_v12  ;;  %v4611_v12 = vld [vmem:[%s5804_s28 + $0x60] sm:$0xff] }
0x18e8   : > { %3158 = vrot.lane.b32.xlu2 %v3043_v42, %s5515_s20  ;;  %3582 = vmatpush.msrb.mxu2 %v4909_v39 }
0x18e9   : > { %4609 = vmatmul.msk.f32.vlgmr.msrb.gmra.mxu2 %vm569_vm1, %v3553_v51 }
0x18ea   : > { %3825 = vmatpush.msra.mxu2 %v4913_v46 }
0x18ec   : > { %3826 = vmatpush.msra.mxu2 %v4914_v49 }
0x18f1   : > { %v3550_v7 = vpop.xlane.xlu2 %3549 }
0x18f2   : > { %5175 = vrcp.f32 %v3550_v7 }
0x18f8   : > { %v5176_v3 = vpop.eup %5175 }
0x18f9   : > { %v3792_v22 = vpop.xlane.xlu2 %3791  ;;  %v3554_v25 = vmul.f32 %v5176_v3, %v7138_v26 }
0x18fb   : > { %4610 = vmatmul.msk.f32.gmra.mxu2 %vm569_vm1, %v3554_v25 }
0x1901   : > { %v3891_v18 = vpop.xlane.xlu2 %3890 }
0x1902   : > { %5177 = vrcp.f32 %v3891_v18 }
0x1908   : > { %v5178_v48 = vpop.eup %5177 }
0x1909   : > { %v4917_v21 = vpop.permute.xlu2 %4916  ;;  %v3897_v38 = vmul.f32 %v5178_v48, %v7150_v35 }
0x190a   : > { %v4919_v44 = vunpack.i.h.bf16 %v4917_v21  ;;  %v4918_v31 = vunpack.i.l.bf16 %v4917_v21 }
0x190c   : > { %3925 = vmatpush.msrb.mxu3 %v4918_v31 }
0x190e   : > { %v3789_v14 = vpop.xlane.xlu1 %3788  ;;  %3926 = vmatpush.msrb.mxu3 %v4919_v44 }
0x190f   : > { %5179 = vrcp.f32 %v3789_v14  ;;  %4642 = vmatmul.msk.f32.vlgmr.msrb.gmra.mxu3 %vm569_vm1, %v3897_v38  ;;  %v4571_v38 = vld [vmem:[%s5804_s28 + $0x58] sm:$0xff]  ;;  %v4570_v14 = vld [vmem:[%s5804_s28 + $0x50] sm:$0xff] }
0x1910   : > { %5181 = vrcp.f32 %v3792_v22  ;;  %v3991_v41 = vpop.xlane.xlu0 %3990  ;;  %v4653_v22 = vld [vmem:[%s5804_s28 + $0x78] sm:$0xff] }
0x1915   : > { %v5180_v13 = vpop.eup %5179 }
0x1916   : > { %v3795_v26 = vmul.f32 %v5180_v13, %v7156_v29  ;;  %v3894_v58 = vpop.xlane.xlu1 %3893  ;;  %v5182_v63 = vpop.eup %5181 }
0x1917   : > { %5183 = vrcp.f32 %v3894_v58  ;;  %v3796_v17 = vmul.f32 %v5182_v63, %v7144_v33 }
0x1918   : > { %4634 = vmatmul.msk.f32.vlgmr.msra.gmra.mxu2 %vm569_vm1, %v3795_v26  ;;  %5185 = vrcp.f32 %v3991_v41  ;;  %v4612_v41 = vld [vmem:[%s5804_s28 + $0x68] sm:$0xff] }
0x191d   : > { %v5184_v34 = vpop.eup %5183 }
0x191e   : > { %v3898_v54 = vmul.f32 %v5184_v34, %v7166_v32  ;;  %v5186_v29 = vpop.eup %5185 }
0x191f   : > { %v3997_v27 = vmul.f32 %v5186_v29, %v7160_v6 }
0x1920   : > { %4635 = vmatmul.msk.f32.gmra.mxu2 %vm569_vm1, %v3796_v17  ;;  %4643 = vmatmul.msk.f32.gmra.mxu3 %vm569_vm1, %v3898_v54 }
0x1921   : > { %v3140_v35 = vpop.f32.mrf.mxu2 }
0x1923   : > { %v3149_v10 = vpop.permute.xlu0 %3148 }
0x1924   : > { %v3170_v48 = vsel %vm531_vm0, %v7189_v52, %v3149_v10 }
0x1929   : > { %v3143_v2 = vpop.f32.mrf.mxu2 }
0x192d   : > { %v7225_v6 = vpop.f32.mrf.mxu3 }
0x192e   : > { %v4922_v45 = vpop.permute.xlu1 %4921 }
0x192f   : > { %v4924_v57 = vunpack.i.h.bf16 %v4922_v45  ;;  %v4923_v47 = vunpack.i.l.bf16 %v4922_v45 }
0x1931   : > { %v3384_v59 = vpop.f32.mrf.mxu2  ;;  %4025 = vmatpush.msrb.mxu2 %v4923_v47 }
0x1932   : > { %3592 = vrot.lane.b32.xlu1 %v3384_v59, %s5516_s9 }
0x1933   : > { %4026 = vmatpush.msrb.mxu2 %v4924_v57 }
0x1934   : > { %4650 = vmatmul.msk.f32.vlgmr.msrb.gmra.mxu2 %vm569_vm1, %v3997_v27 }
0x1936   : > { %v3151_v30 = vpop.permute.xlu1 %3150 }
0x1937   : > { %v3171_v44 = vsel %vm531_vm0, %v7196_v9, %v3151_v30 }
0x1939   : > { %v3387_v33 = vpop.f32.mrf.mxu2 }
0x193a   : > { %3594 = vrot.lane.b32.xlu0 %v3387_v33, %s5516_s9 }
0x1941   : > { %v3484_v55 = vpop.f32.mrf.mxu3 }
0x1943   : > { %v3994_v32 = vpop.xlane.xlu2 %3993 }
0x1944   : > { %5187 = vrcp.f32 %v3994_v32 }
0x194a   : > { %v5188_v19 = vpop.eup %5187 }
0x194b   : > { %v3998_v1 = vmul.f32 %v5188_v19, %v7191_v24  ;;  %v3159_v8 = vpop.permute.xlu2 %3158 }
0x194c   : > { %v3173_v13 = vsel %vm952_vm2, %v3171_v44, %v3159_v8 }
0x194d   : > { %4651 = vmatmul.msk.f32.gmra.mxu2 %vm569_vm1, %v3998_v1 }
0x1958   : > { %v3487_v36 = vpop.f32.mrf.mxu3 }
0x1960   : > { %v7227_v43 = vpop.f32.mrf.mxu3 }
0x1968   : > { %v3729_v4 = vpop.f32.mrf.mxu3 }
0x196c   : > { %v3584_v62 = vpop.f32.mrf.mxu2 }
0x196d   : > { %3608 = vrot.lane.b32.xlu2 %v3584_v62, %s5514_s3 }
0x197e   : > { %v3587_v50 = vpop.f32.mrf.mxu2 }
0x1992   : > { %v3928_v5 = vpop.f32.mrf.mxu3 }
0x199b   : > { %v3828_v28 = vpop.f32.mrf.mxu2 }
0x199c   : > { %4036 = vrot.lane.b32.xlu1 %v3828_v28, %s5516_s9 }
0x19a3   : > { %v3831_v53 = vpop.f32.mrf.mxu2  ;;  %v3931_v23 = vpop.f32.mrf.mxu3 }
0x19a4   : > { %3156 = vrot.lane.b32.xlu1 %v7200_v16, %s5515_s20  ;;  %4038 = vrot.lane.b32.xlu0 %v3831_v53, %s5516_s9  ;;  %v3593_v37 = vpop.permute.xlu1 %3592 }
0x19a5   : > { %v3614_v15 = vsel %vm531_vm0, %v3282_v0, %v3593_v37 }
0x19ac   : > { %3602 = vrot.lane.b32.xlu1 %v3487_v36, %s5515_s20  ;;  %3600 = vrot.lane.b32.xlu0 %v3484_v55, %s5515_s20  ;;  %v3595_v61 = vpop.permute.xlu0 %3594 }
0x19ad   : > { %v3615_v54 = vsel %vm531_vm0, %v7225_v6, %v3595_v61 }
0x19b4   : > { %4046 = vrot.lane.b32.xlu1 %v3931_v23, %s5515_s20  ;;  %4044 = vrot.lane.b32.xlu0 %v3928_v5, %s5515_s20 }
0x19b7   : > { %v4028_v24 = vpop.f32.mrf.mxu2 }
0x19bc   : > { %3166 = vrot.lane.b32.xlu1 %v3143_v2, %s5514_s3  ;;  %3164 = vrot.lane.b32.xlu0 %v3140_v35, %s5514_s3  ;;  %v4652_v2 = vld [vmem:[%s5804_s28 + $0x70] sm:$0xff]  ;;  %s4073_s28 = scalar_lea.sflag [#allocation4], %s5779_s26 }
0x19c4   : > { %3610 = vrot.lane.b32.xlu0 %v3587_v50, %s5514_s3  ;;  %4052 = vrot.lane.b32.xlu1 %v4028_v24, %s5514_s3 }
0x19c7   : > { %v3609_v42 = vpop.permute.xlu2 %3608 }
0x19d0   : > { %v4031_v11 = vpop.f32.mrf.mxu2 }
0x19d1   : > { %4054 = vrot.lane.b32.xlu2 %v4031_v11, %s5514_s3  ;;  %s5388_s3 = sshra.s32 %s4091_s11, 4  ;;  %s5389_s3 = int_to_ptr.hbm [resolvable:$true] %s5388_s3 }
0x19d2   : > { %s5390_s20 = scalar_lea.hbm %s5389_s3, 128  ;;  %p5395_p4 = scmp.lt.s32.totalorder %s5389_s3, %s7378_s0 }
0x19d3   : > { %p5391_p9 = scmp.ne.s32.totalorder %s5389_s3, %s5390_s20  ;;  %p5396_p5 = scmp.lt.s32.totalorder %s5394_s15, %s5390_s20 }
0x19d5   : > { %p5392_p13 = pnand %p5391_p9, %p5631_p7  ;;  %p5397_p6 = por %p5396_p5, %p5395_p4 }
0x19d7   : > { %p5393_p1 = pneg %p5392_p13 }
0x19d9   : > { %p5398_p11 = pnand %p5397_p6, %p5393_p1 }
0x1a0e   : > { %v4037_v20 = vpop.permute.xlu1 %4036 }
0x1a0f   : > { %v4058_v35 = vsel %vm531_vm0, %v7227_v43, %v4037_v20 }
0x1a16   : > { %v3157_v16 = vpop.permute.xlu1 %3156  ;;  %v4039_v56 = vpop.permute.xlu0 %4038 }
0x1a17   : > { %v4059_v3 = vsel %vm531_vm0, %v3729_v4, %v4039_v56  ;;  %v3172_v26 = vsel %vm952_vm2, %v3170_v48, %v3157_v16 }
0x1a1e   : > { %v3603_v40 = vpop.permute.xlu1 %3602  ;;  %v3601_v39 = vpop.permute.xlu0 %3600 }
0x1a1f   : > { %v3616_v51 = vsel %vm952_vm2, %v3614_v15, %v3601_v39  ;;  %v3617_v45 = vsel %vm952_vm2, %v3615_v54, %v3603_v40 }
0x1a20   : > { %v3618_v60 = vsel %vm955_vm3, %v3616_v51, %v3609_v42 }
0x1a21   : > { %v3623_v49 = vmul.f32 %v4611_v12, %v3618_v60 }
0x1a23   : > { %4613 = vst [vmem:[%s6374_s17 + $0x60] sm:$0xff] %v3623_v49 }
0x1a26   : > { %v4047_v46 = vpop.permute.xlu1 %4046  ;;  %v4045_v7 = vpop.permute.xlu0 %4044 }
0x1a27   : > { %v4061_v25 = vsel %vm952_vm2, %v4059_v3, %v4047_v46  ;;  %v4060_v29 = vsel %vm952_vm2, %v4058_v35, %v4045_v7 }
0x1a2b   : > { %v4055_v18 = vpop.permute.xlu2 %4054 }
0x1a2c   : > { %v4063_v21 = vsel %vm955_vm3, %v4061_v25, %v4055_v18 }
0x1a2d   : > { %v4068_v31 = vmul.f32 %v4653_v22, %v4063_v21 }
0x1a2e   : > { %v3167_v58 = vpop.permute.xlu1 %3166  ;;  %v3165_v63 = vpop.permute.xlu0 %3164 }
0x1a2f   : > { %4655 = vst [vmem:[%s6374_s17 + $0x78] sm:$0xff] %v4068_v31  ;;  %v3175_v34 = vsel %vm955_vm3, %v3173_v13, %v3167_v58  ;;  %v3174_v52 = vsel %vm955_vm3, %v3172_v26, %v3165_v63 }
0x1a30   : > { %v3180_v9 = vmul.f32 %v4571_v38, %v3175_v34  ;;  %v3179_v17 = vmul.f32 %v4570_v14, %v3174_v52 }
0x1a32   : > { %4573 = vst [vmem:[%s6374_s17 + $0x58] sm:$0xff] %v3180_v9 }
0x1a33   : > { %4572 = vst [vmem:[%s6374_s17 + $0x50] sm:$0xff] %v3179_v17 }
0x1a36   : > { %v3611_v57 = vpop.permute.xlu0 %3610  ;;  %v4053_v47 = vpop.permute.xlu1 %4052 }
0x1a37   : > { %v3619_v59 = vsel %vm955_vm3, %v3617_v45, %v3611_v57  ;;  %v4062_v27 = vsel %vm955_vm3, %v4060_v29, %v4053_v47 }
0x1a38   : > { %v3624_v33 = vmul.f32 %v4612_v41, %v3619_v59  ;;  %v4067_v32 = vmul.f32 %v4652_v2, %v4062_v27 }
0x1a3a   : > { %4614 = vst [vmem:[%s6374_s17 + $0x68] sm:$0xff] %v3624_v33 }
0x1a3b   : > { %4654 = vst [vmem:[%s6374_s17 + $0x70] sm:$0xff] %v4067_v32 }
0x1a3c   : > { %5401 = shalt.err (!%p5398_p11)
}
0x1a3d   : > { %s5517_s26 = smov 128   ;;  %s5518_s17 = smov 8  }
0x1a3e   : > { %4681 = dma.vmem_to_hbm [thread:$0]  (%p5631_p7), %s4089_s27, 2048, %s4091_s11, %s4073_s28, %s5517_s26, %s5517_s26, %s5518_s17  }
0x1a3f PF: > { %p4707_p10 = scmp.ge.s32.totalorder %s5508_s7, 2  ;;  %s4105_s1 = sand.u32 1, %s5480_s24  }
0x1a40   : > { %s4106_s4 = scalar_lea.sflag [#allocation4], %s4105_s1 }
0x1a41   : > { %p4703_p0 = pnand %p4707_p10, %p5638_p8 }
0x1a43   : > { %p4704_p3 = pneg %p4703_p0 }
0x1a45   : > { %5463 = dma.done.wait (%p4704_p3), %s4106_s4, 2048  }
0x1a46   : > { %5465 = vsyncadd (%p4704_p3), %s4106_s4, 4294965248  ;;  %s31_s7 = sadd.s32 1, %s5508_s7   ;;  %s7381_s8 = sld [smem:[#allocation19_spill]] }
0x1a47   : > { %p28_p12 = scmp.ge.s32.totalorder %s31_s7, 6   ;;  %s7382_s21 = smov %s5472_s22 }
0x1a48   : > { %s7383_s22 = smov %s5476_s23  ;;  %s7384_s23 = smov %s5758_s14 }
0x1a49   : > { %s7385_s24 = smov %s5484_s25  ;;  %s7387_s26 = smov %s7399_s13 }
0x1a4a   : > { %s7388_s27 = smov %s5500_s29  ;;  %s7389_s28 = smov %s5504_s30 }
0x1a4b   : > { %s7390_s29 = smov %s7393_s10  ;;  %s7391_s30 = smov %s7397_s6 }
0x1a4c   : > { %s7386_s25 = smov %s7381_s8  ;;  %30 = sbr.rel (!%p28_p12) target bundleno = 22 (0x16), region = 195 }
0x1a51   :  { %4112 = vsyncpa [#allocation3], 1 }
0x1a52   :  { %4114 = vsyncpa [#allocation3 + $0x1], 1 }
0x1a53   :  { %4115 = vsyncpa [#allocation6], 1 }
0x1a54   :  { %4117 = vsyncpa [#allocation6 + $0x1], 1 }
0x1a55   :  { %4118 = vsyncpa [#allocation9], 1 }
0x1a56   :  { %4120 = vsyncpa [#allocation9 + $0x1], 1 }
0x1a57   :  { %4121 = vsyncpa [#allocation12], 1 }
0x1a58   :  { %4123 = vsyncpa [#allocation12 + $0x1], 1 }
0x1a59   :  { %4124 = vsyncpa [#allocation4], 1 }
0x1a5a   :  { %4126 = vsyncpa [#allocation4 + $0x1], 1 }

</bundles_post_ra>
